<compile_context>
chip_gen: v5e
topology: v5e:2x2
jax: 0.10.0
libtpu: 0.0.40
codegen_flags: <defaults>
</compile_context>

<pallas_src>
import functools

import jax
import jax.numpy as jnp
from jax.experimental import pallas as pl
from jax.experimental.pallas import tpu as pltpu


_VMEM_BUDGET = 20 * 2**20     # target working set per layer
_VMEM_CAP = 40 * 2**20        # never request more than this (v7x has 64 MiB)


def _round_up(x, m):
    return (x + m - 1) // m * m


# ---------------------------------------------------------------------------
# Pallas kernel: fused 3x3/stride-2 conv (+ folded BN scale) + shift + ReLU.
# ---------------------------------------------------------------------------
def _convblock_kernel(y_ref, halo_ref, w_ref, shift_ref, o_ref, yfull,
                      *, th, wy):
    # y_ref:     (TH*Wy, 4C)  bf16 -- TH rows of space-to-depth cells (full width)
    # halo_ref:  (Wy,    4C)  bf16 -- the next cell row (bottom halo)
    # w_ref:     (4, 4C, Co)  bf16 -- per-window-tap weights, BN scale folded in
    # shift_ref: (1, Co)      f32  -- folded BN shift
    # o_ref:     (TH*Wy, Co)  bf16 -- output rows (padded width, sliced later)
    # yfull:     ((TH+2)*Wy, 4C) bf16 VMEM scratch (main + halo staged contiguously)
    rows = th * wy

    yfull[pl.ds(0, rows), :] = y_ref[...]
    yfull[pl.ds(rows, wy), :] = halo_ref[...]
    # Tail only feeds discarded (padded) output columns; zero it for determinism.
    yfull[pl.ds(rows + wy, wy), :] = jnp.zeros((wy, yfull.shape[1]), yfull.dtype)

    ya = yfull[pl.ds(0, rows), :]           # cell (ho,   wo)
    yb = yfull[pl.ds(1, rows), :]           # cell (ho,   wo+1)
    yc = yfull[pl.ds(wy, rows), :]          # cell (ho+1, wo)
    yd = yfull[pl.ds(wy + 1, rows), :]      # cell (ho+1, wo+1)

    acc = jnp.dot(ya, w_ref[0], preferred_element_type=jnp.float32)
    acc += jnp.dot(yb, w_ref[1], preferred_element_type=jnp.float32)
    acc += jnp.dot(yc, w_ref[2], preferred_element_type=jnp.float32)
    acc += jnp.dot(yd, w_ref[3], preferred_element_type=jnp.float32)

    y = acc + shift_ref[...]
    o_ref[...] = jnp.maximum(y, 0.0).astype(o_ref.dtype)


# ---------------------------------------------------------------------------
# Wrapper: one ConvBlock (conv 3x3 s2 p1 + BN(eval) + ReLU) via pallas_call.
# ---------------------------------------------------------------------------
def _vmem_bytes(th, wy, c4, co):
    def buf(r, c, item):
        rp = _round_up(max(r, 1), 8 * (4 // item))
        cp = _round_up(max(c, 1), 128)
        return rp * cp * item
    rows = th * wy
    total = 0
    total += 2 * buf(rows, c4, 2)           # main input (double-buffered)
    total += 2 * buf(wy, c4, 2)             # halo row
    total += 2 * 4 * buf(c4, co, 2)         # packed weights
    total += 2 * buf(1, co, 4)              # shift
    total += 2 * buf(rows, co, 2)           # output
    total += buf((th + 2) * wy, c4, 2)      # staging scratch
    return total


def conv_block(x_nhwc, wmats, shift):
    """ConvBlock forward: relu(bn(conv(x)))  (BN in eval mode, folded)."""
    N, H, W, C = x_nhwc.shape
    c4 = 4 * C
    assert wmats.shape == (4, c4, wmats.shape[-1])
    Co = wmats.shape[-1]

    Ho = (H - 1) // 2 + 1
    Wo = (W - 1) // 2 + 1
    Wy = _round_up(Wo + 1, 8)               # padded cell width (>= Wo+1)

    # Rows-per-block: keep >= 2 row blocks (v7x megacore) and fit VMEM budget.
    th = min(128, max(1, (Ho + 1) // 2))
    while th > 1 and _vmem_bytes(th, Wy, c4, Co) > _VMEM_BUDGET:
        th = max(1, th // 2)
    nb = -(-Ho // th)                        # number of row blocks
    Ho_pad = nb * th
    Hy = Ho_pad + th                         # extra zero rows: halo always valid
    nbp1 = Hy // th                          # = nb + 1
    Hp, Wp = 2 * Hy, 2 * Wy

    # --- glue: spatial zero-pad + 2x2 space-to-depth, flattened to 2D ------
    xb = x_nhwc.astype(jnp.bfloat16)
    xp = jnp.pad(xb, ((0, 0), (1, Hp - H - 1), (1, Wp - W - 1), (0, 0)))
    y = xp.reshape(N, Hy, 2, Wy, 2, C).transpose(0, 1, 3, 2, 4, 5)
    y2d = y.reshape(N * Hy * Wy, c4)

    vmem_need = _vmem_bytes(th, Wy, c4, Co)
    vmem_limit = int(min(_VMEM_CAP, max(16 * 2**20, 2 * vmem_need)))

    rows_total = N * Ho_pad * Wy
    cost = pl.CostEstimate(
        flops=2 * rows_total * (4 * c4) * Co,
        transcendentals=0,
        bytes_accessed=int(y2d.size * 2 + N * nb * Wy * c4 * 2
                           + wmats.size * 2 + shift.size * 4
                           + rows_total * Co * 2),
    )

    out2d = pl.pallas_call(
        functools.partial(_convblock_kernel, th=th, wy=Wy),
        out_shape=jax.ShapeDtypeStruct((rows_total, Co), jnp.bfloat16),
        grid=(N, nb),
        in_specs=[
            pl.BlockSpec((th * Wy, c4), lambda b, r: (b * nbp1 + r, 0)),
            pl.BlockSpec((Wy, c4),
                         lambda b, r: (b * nbp1 * th + (r + 1) * th, 0)),
            pl.BlockSpec((4, c4, Co), lambda b, r: (0, 0, 0)),
            pl.BlockSpec((1, Co), lambda b, r: (0, 0)),
        ],
        out_specs=pl.BlockSpec((th * Wy, Co), lambda b, r: (b * nb + r, 0)),
        scratch_shapes=[pltpu.VMEM(((th + 2) * Wy, c4), jnp.bfloat16)],
        compiler_params=pltpu.CompilerParams(
            dimension_semantics=("parallel", "parallel"),
            vmem_limit_bytes=vmem_limit,
        ),
        cost_estimate=cost,
    )(y2d, y2d, wmats, shift)

    out = out2d.reshape(N, Ho_pad, Wy, Co)[:, :Ho, :Wo, :]
    return out


# ---------------------------------------------------------------------------
# Parameter preparation (hoisted out of the forward path).
# ---------------------------------------------------------------------------
def init_params(key):
    """Deterministic synthetic parameters for the three ConvBlocks."""
    specs = [(3, 64), (64, 128), (128, 256)]
    params = []
    for i, (ci, co) in enumerate(specs):
        k = jax.random.fold_in(key, i)
        kw_, kg, kb, km, kv = jax.random.split(k, 5)
        w = 0.05 * jax.random.normal(kw_, (co, ci, 3, 3), jnp.float32)
        gamma = 1.0 + 0.1 * jax.random.normal(kg, (co,), jnp.float32)
        beta = 0.1 * jax.random.normal(kb, (co,), jnp.float32)
        mean = 0.1 * jax.random.normal(km, (co,), jnp.float32)
        var = 0.5 + jax.random.uniform(kv, (co,), jnp.float32)
        params.append((w, gamma, beta, mean, var))
    return params


def prepare_params(params, eps=1e-5):
    """Fold BN(eval) into per-window-tap packed bf16 weights + f32 shift."""
    packed = []
    for (w, gamma, beta, mean, var) in params:
        co, ci, kh_, kw_ = w.shape
        assert kh_ == 3 and kw_ == 3
        inv_std = 1.0 / jnp.sqrt(var + eps)
        scale = gamma * inv_std                              # (Co,)
        shift = beta - mean * scale                          # (Co,)
        w_t = jnp.transpose(w, (2, 3, 1, 0))                 # (kh, kw, Ci, Co)
        # wz[dy, dx, pr, pc, ci, co]  with kh = 2*dy + pr, kw = 2*dx + pc
        wz = jnp.zeros((2, 2, 2, 2, ci, co), jnp.float32)
        for kh in range(3):
            for kw in range(3):
                wz = wz.at[kh // 2, kw // 2, kh % 2, kw % 2].set(w_t[kh, kw])
        wmats = wz.reshape(4, 4 * ci, co)                    # window-tap order
        wmats = (wmats * scale[None, None, :]).astype(jnp.bfloat16)
        packed.append((wmats, shift.reshape(1, co).astype(jnp.float32)))
    return packed


# ---------------------------------------------------------------------------
# Spatial_path forward + pure-JAX reference.
# ---------------------------------------------------------------------------
def spatial_path(x_nchw, packed_params):
    x = jnp.transpose(x_nchw, (0, 2, 3, 1))                  # NCHW -> NHWC
    for (wmats, shift) in packed_params:
        x = conv_block(x, wmats, shift)
    return jnp.transpose(x, (0, 3, 1, 2)).astype(x_nchw.dtype)


def spatial_path_ref(x_nchw, params, eps=1e-5):
    """Pure-JAX f32 reference (lax.conv) for correctness checking."""
    x = jnp.transpose(x_nchw, (0, 2, 3, 1))
    for (w, g, b, m, v) in params:
        w_hwio = jnp.transpose(w, (2, 3, 1, 0))
        y = jax.lax.conv_general_dilated(
            x, w_hwio, window_strides=(2, 2), padding=((1, 1), (1, 1)),
            dimension_numbers=("NHWC", "HWIO", "NHWC"))
        y = (y - m) / jnp.sqrt(v + eps) * g + b
        x = jnp.maximum(y, 0.0)
    return jnp.transpose(x, (0, 3, 1, 2))


if __name__ == "__main__":
    key = jax.random.PRNGKey(0)
    kx, kp = jax.random.split(key)
    x = jax.random.normal(kx, (2, 3, 16, 16), jnp.float32)   # NCHW, like PyTorch
    params = init_params(kp)
    packed = prepare_params(params)                          # once per param set

    out = jax.jit(spatial_path)(x, packed)
    out = jax.block_until_ready(out)

    assert out.shape == (2, 256, 2, 2), out.shape            # 16 -> 8 -> 4 -> 2

    ref = spatial_path_ref(x, params)
    max_err = float(jnp.max(jnp.abs(out - ref)))
    # bf16 matmul operands + bf16 activation storage across three stacked
    # layers vs an f32 reference -> tolerance sized for bf16 rounding.
    assert jnp.allclose(out, ref, atol=1e-1, rtol=5e-2), max_err

    print("KERNEL_OK")
</pallas_src>

<mosaic_0001>
module attributes {stable_mosaic.version = 11 : i64} {
  func.func @_convblock_kernel(%arg0: i32, %arg1: i32, %arg2: memref<64x12xbf16, #tpu.memory_space<vmem>>, %arg3: memref<16x12xbf16, #tpu.memory_space<vmem>>, %arg4: memref<4x12x64xbf16, #tpu.memory_space<vmem>>, %arg5: memref<1x64xf32, #tpu.memory_space<vmem>>, %arg6: memref<64x64xbf16, #tpu.memory_space<vmem>>, %arg7: memref<96x12xbf16, #tpu.memory_space<vmem>>) attributes {dimension_semantics = [#tpu.dimension_semantics<parallel>, #tpu.dimension_semantics<parallel>], iteration_bounds = array<i64: 2, 2>, scalar_prefetch = 0 : i64, scratch_operands = 1 : i64, tpu.core_type = #tpu.core_type<tc>, window_params = [{transform_indices = @transform_0, window_bounds = array<i64: 64, 12>}, {transform_indices = @transform_1, window_bounds = array<i64: 16, 12>}, {pipeline_mode = #tpu.pipeline_mode<synchronous>, transform_indices = @transform_2, window_bounds = array<i64: 4, 12, 64>}, {pipeline_mode = #tpu.pipeline_mode<synchronous>, transform_indices = @transform_3, window_bounds = array<i64: 1, 64>}, {transform_indices = @transform_4, window_bounds = array<i64: 64, 64>}]} {
    %c0 = arith.constant 0 : index
    %c0_0 = arith.constant 0 : index
    %0 = vector.load %arg2[%c0, %c0_0] : memref<64x12xbf16, #tpu.memory_space<vmem>>, vector<64x12xbf16>
    %c0_1 = arith.constant 0 : index
    %c0_2 = arith.constant 0 : index
    %1 = vector.load %arg7[%c0_1, %c0_2] : memref<96x12xbf16, #tpu.memory_space<vmem>>, vector<64x12xbf16>
    tpu.vector_store %arg7[%c0_1, %c0_2], %0 {strides = array<i32>} : memref<96x12xbf16, #tpu.memory_space<vmem>>, vector<64x12xbf16>,
    %c0_3 = arith.constant 0 : index
    %c0_4 = arith.constant 0 : index
    %2 = vector.load %arg3[%c0_3, %c0_4] : memref<16x12xbf16, #tpu.memory_space<vmem>>, vector<16x12xbf16>
    %c64 = arith.constant 64 : index
    %c0_5 = arith.constant 0 : index
    %3 = vector.load %arg7[%c64, %c0_5] : memref<96x12xbf16, #tpu.memory_space<vmem>>, vector<16x12xbf16>
    tpu.vector_store %arg7[%c64, %c0_5], %2 {strides = array<i32>} : memref<96x12xbf16, #tpu.memory_space<vmem>>, vector<16x12xbf16>,
    %cst = arith.constant 0.000000e+00 : bf16
    %4 = vector.broadcast %cst : bf16 to vector<16x12xbf16>
    %c80 = arith.constant 80 : index
    %c0_6 = arith.constant 0 : index
    %5 = vector.load %arg7[%c80, %c0_6] : memref<96x12xbf16, #tpu.memory_space<vmem>>, vector<16x12xbf16>
    tpu.vector_store %arg7[%c80, %c0_6], %4 {strides = array<i32>} : memref<96x12xbf16, #tpu.memory_space<vmem>>, vector<16x12xbf16>,
    %c0_7 = arith.constant 0 : index
    %c0_8 = arith.constant 0 : index
    %6 = vector.load %arg7[%c0_7, %c0_8] : memref<96x12xbf16, #tpu.memory_space<vmem>>, vector<64x12xbf16>
    %c1 = arith.constant 1 : index
    %c0_9 = arith.constant 0 : index
    %7 = vector.load %arg7[%c1, %c0_9] : memref<96x12xbf16, #tpu.memory_space<vmem>>, vector<64x12xbf16>
    %c16 = arith.constant 16 : index
    %c0_10 = arith.constant 0 : index
    %8 = vector.load %arg7[%c16, %c0_10] : memref<96x12xbf16, #tpu.memory_space<vmem>>, vector<64x12xbf16>
    %c17 = arith.constant 17 : index
    %c0_11 = arith.constant 0 : index
    %9 = vector.load %arg7[%c17, %c0_11] : memref<96x12xbf16, #tpu.memory_space<vmem>>, vector<64x12xbf16>
    %c0_12 = arith.constant 0 : index
    %c0_13 = arith.constant 0 : index
    %c0_14 = arith.constant 0 : index
    %10 = vector.load %arg4[%c0_12, %c0_13, %c0_14] : memref<4x12x64xbf16, #tpu.memory_space<vmem>>, vector<1x12x64xbf16>
    %11 = vector.shape_cast %10 : vector<1x12x64xbf16> to vector<12x64xbf16>
    %cst_15 = arith.constant dense<0.000000e+00> : vector<64x64xf32>
    %12 = tpu.matmul %6, %11, %cst_15 {dimension_numbers = #tpu.dot_dimension_numbers<[1], [0], [0], [1], [0, 0, 1, 1], [], []>} : vector<64x12xbf16>, vector<12x64xbf16>, vector<64x64xf32> -> vector<64x64xf32>
    %c1_16 = arith.constant 1 : index
    %c0_17 = arith.constant 0 : index
    %c0_18 = arith.constant 0 : index
    %13 = vector.load %arg4[%c1_16, %c0_17, %c0_18] : memref<4x12x64xbf16, #tpu.memory_space<vmem>>, vector<1x12x64xbf16>
    %14 = vector.shape_cast %13 : vector<1x12x64xbf16> to vector<12x64xbf16>
    %cst_19 = arith.constant dense<0.000000e+00> : vector<64x64xf32>
    %15 = tpu.matmul %7, %14, %cst_19 {dimension_numbers = #tpu.dot_dimension_numbers<[1], [0], [0], [1], [0, 0, 1, 1], [], []>} : vector<64x12xbf16>, vector<12x64xbf16>, vector<64x64xf32> -> vector<64x64xf32>
    %16 = arith.addf %12, %15 : vector<64x64xf32>
    %c2 = arith.constant 2 : index
    %c0_20 = arith.constant 0 : index
    %c0_21 = arith.constant 0 : index
    %17 = vector.load %arg4[%c2, %c0_20, %c0_21] : memref<4x12x64xbf16, #tpu.memory_space<vmem>>, vector<1x12x64xbf16>
    %18 = vector.shape_cast %17 : vector<1x12x64xbf16> to vector<12x64xbf16>
    %cst_22 = arith.constant dense<0.000000e+00> : vector<64x64xf32>
    %19 = tpu.matmul %8, %18, %cst_22 {dimension_numbers = #tpu.dot_dimension_numbers<[1], [0], [0], [1], [0, 0, 1, 1], [], []>} : vector<64x12xbf16>, vector<12x64xbf16>, vector<64x64xf32> -> vector<64x64xf32>
    %20 = arith.addf %16, %19 : vector<64x64xf32>
    %c3 = arith.constant 3 : index
    %c0_23 = arith.constant 0 : index
    %c0_24 = arith.constant 0 : index
    %21 = vector.load %arg4[%c3, %c0_23, %c0_24] : memref<4x12x64xbf16, #tpu.memory_space<vmem>>, vector<1x12x64xbf16>
    %22 = vector.shape_cast %21 : vector<1x12x64xbf16> to vector<12x64xbf16>
    %cst_25 = arith.constant dense<0.000000e+00> : vector<64x64xf32>
    %23 = tpu.matmul %9, %22, %cst_25 {dimension_numbers = #tpu.dot_dimension_numbers<[1], [0], [0], [1], [0, 0, 1, 1], [], []>} : vector<64x12xbf16>, vector<12x64xbf16>, vector<64x64xf32> -> vector<64x64xf32>
    %24 = arith.addf %20, %23 : vector<64x64xf32>
    %c0_26 = arith.constant 0 : index
    %c0_27 = arith.constant 0 : index
    %25 = vector.load %arg5[%c0_26, %c0_27] : memref<1x64xf32, #tpu.memory_space<vmem>>, vector<1x64xf32>
    %26 = vector.broadcast %25 : vector<1x64xf32> to vector<64x64xf32>
    %27 = arith.addf %24, %26 : vector<64x64xf32>
    %cst_28 = arith.constant 0.000000e+00 : f32
    %28 = vector.broadcast %cst_28 : f32 to vector<64x64xf32>
    %29 = arith.maximumf %27, %28 : vector<64x64xf32>
    %30 = arith.truncf %29 : vector<64x64xf32> to vector<64x64xbf16>
    %c0_29 = arith.constant 0 : index
    %c0_30 = arith.constant 0 : index
    %31 = vector.load %arg6[%c0_29, %c0_30] : memref<64x64xbf16, #tpu.memory_space<vmem>>, vector<64x64xbf16>
    tpu.vector_store %arg6[%c0_29, %c0_30], %30 {strides = array<i32>} : memref<64x64xbf16, #tpu.memory_space<vmem>>, vector<64x64xbf16>,
    return
  }
  func.func @transform_0(%arg0: i32, %arg1: i32) -> (i32, i32) {
    %c3_i32 = arith.constant 3 : i32
    %0 = arith.muli %arg0, %c3_i32 : i32
    %1 = arith.addi %0, %arg1 : i32
    %c0_i32 = arith.constant 0 : i32
    %c0_i32_0 = arith.constant 0 : i32
    return %1, %c0_i32 : i32, i32
  }
  func.func @transform_1(%arg0: i32, %arg1: i32) -> (i32, i32) {
    %c3_i32 = arith.constant 3 : i32
    %0 = arith.muli %arg0, %c3_i32 : i32
    %c4_i32 = arith.constant 4 : i32
    %1 = arith.muli %0, %c4_i32 : i32
    %c1_i32 = arith.constant 1 : i32
    %2 = arith.addi %arg1, %c1_i32 : i32
    %c4_i32_0 = arith.constant 4 : i32
    %3 = arith.muli %2, %c4_i32_0 : i32
    %4 = arith.addi %1, %3 : i32
    %c0_i32 = arith.constant 0 : i32
    %c0_i32_1 = arith.constant 0 : i32
    return %4, %c0_i32 : i32, i32
  }
  func.func @transform_2(%arg0: i32, %arg1: i32) -> (i32, i32, i32) {
    %c0_i32 = arith.constant 0 : i32
    %c0_i32_0 = arith.constant 0 : i32
    %c0_i32_1 = arith.constant 0 : i32
    %c0_i32_2 = arith.constant 0 : i32
    return %c0_i32, %c0_i32_0, %c0_i32_1 : i32, i32, i32
  }
  func.func @transform_3(%arg0: i32, %arg1: i32) -> (i32, i32) {
    %c0_i32 = arith.constant 0 : i32
    %c0_i32_0 = arith.constant 0 : i32
    %c0_i32_1 = arith.constant 0 : i32
    return %c0_i32, %c0_i32_0 : i32, i32
  }
  func.func @transform_4(%arg0: i32, %arg1: i32) -> (i32, i32) {
    %c2_i32 = arith.constant 2 : i32
    %0 = arith.muli %arg0, %c2_i32 : i32
    %1 = arith.addi %0, %arg1 : i32
    %c0_i32 = arith.constant 0 : i32
    %c0_i32_0 = arith.constant 0 : i32
    return %1, %c0_i32 : i32, i32
  }
}

module attributes {stable_mosaic.version = 11 : i64} {
  func.func @_convblock_kernel(%arg0: i32, %arg1: i32, %arg2: memref<16x256xbf16, #tpu.memory_space<vmem>>, %arg3: memref<8x256xbf16, #tpu.memory_space<vmem>>, %arg4: memref<4x256x128xbf16, #tpu.memory_space<vmem>>, %arg5: memref<1x128xf32, #tpu.memory_space<vmem>>, %arg6: memref<16x128xbf16, #tpu.memory_space<vmem>>, %arg7: memref<32x256xbf16, #tpu.memory_space<vmem>>) attributes {dimension_semantics = [#tpu.dimension_semantics<parallel>, #tpu.dimension_semantics<parallel>], iteration_bounds = array<i64: 2, 2>, scalar_prefetch = 0 : i64, scratch_operands = 1 : i64, tpu.core_type = #tpu.core_type<tc>, window_params = [{transform_indices = @transform_0, window_bounds = array<i64: 16, 256>}, {transform_indices = @transform_1, window_bounds = array<i64: 8, 256>}, {pipeline_mode = #tpu.pipeline_mode<synchronous>, transform_indices = @transform_2, window_bounds = array<i64: 4, 256, 128>}, {pipeline_mode = #tpu.pipeline_mode<synchronous>, transform_indices = @transform_3, window_bounds = array<i64: 1, 128>}, {transform_indices = @transform_4, window_bounds = array<i64: 16, 128>}]} {
    %c0 = arith.constant 0 : index
    %c0_0 = arith.constant 0 : index
    %0 = vector.load %arg2[%c0, %c0_0] : memref<16x256xbf16, #tpu.memory_space<vmem>>, vector<16x256xbf16>
    %c0_1 = arith.constant 0 : index
    %c0_2 = arith.constant 0 : index
    %1 = vector.load %arg7[%c0_1, %c0_2] : memref<32x256xbf16, #tpu.memory_space<vmem>>, vector<16x256xbf16>
    tpu.vector_store %arg7[%c0_1, %c0_2], %0 {strides = array<i32>} : memref<32x256xbf16, #tpu.memory_space<vmem>>, vector<16x256xbf16>,
    %c0_3 = arith.constant 0 : index
    %c0_4 = arith.constant 0 : index
    %2 = vector.load %arg3[%c0_3, %c0_4] : memref<8x256xbf16, #tpu.memory_space<vmem>>, vector<8x256xbf16>
    %c16 = arith.constant 16 : index
    %c0_5 = arith.constant 0 : index
    %3 = vector.load %arg7[%c16, %c0_5] : memref<32x256xbf16, #tpu.memory_space<vmem>>, vector<8x256xbf16>
    tpu.vector_store %arg7[%c16, %c0_5], %2 {strides = array<i32>} : memref<32x256xbf16, #tpu.memory_space<vmem>>, vector<8x256xbf16>,
    %cst = arith.constant 0.000000e+00 : bf16
    %4 = vector.broadcast %cst : bf16 to vector<8x256xbf16>
    %c24 = arith.constant 24 : index
    %c0_6 = arith.constant 0 : index
    %5 = vector.load %arg7[%c24, %c0_6] : memref<32x256xbf16, #tpu.memory_space<vmem>>, vector<8x256xbf16>
    tpu.vector_store %arg7[%c24, %c0_6], %4 {strides = array<i32>} : memref<32x256xbf16, #tpu.memory_space<vmem>>, vector<8x256xbf16>,
    %c0_7 = arith.constant 0 : index
    %c0_8 = arith.constant 0 : index
    %6 = vector.load %arg7[%c0_7, %c0_8] : memref<32x256xbf16, #tpu.memory_space<vmem>>, vector<16x256xbf16>
    %c1 = arith.constant 1 : index
    %c0_9 = arith.constant 0 : index
    %7 = vector.load %arg7[%c1, %c0_9] : memref<32x256xbf16, #tpu.memory_space<vmem>>, vector<16x256xbf16>
    %c8 = arith.constant 8 : index
    %c0_10 = arith.constant 0 : index
    %8 = vector.load %arg7[%c8, %c0_10] : memref<32x256xbf16, #tpu.memory_space<vmem>>, vector<16x256xbf16>
    %c9 = arith.constant 9 : index
    %c0_11 = arith.constant 0 : index
    %9 = vector.load %arg7[%c9, %c0_11] : memref<32x256xbf16, #tpu.memory_space<vmem>>, vector<16x256xbf16>
    %c0_12 = arith.constant 0 : index
    %c0_13 = arith.constant 0 : index
    %c0_14 = arith.constant 0 : index
    %10 = vector.load %arg4[%c0_12, %c0_13, %c0_14] : memref<4x256x128xbf16, #tpu.memory_space<vmem>>, vector<1x256x128xbf16>
    %11 = vector.shape_cast %10 : vector<1x256x128xbf16> to vector<256x128xbf16>
    %cst_15 = arith.constant dense<0.000000e+00> : vector<16x128xf32>
    %12 = tpu.matmul %6, %11, %cst_15 {dimension_numbers = #tpu.dot_dimension_numbers<[1], [0], [0], [1], [0, 0, 1, 1], [], []>} : vector<16x256xbf16>, vector<256x128xbf16>, vector<16x128xf32> -> vector<16x128xf32>
    %c1_16 = arith.constant 1 : index
    %c0_17 = arith.constant 0 : index
    %c0_18 = arith.constant 0 : index
    %13 = vector.load %arg4[%c1_16, %c0_17, %c0_18] : memref<4x256x128xbf16, #tpu.memory_space<vmem>>, vector<1x256x128xbf16>
    %14 = vector.shape_cast %13 : vector<1x256x128xbf16> to vector<256x128xbf16>
    %cst_19 = arith.constant dense<0.000000e+00> : vector<16x128xf32>
    %15 = tpu.matmul %7, %14, %cst_19 {dimension_numbers = #tpu.dot_dimension_numbers<[1], [0], [0], [1], [0, 0, 1, 1], [], []>} : vector<16x256xbf16>, vector<256x128xbf16>, vector<16x128xf32> -> vector<16x128xf32>
    %16 = arith.addf %12, %15 : vector<16x128xf32>
    %c2 = arith.constant 2 : index
    %c0_20 = arith.constant 0 : index
    %c0_21 = arith.constant 0 : index
    %17 = vector.load %arg4[%c2, %c0_20, %c0_21] : memref<4x256x128xbf16, #tpu.memory_space<vmem>>, vector<1x256x128xbf16>
    %18 = vector.shape_cast %17 : vector<1x256x128xbf16> to vector<256x128xbf16>
    %cst_22 = arith.constant dense<0.000000e+00> : vector<16x128xf32>
    %19 = tpu.matmul %8, %18, %cst_22 {dimension_numbers = #tpu.dot_dimension_numbers<[1], [0], [0], [1], [0, 0, 1, 1], [], []>} : vector<16x256xbf16>, vector<256x128xbf16>, vector<16x128xf32> -> vector<16x128xf32>
    %20 = arith.addf %16, %19 : vector<16x128xf32>
    %c3 = arith.constant 3 : index
    %c0_23 = arith.constant 0 : index
    %c0_24 = arith.constant 0 : index
    %21 = vector.load %arg4[%c3, %c0_23, %c0_24] : memref<4x256x128xbf16, #tpu.memory_space<vmem>>, vector<1x256x128xbf16>
    %22 = vector.shape_cast %21 : vector<1x256x128xbf16> to vector<256x128xbf16>
    %cst_25 = arith.constant dense<0.000000e+00> : vector<16x128xf32>
    %23 = tpu.matmul %9, %22, %cst_25 {dimension_numbers = #tpu.dot_dimension_numbers<[1], [0], [0], [1], [0, 0, 1, 1], [], []>} : vector<16x256xbf16>, vector<256x128xbf16>, vector<16x128xf32> -> vector<16x128xf32>
    %24 = arith.addf %20, %23 : vector<16x128xf32>
    %c0_26 = arith.constant 0 : index
    %c0_27 = arith.constant 0 : index
    %25 = vector.load %arg5[%c0_26, %c0_27] : memref<1x128xf32, #tpu.memory_space<vmem>>, vector<1x128xf32>
    %26 = vector.broadcast %25 : vector<1x128xf32> to vector<16x128xf32>
    %27 = arith.addf %24, %26 : vector<16x128xf32>
    %cst_28 = arith.constant 0.000000e+00 : f32
    %28 = vector.broadcast %cst_28 : f32 to vector<16x128xf32>
    %29 = arith.maximumf %27, %28 : vector<16x128xf32>
    %30 = arith.truncf %29 : vector<16x128xf32> to vector<16x128xbf16>
    %c0_29 = arith.constant 0 : index
    %c0_30 = arith.constant 0 : index
    %31 = vector.load %arg6[%c0_29, %c0_30] : memref<16x128xbf16, #tpu.memory_space<vmem>>, vector<16x128xbf16>
    tpu.vector_store %arg6[%c0_29, %c0_30], %30 {strides = array<i32>} : memref<16x128xbf16, #tpu.memory_space<vmem>>, vector<16x128xbf16>,
    return
  }
  func.func @transform_0(%arg0: i32, %arg1: i32) -> (i32, i32) {
    %c3_i32 = arith.constant 3 : i32
    %0 = arith.muli %arg0, %c3_i32 : i32
    %1 = arith.addi %0, %arg1 : i32
    %c0_i32 = arith.constant 0 : i32
    %c0_i32_0 = arith.constant 0 : i32
    return %1, %c0_i32 : i32, i32
  }
  func.func @transform_1(%arg0: i32, %arg1: i32) -> (i32, i32) {
    %c3_i32 = arith.constant 3 : i32
    %0 = arith.muli %arg0, %c3_i32 : i32
    %c2_i32 = arith.constant 2 : i32
    %1 = arith.muli %0, %c2_i32 : i32
    %c1_i32 = arith.constant 1 : i32
    %2 = arith.addi %arg1, %c1_i32 : i32
    %c2_i32_0 = arith.constant 2 : i32
    %3 = arith.muli %2, %c2_i32_0 : i32
    %4 = arith.addi %1, %3 : i32
    %c0_i32 = arith.constant 0 : i32
    %c0_i32_1 = arith.constant 0 : i32
    return %4, %c0_i32 : i32, i32
  }
  func.func @transform_2(%arg0: i32, %arg1: i32) -> (i32, i32, i32) {
    %c0_i32 = arith.constant 0 : i32
    %c0_i32_0 = arith.constant 0 : i32
    %c0_i32_1 = arith.constant 0 : i32
    %c0_i32_2 = arith.constant 0 : i32
    return %c0_i32, %c0_i32_0, %c0_i32_1 : i32, i32, i32
  }
  func.func @transform_3(%arg0: i32, %arg1: i32) -> (i32, i32) {
    %c0_i32 = arith.constant 0 : i32
    %c0_i32_0 = arith.constant 0 : i32
    %c0_i32_1 = arith.constant 0 : i32
    return %c0_i32, %c0_i32_0 : i32, i32
  }
  func.func @transform_4(%arg0: i32, %arg1: i32) -> (i32, i32) {
    %c2_i32 = arith.constant 2 : i32
    %0 = arith.muli %arg0, %c2_i32 : i32
    %1 = arith.addi %0, %arg1 : i32
    %c0_i32 = arith.constant 0 : i32
    %c0_i32_0 = arith.constant 0 : i32
    return %1, %c0_i32 : i32, i32
  }
}

module attributes {stable_mosaic.version = 11 : i64} {
  func.func @_convblock_kernel(%arg0: i32, %arg1: i32, %arg2: memref<8x512xbf16, #tpu.memory_space<vmem>>, %arg3: memref<8x512xbf16, #tpu.memory_space<vmem>>, %arg4: memref<4x512x256xbf16, #tpu.memory_space<vmem>>, %arg5: memref<1x256xf32, #tpu.memory_space<vmem>>, %arg6: memref<8x256xbf16, #tpu.memory_space<vmem>>, %arg7: memref<24x512xbf16, #tpu.memory_space<vmem>>) attributes {dimension_semantics = [#tpu.dimension_semantics<parallel>, #tpu.dimension_semantics<parallel>], iteration_bounds = array<i64: 2, 2>, scalar_prefetch = 0 : i64, scratch_operands = 1 : i64, tpu.core_type = #tpu.core_type<tc>, window_params = [{transform_indices = @transform_0, window_bounds = array<i64: 8, 512>}, {transform_indices = @transform_1, window_bounds = array<i64: 8, 512>}, {pipeline_mode = #tpu.pipeline_mode<synchronous>, transform_indices = @transform_2, window_bounds = array<i64: 4, 512, 256>}, {pipeline_mode = #tpu.pipeline_mode<synchronous>, transform_indices = @transform_3, window_bounds = array<i64: 1, 256>}, {transform_indices = @transform_4, window_bounds = array<i64: 8, 256>}]} {
    %c0 = arith.constant 0 : index
    %c0_0 = arith.constant 0 : index
    %0 = vector.load %arg2[%c0, %c0_0] : memref<8x512xbf16, #tpu.memory_space<vmem>>, vector<8x512xbf16>
    %c0_1 = arith.constant 0 : index
    %c0_2 = arith.constant 0 : index
    %1 = vector.load %arg7[%c0_1, %c0_2] : memref<24x512xbf16, #tpu.memory_space<vmem>>, vector<8x512xbf16>
    tpu.vector_store %arg7[%c0_1, %c0_2], %0 {strides = array<i32>} : memref<24x512xbf16, #tpu.memory_space<vmem>>, vector<8x512xbf16>,
    %c0_3 = arith.constant 0 : index
    %c0_4 = arith.constant 0 : index
    %2 = vector.load %arg3[%c0_3, %c0_4] : memref<8x512xbf16, #tpu.memory_space<vmem>>, vector<8x512xbf16>
    %c8 = arith.constant 8 : index
    %c0_5 = arith.constant 0 : index
    %3 = vector.load %arg7[%c8, %c0_5] : memref<24x512xbf16, #tpu.memory_space<vmem>>, vector<8x512xbf16>
    tpu.vector_store %arg7[%c8, %c0_5], %2 {strides = array<i32>} : memref<24x512xbf16, #tpu.memory_space<vmem>>, vector<8x512xbf16>,
    %cst = arith.constant 0.000000e+00 : bf16
    %4 = vector.broadcast %cst : bf16 to vector<8x512xbf16>
    %c16 = arith.constant 16 : index
    %c0_6 = arith.constant 0 : index
    %5 = vector.load %arg7[%c16, %c0_6] : memref<24x512xbf16, #tpu.memory_space<vmem>>, vector<8x512xbf16>
    tpu.vector_store %arg7[%c16, %c0_6], %4 {strides = array<i32>} : memref<24x512xbf16, #tpu.memory_space<vmem>>, vector<8x512xbf16>,
    %c0_7 = arith.constant 0 : index
    %c0_8 = arith.constant 0 : index
    %6 = vector.load %arg7[%c0_7, %c0_8] : memref<24x512xbf16, #tpu.memory_space<vmem>>, vector<8x512xbf16>
    %c1 = arith.constant 1 : index
    %c0_9 = arith.constant 0 : index
    %7 = vector.load %arg7[%c1, %c0_9] : memref<24x512xbf16, #tpu.memory_space<vmem>>, vector<8x512xbf16>
    %c8_10 = arith.constant 8 : index
    %c0_11 = arith.constant 0 : index
    %8 = vector.load %arg7[%c8_10, %c0_11] : memref<24x512xbf16, #tpu.memory_space<vmem>>, vector<8x512xbf16>
    %c9 = arith.constant 9 : index
    %c0_12 = arith.constant 0 : index
    %9 = vector.load %arg7[%c9, %c0_12] : memref<24x512xbf16, #tpu.memory_space<vmem>>, vector<8x512xbf16>
    %c0_13 = arith.constant 0 : index
    %c0_14 = arith.constant 0 : index
    %c0_15 = arith.constant 0 : index
    %10 = vector.load %arg4[%c0_13, %c0_14, %c0_15] : memref<4x512x256xbf16, #tpu.memory_space<vmem>>, vector<1x512x256xbf16>
    %11 = vector.shape_cast %10 : vector<1x512x256xbf16> to vector<512x256xbf16>
    %cst_16 = arith.constant dense<0.000000e+00> : vector<8x256xf32>
    %12 = tpu.matmul %6, %11, %cst_16 {dimension_numbers = #tpu.dot_dimension_numbers<[1], [0], [0], [1], [0, 0, 1, 1], [], []>} : vector<8x512xbf16>, vector<512x256xbf16>, vector<8x256xf32> -> vector<8x256xf32>
    %c1_17 = arith.constant 1 : index
    %c0_18 = arith.constant 0 : index
    %c0_19 = arith.constant 0 : index
    %13 = vector.load %arg4[%c1_17, %c0_18, %c0_19] : memref<4x512x256xbf16, #tpu.memory_space<vmem>>, vector<1x512x256xbf16>
    %14 = vector.shape_cast %13 : vector<1x512x256xbf16> to vector<512x256xbf16>
    %cst_20 = arith.constant dense<0.000000e+00> : vector<8x256xf32>
    %15 = tpu.matmul %7, %14, %cst_20 {dimension_numbers = #tpu.dot_dimension_numbers<[1], [0], [0], [1], [0, 0, 1, 1], [], []>} : vector<8x512xbf16>, vector<512x256xbf16>, vector<8x256xf32> -> vector<8x256xf32>
    %16 = arith.addf %12, %15 : vector<8x256xf32>
    %c2 = arith.constant 2 : index
    %c0_21 = arith.constant 0 : index
    %c0_22 = arith.constant 0 : index
    %17 = vector.load %arg4[%c2, %c0_21, %c0_22] : memref<4x512x256xbf16, #tpu.memory_space<vmem>>, vector<1x512x256xbf16>
    %18 = vector.shape_cast %17 : vector<1x512x256xbf16> to vector<512x256xbf16>
    %cst_23 = arith.constant dense<0.000000e+00> : vector<8x256xf32>
    %19 = tpu.matmul %8, %18, %cst_23 {dimension_numbers = #tpu.dot_dimension_numbers<[1], [0], [0], [1], [0, 0, 1, 1], [], []>} : vector<8x512xbf16>, vector<512x256xbf16>, vector<8x256xf32> -> vector<8x256xf32>
    %20 = arith.addf %16, %19 : vector<8x256xf32>
    %c3 = arith.constant 3 : index
    %c0_24 = arith.constant 0 : index
    %c0_25 = arith.constant 0 : index
    %21 = vector.load %arg4[%c3, %c0_24, %c0_25] : memref<4x512x256xbf16, #tpu.memory_space<vmem>>, vector<1x512x256xbf16>
    %22 = vector.shape_cast %21 : vector<1x512x256xbf16> to vector<512x256xbf16>
    %cst_26 = arith.constant dense<0.000000e+00> : vector<8x256xf32>
    %23 = tpu.matmul %9, %22, %cst_26 {dimension_numbers = #tpu.dot_dimension_numbers<[1], [0], [0], [1], [0, 0, 1, 1], [], []>} : vector<8x512xbf16>, vector<512x256xbf16>, vector<8x256xf32> -> vector<8x256xf32>
    %24 = arith.addf %20, %23 : vector<8x256xf32>
    %c0_27 = arith.constant 0 : index
    %c0_28 = arith.constant 0 : index
    %25 = vector.load %arg5[%c0_27, %c0_28] : memref<1x256xf32, #tpu.memory_space<vmem>>, vector<1x256xf32>
    %26 = vector.broadcast %25 : vector<1x256xf32> to vector<8x256xf32>
    %27 = arith.addf %24, %26 : vector<8x256xf32>
    %cst_29 = arith.constant 0.000000e+00 : f32
    %28 = vector.broadcast %cst_29 : f32 to vector<8x256xf32>
    %29 = arith.maximumf %27, %28 : vector<8x256xf32>
    %30 = arith.truncf %29 : vector<8x256xf32> to vector<8x256xbf16>
    %c0_30 = arith.constant 0 : index
    %c0_31 = arith.constant 0 : index
    %31 = vector.load %arg6[%c0_30, %c0_31] : memref<8x256xbf16, #tpu.memory_space<vmem>>, vector<8x256xbf16>
    tpu.vector_store %arg6[%c0_30, %c0_31], %30 {strides = array<i32>} : memref<8x256xbf16, #tpu.memory_space<vmem>>, vector<8x256xbf16>,
    return
  }
  func.func @transform_0(%arg0: i32, %arg1: i32) -> (i32, i32) {
    %c3_i32 = arith.constant 3 : i32
    %0 = arith.muli %arg0, %c3_i32 : i32
    %1 = arith.addi %0, %arg1 : i32
    %c0_i32 = arith.constant 0 : i32
    %c0_i32_0 = arith.constant 0 : i32
    return %1, %c0_i32 : i32, i32
  }
  func.func @transform_1(%arg0: i32, %arg1: i32) -> (i32, i32) {
    %c3_i32 = arith.constant 3 : i32
    %0 = arith.muli %arg0, %c3_i32 : i32
    %c1_i32 = arith.constant 1 : i32
    %1 = arith.muli %0, %c1_i32 : i32
    %c1_i32_0 = arith.constant 1 : i32
    %2 = arith.addi %arg1, %c1_i32_0 : i32
    %c1_i32_1 = arith.constant 1 : i32
    %3 = arith.muli %2, %c1_i32_1 : i32
    %4 = arith.addi %1, %3 : i32
    %c0_i32 = arith.constant 0 : i32
    %c0_i32_2 = arith.constant 0 : i32
    return %4, %c0_i32 : i32, i32
  }
  func.func @transform_2(%arg0: i32, %arg1: i32) -> (i32, i32, i32) {
    %c0_i32 = arith.constant 0 : i32
    %c0_i32_0 = arith.constant 0 : i32
    %c0_i32_1 = arith.constant 0 : i32
    %c0_i32_2 = arith.constant 0 : i32
    return %c0_i32, %c0_i32_0, %c0_i32_1 : i32, i32, i32
  }
  func.func @transform_3(%arg0: i32, %arg1: i32) -> (i32, i32) {
    %c0_i32 = arith.constant 0 : i32
    %c0_i32_0 = arith.constant 0 : i32
    %c0_i32_1 = arith.constant 0 : i32
    return %c0_i32, %c0_i32_0 : i32, i32
  }
  func.func @transform_4(%arg0: i32, %arg1: i32) -> (i32, i32) {
    %c2_i32 = arith.constant 2 : i32
    %0 = arith.muli %arg0, %c2_i32 : i32
    %1 = arith.addi %0, %arg1 : i32
    %c0_i32 = arith.constant 0 : i32
    %c0_i32_0 = arith.constant 0 : i32
    return %1, %c0_i32 : i32, i32
  }
}

</mosaic_0001>

<bundles_post_ra>
// kernel: spatial_path.3
= control target key start
LH: loop header
LB: loop body
LE: loop exit
PB: predicated region body
PF: predicated region fallthrough
CT: control target
= control target key end

     0   :  { %s932_s15 = smov 0   ;;  %s934_s16 = smov 0   ;;  %s1088_s0 = inlined_call_operand.vmem [shape: bf16[384,12], index: 0, kind: input, shape index: {}, may-alias: {0,1}]   ;;  %s1089_s1 = inlined_call_operand.vmem [shape: bf16[384,12], index: 1, kind: input, shape index: {}, may-alias: {0,1}]   ;;  %s1090_s2 = inlined_call_operand.vmem [shape: bf16[4,12,64], index: 2, kind: input, shape index: {}]   ;;  %s1091_s3 = inlined_call_operand.vmem [shape: f32[1,64], index: 3, kind: input, shape index: {}]   ;;  %s1092_s4 = inlined_call_operand.vmem [shape: bf16[256,64], index: 4, kind: output, shape index: {}]  }
   0x1   :  { %s936_s17 = smov 0   ;;  %s938_s18 = smov 0  }
   0x2   :  { %s940_s19 = smov 0  }
   0x3 LB: > { %s23_s20 = sadd.s32 1, %s896_s17  ;;  %s26_s21 = sadd.s32 1, %s900_s18  ;;  %s904_s19 = sphi %s940_s19, %s14_s19   ;;  %s900_s18 = sphi %s938_s18, %s1096_s18   ;;  %s896_s17 = sphi %s936_s17, %s1095_s17   ;;  %s892_s16 = sphi %s934_s16, %s1094_s16   ;;  %s888_s15 = sphi %s932_s15, %s1093_s15  }
   0x4   : > { %p24_p0 = scmp.ge.s32.totalorder %s23_s20, 2  ;;  %p740_p1 = scmp.ge.s32.totalorder %s904_s19, 1 }
   0x5   : > { %p214_p2 = scmp.lt.s32.totalorder %s904_s19, 5 }
   0x6   : > { %s1098_s20 = smov (%p24_p0, %s23_s20), 0  ;;  %s1100_s21 = smov (!%p24_p0, %s26_s21), %s900_s18 }
   0x7   : > { %p215_p3 = pnand %p740_p1, %p214_p2  ;;  %p28_p4 = scmp.ge.s32.totalorder %s1100_s21, 2 }
   0x8   : > { %s253_s26 = smul.u32 (!%p215_p3), 3, %s892_s16  ;;  %s813_s23 = sshll.u32 (!%p215_p3), %s888_s15, 2 }
   0x9   : > { %s1102_s21 = smov (%p28_p4, %s1100_s21), 0  ;;  %218 = sbr.rel (%p215_p3) target bundleno = 235 (0xeb), region = 36 }
   0xa   : > { %s254_s5 = sadd.s32 (!%p215_p3), %s888_s15, %s253_s26  ;;  %s263_s22 = smul.u32 (!%p215_p3), 12, %s892_s16 }
   0xb   : > { %s741_s12 = sshll.u32 (!%p215_p3), %s254_s5, 3  ;;  %s814_s24 = sadd.s32 (!%p215_p3), 4, %s813_s23 }
   0xc   : > { %p256_p5 = scmp.lt.s32.totalorder (!%p215_p3), %s741_s12, 47  ;;  %s266_s26 = sadd.s32 (!%p215_p3), %s814_s24, %s263_s22 }
   0xd   : > { %s744_s30 = sshll.u32 (!%p215_p3), %s266_s26, 1  ;;  %s746_s9 = sshll.u32 (!%p215_p3), %s892_s16, 1 }
   0xe   : > { %vm406_vm0 = vcmask 1045504   ;;  %v791_v0 = vld [vmem:[%s1090_s2 + $0x10] sm:$0xf]  ;;  %v822_v1 = vld [vmem:[%s1090_s2 + $0x10] sm:$0x30]  ;;  %s1104_s12 = smov (!%p256_p5, %s741_s12), 47  ;;  %s278_s10 = sadd.s32 %s888_s15, %s746_s9 }
   0xf   : > { %v792_v2 = vor.u32 %v822_v1, %v791_v0  ;;  %v777_v3 = vld [vmem:[%s1090_s2] sm:$0xf]  ;;  %v820_v4 = vld [vmem:[%s1090_s2] sm:$0x30]  ;;  %v769_v6 = vld [vmem:[%s1090_s2 + $0x8] sm:$0xf] }
  0x10   : > { %v778_v5 = vor.u32 %v820_v4, %v777_v3  ;;  %v821_v7 = vld [vmem:[%s1090_s2 + $0x8] sm:$0x30]  ;;  %v801_v8 = vld [vmem:[%s1090_s2 + $0x18] sm:$0xf]  ;;  %v823_v11 = vld [vmem:[%s1090_s2 + $0x18] sm:$0x30] }
  0x11   : > { %v501_v9 = vsel %vm406_vm0, %v792_v2, 0  ;;  %v770_v10 = vor.u32 %v821_v7, %v769_v6  ;;  %v802_v13 = vor.u32 %v823_v11, %v801_v8  ;;  %s742_s25 = sshll.u32 %s1104_s12, 2  ;;  %vm296_vm1 = vcmask 93184   ;;  %p268_p6 = scmp.lt.s32.totalorder %s744_s30, 47 }
  0x12   : > { %510 = vmatpush.bf16.msra.mxu2 %v501_v9  ;;  %v453_v12 = vsel %vm406_vm0, %v778_v5, 0  ;;  %s259_s29 = scalar_lea.vmem %s1088_s0, %s742_s25  ;;  %vm393_vm2 = vcmask 97280   ;;  %vm351_vm3 = vsmask.f32 7424  ;;  %v906_v41 = vmov 0   ;;  %s747_s11 = sshll.u32 %s278_s10, 3 }
  0x13   : > { %462 = vmatpush.bf16.msra.mxu1 %v453_v12  ;;  %v408_v14 = vsel %vm406_vm0, %v770_v10, 0  ;;  %v570_v15 = vsel %vm406_vm0, %v802_v13, 0  ;;  %v290_v16 = vld [vmem:[%s259_s29 + $0x8] sm:$0xf]  ;;  %v291_v17 = vld [vmem:[%s259_s29 + $0xc] sm:$0xf] }
  0x14   : > { %417 = vmatpush.bf16.msra.mxu0 %v408_v14  ;;  %579 = vmatpush.bf16.msra.mxu3 %v570_v15  ;;  %v288_v18 = vld [vmem:[%s259_s29] sm:$0xf]  ;;  %299 = vst.msk [vmem:[#allocation2 + $0x8] sm:$0xf] %vm296_vm1, %v290_v16  ;;  %v289_v19 = vld [vmem:[%s259_s29 + $0x4] sm:$0xf] }
  0x15   : > { %300 = vst.msk [vmem:[#allocation2 + $0xc] sm:$0xf] %vm296_vm1, %v291_v17  ;;  %v292_v20 = vld [vmem:[%s259_s29 + $0x10] sm:$0xf]  ;;  %v293_v21 = vld [vmem:[%s259_s29 + $0x14] sm:$0xf] }
  0x16   : > { %297 = vst.msk [vmem:[#allocation2] sm:$0xf] %vm296_vm1, %v288_v18  ;;  %v294_v22 = vld [vmem:[%s259_s29 + $0x18] sm:$0xf]  ;;  %v295_v23 = vld [vmem:[%s259_s29 + $0x1c] sm:$0xf] }
  0x17   : > { %298 = vst.msk [vmem:[#allocation2 + $0x4] sm:$0xf] %vm296_vm1, %v289_v19  ;;  %s1106_s30 = smov (!%p268_p6, %s744_s30), 47  ;;  %p280_p7 = scmp.lt.s32.totalorder %s747_s11, 31  ;;  %v1042_v10 = vld [vmem:[%s1091_s3] ss:$0 sm:$0xff] }
  0x18   : > { %301 = vst.msk [vmem:[#allocation2 + $0x10] sm:$0xf] %vm296_vm1, %v292_v20  ;;  %s745_s5 = sshll.u32 %s1106_s30, 2  ;;  %vm637_vm4 = vcmask 519168  }
  0x19   : > { %302 = vst.msk [vmem:[#allocation2 + $0x14] sm:$0xf] %vm296_vm1, %v293_v21  ;;  %s271_s8 = scalar_lea.vmem %s1089_s1, %s745_s5  ;;  %s1108_s11 = smov (!%p280_p7, %s747_s11), 31 }
  0x1a   : > { %303 = vst.msk [vmem:[#allocation2 + $0x18] sm:$0xf] %vm296_vm1, %v294_v22  ;;  %v305_v25 = vld [vmem:[%s271_s8] sm:$0xf]  ;;  %v306_v26 = vld [vmem:[%s271_s8 + $0x4] sm:$0xf] }
  0x1b   : > { %304 = vst.msk [vmem:[#allocation2 + $0x1c] sm:$0xf] %vm296_vm1, %v295_v23  ;;  %s748_s16 = sshll.u32 %s1108_s11, 2 }
  0x1c   : > { %v816_v24 = vld [vmem:[#allocation2 + $0x8] sm:$0xff]  ;;  %307 = vst.msk [vmem:[#allocation2 + $0x20] sm:$0xf] %vm296_vm1, %v305_v25  ;;  %s1048_s22 = scalar_lea.vmem %s1092_s4, %s748_s16 }
  0x1d   : > { %793 = vmatmul.msk.bf16.vlgmr.msra.gmra.mxu2 %vm393_vm2, %v816_v24  ;;  %v360_v28 = vshll.u32 %v816_v24, 16  ;;  %v364_v29 = vshrl.u32 %v816_v24, 16  ;;  %308 = vst.msk [vmem:[#allocation2 + $0x24] sm:$0xf] %vm296_vm1, %v306_v26 }
  0x1e   : > { %v815_v27 = vld [vmem:[#allocation2] sm:$0xff]  ;;  %309 = vst.msk [vmem:[#allocation2 + $0x28] sm:$0xf] %vm296_vm1, %v906_v41 }
  0x1f   : > { %v355_v30 = vshll.u32 %v815_v27, 16  ;;  %779 = vmatmul.msk.bf16.vlgmr.msra.gmra.mxu1 %vm393_vm2, %v815_v27  ;;  %v353_v31 = vshrl.u32 %v815_v27, 16  ;;  %v362_v32 = vrot.slane %v360_v28, 1 }
  0x20   : > { %v817_v33 = vld [vmem:[#allocation2 + $0x10] sm:$0xff] }
  0x21   : > { %v357_v34 = vrot.slane %v355_v30, 1  ;;  %v366_v35 = vor.u32 %v364_v29, %v362_v32  ;;  %v368_v36 = vshll.u32 %v817_v33, 16  ;;  %v372_v43 = vshrl.u32 %v817_v33, 16 }
  0x22   : > { %v818_v42 = vld [vmem:[#allocation2 + $0x18] sm:$0xff] }
  0x23   : > { %v358_v37 = vor.u32 %v357_v34, %v353_v31  ;;  %v370_v38 = vrot.slane %v368_v36, 1  ;;  %v376_v44 = vshll.u32 %v818_v42, 16  ;;  %v380_v49 = vshrl.u32 %v818_v42, 16  ;;  %v319_v53 = vld [vmem:[#allocation2 + $0x20] sm:$0x1] }
  0x24   : > { %v819_v48 = vld [vmem:[#allocation2 + $0x20] sm:$0xff]  ;;  %v345_v56 = vunpack.c.l.b16 %v319_v53 }
  0x25   : > { %v363_v39 = vsel %vm351_vm3, %v358_v37, %v362_v32  ;;  %v371_v40 = vsel %vm351_vm3, %v366_v35, %v370_v38  ;;  %v374_v45 = vor.u32 %v372_v43, %v370_v38  ;;  %v378_v46 = vrot.slane %v376_v44, 1  ;;  %v322_v54 = vld [vmem:[#allocation2 + $0x28] sm:$0x1] }
  0x26   : > { %771 = vmatmul.msk.bf16.vlgmr.msra.gmra.mxu0 %vm393_vm2, %v363_v39  ;;  %803 = vmatmul.msk.bf16.vlgmr.msra.gmra.mxu3 %vm393_vm2, %v371_v40  ;;  %v546_v50 = vshll.u32 %v819_v48, 16  ;;  %v544_v57 = vunpack.c.l.b16 %v322_v54  ;;  %v350_v58 = vpack.c.b16 %v345_v56, %v345_v56  ;;  %v550_v61 = vshrl.u32 %v819_v48, 16 }
  0x27   : > { %v379_v47 = vsel %vm351_vm3, %v374_v45, %v378_v46  ;;  %v382_v51 = vor.u32 %v380_v49, %v378_v46 }
  0x28   : > { %v548_v52 = vrot.slane %v546_v50, 1  ;;  %v545_v59 = vpack.c.b16 %v544_v57, %v544_v57  ;;  %v384_v60 = vshll.u32 %v350_v58, 16 }
  0x2a   : > { %v549_v55 = vsel %vm351_vm3, %v382_v51, %v548_v52  ;;  %v554_v62 = vshll.u32 %v545_v59, 16  ;;  %v386_v63 = vrot.slane %v384_v60, 1  ;;  %v552_v0 = vor.u32 %v550_v61, %v548_v52 }
  0x2c   : > { %v556_v1 = vrot.slane %v554_v62, 1  ;;  %v387_v2 = vsel %vm351_vm3, %v382_v51, %v386_v63 }
  0x2d   : > { %794 = vmatmul.msk.bf16.gmra.mxu2 %vm393_vm2, %v817_v33 }
  0x2e   : > { %v557_v3 = vsel %vm351_vm3, %v552_v0, %v556_v1 }
  0x2f   : > { %780 = vmatmul.msk.bf16.gmra.mxu1 %vm393_vm2, %v816_v24 }
  0x36   : > { %772 = vmatmul.msk.bf16.gmra.mxu0 %vm393_vm2, %v371_v40  ;;  %804 = vmatmul.msk.bf16.gmra.mxu3 %vm393_vm2, %v379_v47 }
  0x3d   : > { %795 = vmatmul.msk.bf16.gmra.mxu2 %vm393_vm2, %v818_v42 }
  0x3f   : > { %781 = vmatmul.msk.bf16.gmra.mxu1 %vm393_vm2, %v817_v33 }
  0x46   : > { %773 = vmatmul.msk.bf16.gmra.mxu0 %vm393_vm2, %v379_v47  ;;  %805 = vmatmul.msk.bf16.gmra.mxu3 %vm393_vm2, %v549_v55 }
  0x4d   : > { %796 = vmatmul.msk.bf16.gmra.mxu2 %vm393_vm2, %v819_v48 }
  0x4f   : > { %782 = vmatmul.msk.bf16.gmra.mxu1 %vm393_vm2, %v818_v42 }
  0x56   : > { %774 = vmatmul.msk.bf16.gmra.mxu0 %vm393_vm2, %v387_v2  ;;  %806 = vmatmul.msk.bf16.gmra.mxu3 %vm393_vm2, %v557_v3 }
  0x9c   : > { %v464_v4 = vpop.f32.mrf.mxu1 }
  0xa0   : > { %v512_v5 = vpop.f32.mrf.mxu2 }
  0xa3   : > { %v419_v6 = vpop.f32.mrf.mxu0 }
  0xa4   : > { %v465_v7 = vadd.f32 %v464_v4, %v419_v6  ;;  %v466_v8 = vpop.f32.mrf.mxu1 }
  0xa6   : > { %v532_v9 = vadd.f32 %v512_v5, %v465_v7 }
  0xa8   : > { %v514_v11 = vpop.f32.mrf.mxu2 }
  0xa9   : > { %v581_v12 = vpop.f32.mrf.mxu3 }
  0xaa   : > { %v601_v13 = vadd.f32 %v581_v12, %v532_v9 }
  0xab   : > { %v421_v14 = vpop.f32.mrf.mxu0 }
  0xac   : > { %v613_v15 = vadd.f32 %v1042_v10, %v601_v13  ;;  %v467_v16 = vadd.f32 %v466_v8, %v421_v14  ;;  %v469_v17 = vpop.f32.mrf.mxu1 }
  0xae   : > { %v621_v18 = vmax.f32 %v613_v15, 0.0  ;;  %v533_v20 = vadd.f32 %v514_v11, %v467_v16 }
  0xb0   : > { %v629_v19 = vpack.c.bf16 %v621_v18, %v621_v18  ;;  %v517_v21 = vpop.f32.mrf.mxu2 }
  0xb1   : > { %v583_v22 = vpop.f32.mrf.mxu3 }
  0xb2   : > { %638 = vst.msk [vmem:[%s1048_s22] sm:$0xf] %vm637_vm4, %v629_v19  ;;  %v602_v23 = vadd.f32 %v583_v22, %v533_v20 }
  0xb3   : > { %v424_v24 = vpop.f32.mrf.mxu0 }
  0xb4   : > { %v614_v25 = vadd.f32 %v1042_v10, %v602_v23  ;;  %v470_v26 = vadd.f32 %v469_v17, %v424_v24  ;;  %v471_v27 = vpop.f32.mrf.mxu1 }
  0xb6   : > { %v622_v28 = vmax.f32 %v614_v25, 0.0  ;;  %v534_v29 = vadd.f32 %v517_v21, %v470_v26 }
  0xb8   : > { %v630_v30 = vpack.c.bf16 %v622_v28, %v622_v28  ;;  %v519_v31 = vpop.f32.mrf.mxu2 }
  0xb9   : > { %v586_v32 = vpop.f32.mrf.mxu3 }
  0xba   : > { %639 = vst.msk [vmem:[%s1048_s22 + $0x4] sm:$0xf] %vm637_vm4, %v630_v30  ;;  %v603_v33 = vadd.f32 %v586_v32, %v534_v29 }
  0xbb   : > { %v426_v34 = vpop.f32.mrf.mxu0 }
  0xbc   : > { %v615_v35 = vadd.f32 %v1042_v10, %v603_v33  ;;  %v472_v36 = vadd.f32 %v471_v27, %v426_v34  ;;  %v474_v37 = vpop.f32.mrf.mxu1 }
  0xbe   : > { %v623_v38 = vmax.f32 %v615_v35, 0.0  ;;  %v535_v40 = vadd.f32 %v519_v31, %v472_v36 }
  0xc0   : > { %v631_v39 = vpack.c.bf16 %v623_v38, %v623_v38  ;;  %v522_v42 = vpop.f32.mrf.mxu2 }
  0xc1   : > { %v588_v41 = vpop.f32.mrf.mxu3 }
  0xc2   : > { %640 = vst.msk [vmem:[%s1048_s22 + $0x8] sm:$0xf] %vm637_vm4, %v631_v39  ;;  %v604_v43 = vadd.f32 %v588_v41, %v535_v40 }
  0xc3   : > { %v429_v44 = vpop.f32.mrf.mxu0 }
  0xc4   : > { %v616_v45 = vadd.f32 %v1042_v10, %v604_v43  ;;  %v475_v46 = vadd.f32 %v474_v37, %v429_v44  ;;  %v476_v49 = vpop.f32.mrf.mxu1 }
  0xc6   : > { %v624_v47 = vmax.f32 %v616_v45, 0.0  ;;  %v536_v48 = vadd.f32 %v522_v42, %v475_v46 }
  0xc8   : > { %v632_v50 = vpack.c.bf16 %v624_v47, %v624_v47  ;;  %v524_v53 = vpop.f32.mrf.mxu2 }
  0xc9   : > { %v591_v51 = vpop.f32.mrf.mxu3 }
  0xca   : > { %641 = vst.msk [vmem:[%s1048_s22 + $0xc] sm:$0xf] %vm637_vm4, %v632_v50  ;;  %v605_v52 = vadd.f32 %v591_v51, %v536_v48 }
  0xcb   : > { %v431_v54 = vpop.f32.mrf.mxu0 }
  0xcc   : > { %v617_v55 = vadd.f32 %v1042_v10, %v605_v52  ;;  %v477_v56 = vadd.f32 %v476_v49, %v431_v54  ;;  %v479_v60 = vpop.f32.mrf.mxu1 }
  0xce   : > { %v625_v57 = vmax.f32 %v617_v55, 0.0  ;;  %v537_v59 = vadd.f32 %v524_v53, %v477_v56 }
  0xd0   : > { %v633_v58 = vpack.c.bf16 %v625_v57, %v625_v57  ;;  %v527_v2 = vpop.f32.mrf.mxu2 }
  0xd1   : > { %v593_v61 = vpop.f32.mrf.mxu3 }
  0xd2   : > { %642 = vst.msk [vmem:[%s1048_s22 + $0x10] sm:$0xf] %vm637_vm4, %v633_v58  ;;  %v606_v62 = vadd.f32 %v593_v61, %v537_v59 }
  0xd3   : > { %v434_v63 = vpop.f32.mrf.mxu0 }
  0xd4   : > { %v618_v0 = vadd.f32 %v1042_v10, %v606_v62  ;;  %v480_v1 = vadd.f32 %v479_v60, %v434_v63  ;;  %v481_v8 = vpop.f32.mrf.mxu1 }
  0xd6   : > { %v626_v3 = vmax.f32 %v618_v0, 0.0  ;;  %v538_v4 = vadd.f32 %v527_v2, %v480_v1 }
  0xd8   : > { %v634_v5 = vpack.c.bf16 %v626_v3, %v626_v3  ;;  %v529_v14 = vpop.f32.mrf.mxu2 }
  0xd9   : > { %v596_v6 = vpop.f32.mrf.mxu3 }
  0xda   : > { %643 = vst.msk [vmem:[%s1048_s22 + $0x14] sm:$0xf] %vm637_vm4, %v634_v5  ;;  %v607_v7 = vadd.f32 %v596_v6, %v538_v4 }
  0xdb   : > { %v436_v9 = vpop.f32.mrf.mxu0 }
  0xdc   : > { %v619_v11 = vadd.f32 %v1042_v10, %v607_v7  ;;  %v482_v12 = vadd.f32 %v481_v8, %v436_v9 }
  0xde   : > { %v627_v13 = vmax.f32 %v619_v11, 0.0  ;;  %v539_v16 = vadd.f32 %v529_v14, %v482_v12 }
  0xe0   : > { %v635_v15 = vpack.c.bf16 %v627_v13, %v627_v13 }
  0xe1   : > { %v598_v17 = vpop.f32.mrf.mxu3 }
  0xe2   : > { %644 = vst.msk [vmem:[%s1048_s22 + $0x18] sm:$0xf] %vm637_vm4, %v635_v15  ;;  %v608_v18 = vadd.f32 %v598_v17, %v539_v16 }
  0xe4   : > { %v620_v19 = vadd.f32 %v1042_v10, %v608_v18 }
  0xe6   : > { %v628_v20 = vmax.f32 %v620_v19, 0.0 }
  0xe8   : > { %v636_v21 = vpack.c.bf16 %v628_v20, %v628_v20 }
  0xea   : > { %645 = vst.msk [vmem:[%s1048_s22 + $0x1c] sm:$0xf] %vm637_vm4, %v636_v21 }
  0xeb PF: > { %s14_s19 = sadd.s32 1, %s904_s19   ;;  %s1093_s15 = smov %s896_s17 }
  0xec   : > { %p11_p8 = scmp.ge.s32.totalorder %s14_s19, 6   ;;  %s1094_s16 = smov %s900_s18 }
  0xed   : > { %s1095_s17 = smov %s1098_s20  ;;  %s1096_s18 = smov %s1102_s21 }
  0xee   :  { %13 = sbr.rel (!%p11_p8) target bundleno = 3 (0x3), region = 72 }

// kernel: spatial_path.4
= control target key start
LH: loop header
LB: loop body
LE: loop exit
PB: predicated region body
PF: predicated region fallthrough
CT: control target
= control target key end

     0   :  { %s1687_s15 = smov 0   ;;  %s1689_s16 = smov 0   ;;  %s1978_s0 = inlined_call_operand.vmem [shape: bf16[96,256], index: 0, kind: input, shape index: {}, may-alias: {0,1}]   ;;  %s1979_s1 = inlined_call_operand.vmem [shape: bf16[96,256], index: 1, kind: input, shape index: {}, may-alias: {0,1}]   ;;  %s1980_s2 = inlined_call_operand.vmem [shape: bf16[4,256,128], index: 2, kind: input, shape index: {}]   ;;  %s1981_s3 = inlined_call_operand.vmem [shape: f32[1,128], index: 3, kind: input, shape index: {}]   ;;  %s1982_s4 = inlined_call_operand.vmem [shape: bf16[64,128], index: 4, kind: output, shape index: {}]  }
   0x1   :  { %s1691_s17 = smov 0   ;;  %s1693_s18 = smov 0  }
   0x2   :  { %s1695_s19 = smov 0  }
   0x3 LB: > { %s23_s20 = sadd.s32 1, %s1651_s17  ;;  %s26_s21 = sadd.s32 1, %s1655_s18  ;;  %s1659_s19 = sphi %s1695_s19, %s14_s19   ;;  %s1655_s18 = sphi %s1693_s18, %s1986_s18   ;;  %s1651_s17 = sphi %s1691_s17, %s1985_s17   ;;  %s1647_s16 = sphi %s1689_s16, %s1984_s16   ;;  %s1643_s15 = sphi %s1687_s15, %s1983_s15  }
   0x4   : > { %p24_p0 = scmp.ge.s32.totalorder %s23_s20, 2  ;;  %p1128_p1 = scmp.ge.s32.totalorder %s1659_s19, 1 }
   0x5   : > { %p214_p2 = scmp.lt.s32.totalorder %s1659_s19, 5 }
   0x6   : > { %s1988_s20 = smov (%p24_p0, %s23_s20), 0  ;;  %s1990_s21 = smov (!%p24_p0, %s26_s21), %s1655_s18 }
   0x7   : > { %p215_p3 = pnand %p1128_p1, %p214_p2  ;;  %p28_p4 = scmp.ge.s32.totalorder %s1990_s21, 2 }
   0x8   : > { %s254_s28 = smul.u32 (!%p215_p3), 3, %s1647_s16  ;;  %s1505_s29 = sshll.u32 (!%p215_p3), %s1643_s15, 1 }
   0x9   : > { %s1992_s21 = smov (%p28_p4, %s1990_s21), 0  ;;  %218 = sbr.rel (%p215_p3) target bundleno = 232 (0xe8), region = 36 }
   0xa   : > { %s265_s6 = smul.u32 (!%p215_p3), 6, %s1647_s16  ;;  %s1506_s7 = sadd.s32 (!%p215_p3), 2, %s1505_s29 }
   0xb   : > { %s255_s12 = sadd.s32 (!%p215_p3), %s1643_s15, %s254_s28 }
   0xc   : > { %s1129_s24 = sshll.u32 (!%p215_p3), %s255_s12, 1  ;;  %s268_s25 = sadd.s32 (!%p215_p3), %s1506_s7, %s265_s6 }
   0xd   : > { %p257_p5 = scmp.lt.s32.totalorder (!%p215_p3), %s1129_s24, 11  ;;  %p269_p6 = scmp.lt.s32.totalorder (!%p215_p3), %s268_s25, 11 }
   0xe   : > { %v1533_v0 = vld [vmem:[%s1980_s2 + $0xb8] sm:$0xff]  ;;  %v1532_v4 = vld [vmem:[%s1980_s2 + $0xb0] sm:$0xff]  ;;  %v1531_v8 = vld [vmem:[%s1980_s2 + $0xa8] sm:$0xff]  ;;  %v1661_v29 = vmov 0   ;;  %vm381_vm0 = vsmask.f32 7424 }
   0xf   : > { %v1541_v1 = vld [vmem:[%s1980_s2 + $0xf8] sm:$0xff]  ;;  %504 = vmatpush.bf16.msra.mxu0 %v1533_v0  ;;  %v1540_v5 = vld [vmem:[%s1980_s2 + $0xf0] sm:$0xff]  ;;  %v1539_v9 = vld [vmem:[%s1980_s2 + $0xe8] sm:$0xff]  ;;  %s1994_s24 = smov (!%p257_p5, %s1129_s24), 11  ;;  %s1996_s25 = smov (!%p269_p6, %s268_s25), 11  ;;  %295 = vst [vmem:[#allocation2 + $0x18] sm:$0xff] %v1661_v29 }
  0x10   : > { %v1517_v2 = vld [vmem:[%s1980_s2 + $0x38] sm:$0xff]  ;;  %518 = vmatpush.bf16.msra.mxu1 %v1541_v1  ;;  %v1516_v6 = vld [vmem:[%s1980_s2 + $0x30] sm:$0xff]  ;;  %v1515_v10 = vld [vmem:[%s1980_s2 + $0x28] sm:$0xff]  ;;  %s1504_s8 = sshll.u32 %s1994_s24, 3  ;;  %s1507_s9 = sshll.u32 %s1996_s25, 3 }
  0x11   : > { %v1525_v3 = vld [vmem:[%s1980_s2 + $0x78] sm:$0xff]  ;;  %630 = vmatpush.bf16.msra.mxu2 %v1517_v2  ;;  %v1524_v7 = vld [vmem:[%s1980_s2 + $0x70] sm:$0xff]  ;;  %v1523_v11 = vld [vmem:[%s1980_s2 + $0x68] sm:$0xff]  ;;  %s261_s23 = scalar_lea.vmem %s1978_s0, %s1504_s8  ;;  %s273_s30 = scalar_lea.vmem %s1979_s1, %s1507_s9 }
  0x12   : > { %644 = vmatpush.bf16.msra.mxu3 %v1525_v3  ;;  %v1530_v12 = vld [vmem:[%s1980_s2 + $0xa0] sm:$0xff]  ;;  %v1779_v17 = vld [vmem:[%s261_s23 + $0x8] sm:$0xff]  ;;  %v1529_v18 = vld [vmem:[%s1980_s2 + $0x98] sm:$0xff]  ;;  %s1135_s6 = sshll.u32 %s1647_s16, 1 }
  0x13   : > { %505 = vmatpush.bf16.msra.mxu0 %v1532_v4  ;;  %v1538_v13 = vld [vmem:[%s1980_s2 + $0xe0] sm:$0xff]  ;;  %v1537_v19 = vld [vmem:[%s1980_s2 + $0xd8] sm:$0xff]  ;;  %v373_v21 = vunpack.c.l.b16 %v1779_v17  ;;  %v374_v23 = vunpack.c.h.b16 %v1779_v17  ;;  %292 = vst [vmem:[#allocation2 + $0x8] sm:$0xff] %v1779_v17  ;;  %v1528_v30 = vld [vmem:[%s1980_s2 + $0x90] sm:$0xff]  ;;  %s279_s7 = sadd.s32 %s1643_s15, %s1135_s6 }
  0x14   : > { %519 = vmatpush.bf16.msra.mxu1 %v1540_v5  ;;  %v1514_v14 = vld [vmem:[%s1980_s2 + $0x20] sm:$0xff]  ;;  %v1513_v24 = vld [vmem:[%s1980_s2 + $0x18] sm:$0xff]  ;;  %v1536_v31 = vld [vmem:[%s1980_s2 + $0xd0] sm:$0xff]  ;;  %s1136_s8 = sshll.u32 %s279_s7, 1 }
  0x15   : > { %631 = vmatpush.bf16.msra.mxu2 %v1516_v6  ;;  %v1522_v15 = vld [vmem:[%s1980_s2 + $0x60] sm:$0xff]  ;;  %v1521_v25 = vld [vmem:[%s1980_s2 + $0x58] sm:$0xff]  ;;  %v1512_v32 = vld [vmem:[%s1980_s2 + $0x10] sm:$0xff]  ;;  %p281_p7 = scmp.lt.s32.totalorder %s1136_s8, 7 }
  0x16   : > { %645 = vmatpush.bf16.msra.mxu3 %v1524_v7  ;;  %v289_v16 = vld [vmem:[%s261_s23] sm:$0xff]  ;;  %v1520_v33 = vld [vmem:[%s1980_s2 + $0x50] sm:$0xff]  ;;  %v1527_v36 = vld [vmem:[%s1980_s2 + $0x88] sm:$0xff] }
  0x17   : > { %506 = vmatpush.bf16.msra.mxu0 %v1531_v8  ;;  %v371_v20 = vunpack.c.l.b16 %v289_v16  ;;  %v372_v22 = vunpack.c.h.b16 %v289_v16  ;;  %v1796_v26 = vld [vmem:[%s273_s30] sm:$0xff]  ;;  %v1535_v37 = vld [vmem:[%s1980_s2 + $0xc8] sm:$0xff]  ;;  %v1549_v53 = vld [vmem:[%s1980_s2 + $0x138] sm:$0xff]  ;;  %s1998_s8 = smov (!%p281_p7, %s1136_s8), 7 }
  0x18   : > { %520 = vmatpush.bf16.msra.mxu1 %v1539_v9  ;;  %294 = vst [vmem:[#allocation2 + $0x10] sm:$0xff] %v1796_v26  ;;  %v1511_v38 = vld [vmem:[%s1980_s2 + $0x8] sm:$0xff]  ;;  %v1526_v47 = vld [vmem:[%s1980_s2 + $0x80] sm:$0xff]  ;;  %v1557_v54 = vld [vmem:[%s1980_s2 + $0x178] sm:$0xff]  ;;  %s1137_s15 = sshll.u32 %s1998_s8, 2 }
  0x19   : > { %632 = vmatpush.bf16.msra.mxu2 %v1515_v10  ;;  %v1800_v27 = vpack.c.b16 %v373_v21, %v371_v20  ;;  %v1804_v28 = vpack.c.b16 %v374_v23, %v372_v22  ;;  %v1519_v39 = vld [vmem:[%s1980_s2 + $0x48] sm:$0xff]  ;;  %v1534_v48 = vld [vmem:[%s1980_s2 + $0xc0] sm:$0xff]  ;;  %v1565_v59 = vld [vmem:[%s1980_s2 + $0x1b8] sm:$0xff]  ;;  %s284_s12 = scalar_lea.vmem %s1982_s4, %s1137_s15 }
  0x1a   : > { %646 = vmatpush.bf16.msra.mxu3 %v1523_v11  ;;  %v1510_v51 = vld [vmem:[%s1980_s2] sm:$0xff]  ;;  %v1573_v60 = vld [vmem:[%s1980_s2 + $0x1f8] sm:$0xff]  ;;  %v1548_v63 = vld [vmem:[%s1980_s2 + $0x130] sm:$0xff] }
  0x1b   : > { %507 = vmatpush.bf16.msra.mxu0 %v1530_v12  ;;  %v385_v34 = vshll.u32 %v1800_v27, 16  ;;  %v397_v35 = vshll.u32 %v1804_v28, 16  ;;  %v383_v41 = vshrl.u32 %v1800_v27, 16  ;;  %v395_v42 = vshrl.u32 %v1804_v28, 16  ;;  %v1518_v52 = vld [vmem:[%s1980_s2 + $0x40] sm:$0xff]  ;;  %v1556_v0 = vld [vmem:[%s1980_s2 + $0x170] sm:$0xff] }
  0x1c   : > { %521 = vmatpush.bf16.msra.mxu1 %v1538_v13  ;;  %v1564_v3 = vld [vmem:[%s1980_s2 + $0x1b0] sm:$0xff]  ;;  %v1547_v5 = vld [vmem:[%s1980_s2 + $0x128] sm:$0xff]  ;;  %v1546_v9 = vld [vmem:[%s1980_s2 + $0x120] sm:$0xff] }
  0x1d   : > { %633 = vmatpush.bf16.msra.mxu2 %v1514_v14  ;;  %v387_v44 = vrot.slane %v385_v34, 1  ;;  %v399_v46 = vrot.slane %v397_v35, 1  ;;  %v1572_v4 = vld [vmem:[%s1980_s2 + $0x1f0] sm:$0xff]  ;;  %v1555_v6 = vld [vmem:[%s1980_s2 + $0x168] sm:$0xff]  ;;  %v1554_v10 = vld [vmem:[%s1980_s2 + $0x160] sm:$0xff] }
  0x1e   : > { %647 = vmatpush.bf16.msra.mxu3 %v1522_v15  ;;  %v1563_v7 = vld [vmem:[%s1980_s2 + $0x1a8] sm:$0xff]  ;;  %v1562_v11 = vld [vmem:[%s1980_s2 + $0x1a0] sm:$0xff]  ;;  %v302_v15 = vld [vmem:[#allocation2 + $0x18] sm:$0x11] }
  0x1f   : > { %508 = vmatpush.bf16.msra.mxu0 %v1529_v18  ;;  %v298_v40 = vld [vmem:[#allocation2 + $0x10] sm:$0x11]  ;;  %v388_v55 = vor.u32 %v387_v44, %v383_v41  ;;  %v400_v57 = vor.u32 %v399_v46, %v395_v42  ;;  %v1571_v8 = vld [vmem:[%s1980_s2 + $0x1e8] sm:$0xff]  ;;  %v1570_v12 = vld [vmem:[%s1980_s2 + $0x1e0] sm:$0xff] }
  0x20   : > { %522 = vmatpush.bf16.msra.mxu1 %v1537_v19  ;;  %v375_v43 = vunpack.c.l.b16 %v298_v40  ;;  %v376_v45 = vunpack.c.h.b16 %v298_v40  ;;  %v1428_v13 = vld [vmem:[#allocation2 + $0x8] sm:$0xf]  ;;  %v1509_v14 = vld [vmem:[#allocation2 + $0xc] sm:$0xf0]  ;;  %v1508_v16 = vld [vmem:[#allocation2 + $0xc] sm:$0xf] }
  0x21   : > { %634 = vmatpush.bf16.msra.mxu2 %v1513_v24  ;;  %v1430_v18 = vld [vmem:[#allocation2 + $0x10] sm:$0xf0]  ;;  %v1545_v19 = vld [vmem:[%s1980_s2 + $0x118] sm:$0xff]  ;;  %v1429_v22 = vor.u32 %v1509_v14, %v1428_v13  ;;  %v1559_v42 = vld [vmem:[%s1980_s2 + $0x188] sm:$0xff] }
  0x22   : > { %648 = vmatpush.bf16.msra.mxu3 %v1521_v25  ;;  %v379_v49 = vpack.c.b16 %v375_v43, %v375_v43  ;;  %v380_v50 = vpack.c.b16 %v376_v45, %v376_v45  ;;  %v1553_v20 = vld [vmem:[%s1980_s2 + $0x158] sm:$0xff]  ;;  %v1433_v29 = vor.u32 %v1508_v16, %v1430_v18  ;;  %v1568_v34 = vld [vmem:[%s1980_s2 + $0x1d0] sm:$0xff]  ;;  %v1567_v43 = vld [vmem:[%s1980_s2 + $0x1c8] sm:$0xff] }
  0x23   : > { %509 = vmatpush.bf16.msra.mxu0 %v1528_v30  ;;  %v1561_v24 = vld [vmem:[%s1980_s2 + $0x198] sm:$0xff]  ;;  %v1544_v30 = vld [vmem:[%s1980_s2 + $0x110] sm:$0xff]  ;;  %v871_v40 = vshrl.u32 %v1429_v22, 16 }
  0x24   : > { %523 = vmatpush.bf16.msra.mxu1 %v1536_v31  ;;  %v390_v56 = vshll.u32 %v379_v49, 16  ;;  %v402_v58 = vshll.u32 %v380_v50, 16  ;;  %v1569_v25 = vld [vmem:[%s1980_s2 + $0x1d8] sm:$0xff]  ;;  %v1552_v31 = vld [vmem:[%s1980_s2 + $0x150] sm:$0xff]  ;;  %v883_v45 = vshrl.u32 %v1433_v29, 16  ;;  %v693_v49 = vunpack.c.h.b16 %v1796_v26  ;;  %v1542_v50 = vld [vmem:[%s1980_s2 + $0x100] sm:$0xff] }
  0x25   : > { %635 = vmatpush.bf16.msra.mxu2 %v1512_v32  ;;  %v873_v32 = vshll.u32 %v1429_v22, 16 }
  0x26   : > { %649 = vmatpush.bf16.msra.mxu3 %v1520_v33  ;;  %v392_v61 = vrot.slane %v390_v56, 1  ;;  %v404_v62 = vrot.slane %v402_v58, 1  ;;  %v1560_v33 = vld [vmem:[%s1980_s2 + $0x190] sm:$0xff]  ;;  %v695_v58 = vpack.c.b16 %v693_v49, %v374_v23 }
  0x27   : > { %510 = vmatpush.bf16.msra.mxu0 %v1527_v36  ;;  %v875_v41 = vrot.slane %v873_v32, 1 }
  0x28   : > { %524 = vmatpush.bf16.msra.mxu1 %v1535_v37  ;;  %v393_v1 = vsel %vm381_vm0, %v388_v55, %v392_v61  ;;  %v405_v2 = vsel %vm381_vm0, %v400_v57, %v404_v62  ;;  %v885_v37 = vshll.u32 %v1433_v29, 16 }
  0x29   : > { %636 = vmatpush.bf16.msra.mxu2 %v1511_v38  ;;  %v1543_v38 = vld [vmem:[%s1980_s2 + $0x108] sm:$0xff] }
  0x2a   : > { %650 = vmatpush.bf16.msra.mxu3 %v1519_v39  ;;  %v1551_v39 = vld [vmem:[%s1980_s2 + $0x148] sm:$0xff]  ;;  %v887_v46 = vrot.slane %v885_v37, 1 }
  0x2b   : > { %511 = vmatpush.bf16.msra.mxu0 %v1526_v47 }
  0x2c   : > { %525 = vmatpush.bf16.msra.mxu1 %v1534_v48  ;;  %v692_v48 = vunpack.c.l.b16 %v1796_v26  ;;  %v1566_v26 = vld [vmem:[%s1980_s2 + $0x1c0] sm:$0xff]  ;;  %v888_v55 = vor.u32 %v887_v46, %v883_v45 }
  0x2d   : > { %637 = vmatpush.bf16.msra.mxu2 %v1510_v51  ;;  %v1550_v51 = vld [vmem:[%s1980_s2 + $0x140] sm:$0xff] }
  0x2e   : > { %651 = vmatpush.bf16.msra.mxu3 %v1518_v52  ;;  %512 = vmatmul.bf16.vlgmr.msra.gmra.mxu0 %v393_v1  ;;  %v1558_v52 = vld [vmem:[%s1980_s2 + $0x180] sm:$0xff]  ;;  %v694_v57 = vpack.c.b16 %v692_v48, %v373_v21 }
  0x2f   : > { %794 = vmatpush.bf16.msrb.mxu0 %v1549_v53  ;;  %526 = vmatmul.bf16.vlgmr.msra.gmra.mxu1 %v405_v2  ;;  %v876_v53 = vor.u32 %v875_v41, %v871_v40 }
  0x30   : > { %808 = vmatpush.bf16.msrb.mxu1 %v1557_v54  ;;  %638 = vmatmul.bf16.vlgmr.msra.gmra.mxu2 %v1800_v27  ;;  %v864_v27 = vunpack.c.l.b16 %v302_v15 }
  0x31   : > { %992 = vmatpush.bf16.msrb.mxu2 %v1565_v59  ;;  %652 = vmatmul.bf16.vlgmr.msra.gmra.mxu3 %v1804_v28  ;;  %v865_v28 = vunpack.c.h.b16 %v302_v15 }
  0x32   : > { %1006 = vmatpush.bf16.msrb.mxu3 %v1573_v60  ;;  %v868_v35 = vpack.c.b16 %v864_v27, %v864_v27 }
  0x33   : > { %795 = vmatpush.bf16.msrb.mxu0 %v1548_v63  ;;  %v869_v36 = vpack.c.b16 %v865_v28, %v865_v28 }
  0x34   : > { %809 = vmatpush.bf16.msrb.mxu1 %v1556_v0  ;;  %v878_v44 = vshll.u32 %v868_v35, 16 }
  0x35   : > { %993 = vmatpush.bf16.msrb.mxu2 %v1564_v3  ;;  %v890_v47 = vshll.u32 %v869_v36, 16 }
  0x36   : > { %1007 = vmatpush.bf16.msrb.mxu3 %v1572_v4  ;;  %v880_v54 = vrot.slane %v878_v44, 1 }
  0x37   : > { %796 = vmatpush.bf16.msrb.mxu0 %v1547_v5  ;;  %v892_v56 = vrot.slane %v890_v47, 1 }
  0x38   : > { %810 = vmatpush.bf16.msrb.mxu1 %v1555_v6  ;;  %v881_v59 = vsel %vm381_vm0, %v876_v53, %v880_v54 }
  0x39   : > { %994 = vmatpush.bf16.msrb.mxu2 %v1563_v7  ;;  %v893_v60 = vsel %vm381_vm0, %v888_v55, %v892_v56 }
  0x3a   : > { %1008 = vmatpush.bf16.msrb.mxu3 %v1571_v8 }
  0x3b   : > { %797 = vmatpush.bf16.msrb.mxu0 %v1546_v9 }
  0x3c   : > { %811 = vmatpush.bf16.msrb.mxu1 %v1554_v10 }
  0x3d   : > { %995 = vmatpush.bf16.msrb.mxu2 %v1562_v11 }
  0x3e   : > { %1009 = vmatpush.bf16.msrb.mxu3 %v1570_v12 }
  0x3f   : > { %798 = vmatpush.bf16.msrb.mxu0 %v1545_v19 }
  0x40   : > { %812 = vmatpush.bf16.msrb.mxu1 %v1553_v20  ;;  %v1620_v20 = vld [vmem:[%s1981_s3] ss:$0 sm:$0xff] }
  0x41   : > { %996 = vmatpush.bf16.msrb.mxu2 %v1561_v24 }
  0x42   : > { %1010 = vmatpush.bf16.msrb.mxu3 %v1569_v25 }
  0x43   : > { %799 = vmatpush.bf16.msrb.mxu0 %v1544_v30 }
  0x44   : > { %813 = vmatpush.bf16.msrb.mxu1 %v1552_v31 }
  0x45   : > { %997 = vmatpush.bf16.msrb.mxu2 %v1560_v33 }
  0x46   : > { %1011 = vmatpush.bf16.msrb.mxu3 %v1568_v34 }
  0x47   : > { %800 = vmatpush.bf16.msrb.mxu0 %v1543_v38 }
  0x48   : > { %814 = vmatpush.bf16.msrb.mxu1 %v1551_v39 }
  0x49   : > { %998 = vmatpush.bf16.msrb.mxu2 %v1559_v42 }
  0x4a   : > { %1012 = vmatpush.bf16.msrb.mxu3 %v1567_v43 }
  0x4b   : > { %801 = vmatpush.bf16.msrb.mxu0 %v1542_v50 }
  0x4c   : > { %815 = vmatpush.bf16.msrb.mxu1 %v1550_v51 }
  0x4d   : > { %999 = vmatpush.bf16.msrb.mxu2 %v1558_v52 }
  0x4e   : > { %1013 = vmatpush.bf16.msrb.mxu3 %v1566_v26  ;;  %802 = vmatmul.bf16.vlgmr.msrb.gmra.mxu0 %v694_v57 }
  0x4f   : > { %816 = vmatmul.bf16.vlgmr.msrb.gmra.mxu1 %v695_v58 }
  0x50   : > { %1000 = vmatmul.bf16.vlgmr.msrb.gmra.mxu2 %v881_v59 }
  0x51   : > { %1014 = vmatmul.bf16.vlgmr.msrb.gmra.mxu3 %v893_v60 }
  0xab   : > { %v513_v61 = vpop.f32.mrf.mxu0 }
  0xac   : > { %v527_v62 = vpop.f32.mrf.mxu1 }
  0xad   : > { %v528_v4 = vadd.f32 %v527_v62, %v513_v61 }
  0xb3   : > { %v639_v21 = vpop.f32.mrf.mxu2  ;;  %v515_v17 = vpop.f32.mrf.mxu0 }
  0xb4   : > { %v653_v63 = vpop.f32.mrf.mxu3  ;;  %v529_v23 = vpop.f32.mrf.mxu1  ;;  %v640_v5 = vadd.f32 %v639_v21, %v528_v4 }
  0xb5   : > { %v530_v6 = vadd.f32 %v529_v23, %v515_v17 }
  0xb6   : > { %v654_v12 = vadd.f32 %v653_v63, %v640_v5 }
  0xbb   : > { %v641_v0 = vpop.f32.mrf.mxu2 }
  0xbc   : > { %v655_v1 = vpop.f32.mrf.mxu3  ;;  %v642_v13 = vadd.f32 %v641_v0, %v530_v6 }
  0xbe   : > { %v656_v18 = vadd.f32 %v655_v1, %v642_v13 }
  0xcb   : > { %v803_v2 = vpop.f32.mrf.mxu0 }
  0xcc   : > { %v817_v3 = vpop.f32.mrf.mxu1 }
  0xcd   : > { %v818_v9 = vadd.f32 %v817_v3, %v803_v2 }
  0xcf   : > { %v822_v15 = vadd.f32 %v818_v9, %v654_v12 }
  0xd3   : > { %v1001_v7 = vpop.f32.mrf.mxu2  ;;  %v805_v10 = vpop.f32.mrf.mxu0 }
  0xd4   : > { %v1015_v8 = vpop.f32.mrf.mxu3  ;;  %v819_v11 = vpop.f32.mrf.mxu1 }
  0xd5   : > { %v1016_v14 = vadd.f32 %v1015_v8, %v1001_v7  ;;  %v820_v16 = vadd.f32 %v819_v11, %v805_v10 }
  0xd7   : > { %v1020_v19 = vadd.f32 %v1016_v14, %v822_v15  ;;  %v823_v25 = vadd.f32 %v820_v16, %v656_v18 }
  0xd9   : > { %v1026_v28 = vadd.f32 %v1620_v20, %v1020_v19 }
  0xdb   : > { %v1003_v22 = vpop.f32.mrf.mxu2  ;;  %v1028_v31 = vmax.f32 %v1026_v28, 0.0 }
  0xdc   : > { %v1017_v24 = vpop.f32.mrf.mxu3 }
  0xdd   : > { %v1018_v27 = vadd.f32 %v1017_v24, %v1003_v22 }
  0xdf   : > { %v1021_v29 = vadd.f32 %v1018_v27, %v823_v25 }
  0xe1   : > { %v1027_v30 = vadd.f32 %v1620_v20, %v1021_v29 }
  0xe3   : > { %v1029_v32 = vmax.f32 %v1027_v30, 0.0 }
  0xe5   : > { %v1577_v33 = vpack.c.bf16 %v1029_v32, %v1028_v31 }
  0xe7   : > { %1578 = vst [vmem:[%s284_s12] sm:$0xff] %v1577_v33  }
  0xe8 PF: > { %s14_s19 = sadd.s32 1, %s1659_s19   ;;  %s1983_s15 = smov %s1651_s17 }
  0xe9   : > { %p11_p8 = scmp.ge.s32.totalorder %s14_s19, 6   ;;  %s1984_s16 = smov %s1655_s18 }
  0xea   : > { %s1985_s17 = smov %s1988_s20  ;;  %s1986_s18 = smov %s1992_s21 }
  0xeb   :  { %13 = sbr.rel (!%p11_p8) target bundleno = 3 (0x3), region = 72 }

// kernel: spatial_path.5
= control target key start
LH: loop header
LB: loop body
LE: loop exit
PB: predicated region body
PF: predicated region fallthrough
CT: control target
= control target key end

     0   :  { %s4088_s15 = smov 0   ;;  %s4090_s16 = smov 0   ;;  %s5810_s0 = inlined_call_operand.vmem [shape: bf16[48,512], index: 0, kind: input, shape index: {}, may-alias: {0,1}]   ;;  %s5811_s1 = inlined_call_operand.vmem [shape: bf16[48,512], index: 1, kind: input, shape index: {}, may-alias: {0,1}]   ;;  %s5812_s2 = inlined_call_operand.vmem [shape: bf16[4,512,256], index: 2, kind: input, shape index: {}]   ;;  %s5813_s3 = inlined_call_operand.vmem [shape: f32[1,256], index: 3, kind: input, shape index: {}]   ;;  %s5814_s4 = inlined_call_operand.vmem [shape: bf16[32,256], index: 4, kind: output, shape index: {}]  }
   0x1   :  { %s4092_s17 = smov 0   ;;  %s4094_s18 = smov 0  }
   0x2   :  { %s4096_s19 = smov 0  }
   0x3 LB: > { %s23_s20 = sadd.s32 1, %s4052_s17  ;;  %s26_s21 = sadd.s32 1, %s4056_s18  ;;  %s4060_s19 = sphi %s4096_s19, %s14_s19   ;;  %s4056_s18 = sphi %s4094_s18, %s5818_s18   ;;  %s4052_s17 = sphi %s4092_s17, %s5817_s17   ;;  %s4048_s16 = sphi %s4090_s16, %s5816_s16   ;;  %s4044_s15 = sphi %s4088_s15, %s5815_s15  }
   0x4   : > { %p24_p0 = scmp.ge.s32.totalorder %s23_s20, 2  ;;  %p2476_p1 = scmp.ge.s32.totalorder %s4060_s19, 1 }
   0x5   : > { %p208_p2 = scmp.lt.s32.totalorder %s4060_s19, 5 }
   0x6   : > { %s5820_s20 = smov (%p24_p0, %s23_s20), 0  ;;  %s5822_s21 = smov (!%p24_p0, %s26_s21), %s4056_s18 }
   0x7   : > { %p209_p3 = pnand %p2476_p1, %p208_p2  ;;  %p28_p4 = scmp.ge.s32.totalorder %s5822_s21, 2 }
   0x8   : > { %s246_s27 = smul.u32 (!%p209_p3), 3, %s4048_s16  ;;  %s256_s28 = sadd.s32 (!%p209_p3), 1, %s4044_s15 }
   0x9   : > { %s5824_s21 = smov (%p28_p4, %s5822_s21), 0  ;;  %212 = sbr.rel (%p209_p3) target bundleno = 419 (0x1a3), region = 36 }
   0xa   : > { %s247_s22 = sadd.s32 (!%p209_p3), %s4044_s15, %s246_s27  ;;  %s257_s23 = sadd.s32 (!%p209_p3), %s256_s28, %s246_s27 }
   0xb   : > { %p248_p5 = scmp.lt.s32.totalorder (!%p209_p3), %s247_s22, 5  ;;  %p258_p6 = scmp.lt.s32.totalorder (!%p209_p3), %s257_s23, 5 }
   0xc   : > { %s2481_s8 = sshll.u32 (!%p209_p3), %s4048_s16, 1 }
   0xd   : > { %s267_s9 = sadd.s32 (!%p209_p3), %s4044_s15, %s2481_s8 }
   0xe   : > { %v2606_v0 = vld [vmem:[%s5812_s2 + $0x270] sm:$0xf]  ;;  %v3804_v1 = vld [vmem:[%s5812_s2 + $0x274] sm:$0xf0]  ;;  %v2598_v11 = vld [vmem:[%s5812_s2 + $0x260] sm:$0xf] }
   0xf   : > { %v2670_v2 = vld [vmem:[%s5812_s2 + $0x2f0] sm:$0xf]  ;;  %v2607_v3 = vor.u32 %v3804_v1, %v2606_v0  ;;  %v3820_v4 = vld [vmem:[%s5812_s2 + $0x2f4] sm:$0xf0]  ;;  %v3802_v13 = vld [vmem:[%s5812_s2 + $0x264] sm:$0xf0] }
  0x10   : > { %v2734_v5 = vld [vmem:[%s5812_s2 + $0x370] sm:$0xf]  ;;  %v3836_v6 = vld [vmem:[%s5812_s2 + $0x374] sm:$0xf0]  ;;  %v2671_v7 = vor.u32 %v3820_v4, %v2670_v2  ;;  %v2662_v14 = vld [vmem:[%s5812_s2 + $0x2e0] sm:$0xf]  ;;  %v2599_v16 = vor.u32 %v3802_v13, %v2598_v11 }
  0x11   : > { %v2735_v8 = vor.u32 %v3836_v6, %v2734_v5  ;;  %v2798_v9 = vld [vmem:[%s5812_s2 + $0x3f0] sm:$0xf]  ;;  %v3852_v10 = vld [vmem:[%s5812_s2 + $0x3f4] sm:$0xf0]  ;;  %793 = vmatpush.bf16.msra.mxu0 %v2607_v3  ;;  %v3818_v15 = vld [vmem:[%s5812_s2 + $0x2e4] sm:$0xf0] }
  0x12   : > { %v2799_v12 = vor.u32 %v3852_v10, %v2798_v9  ;;  %806 = vmatpush.bf16.msra.mxu1 %v2671_v7  ;;  %v2663_v17 = vor.u32 %v3818_v15, %v2662_v14  ;;  %v2726_v18 = vld [vmem:[%s5812_s2 + $0x360] sm:$0xf]  ;;  %v3834_v19 = vld [vmem:[%s5812_s2 + $0x364] sm:$0xf0]  ;;  %v2590_v23 = vld [vmem:[%s5812_s2 + $0x250] sm:$0xf] }
  0x13   : > { %819 = vmatpush.bf16.msra.mxu2 %v2735_v8  ;;  %v2790_v20 = vld [vmem:[%s5812_s2 + $0x3e0] sm:$0xf]  ;;  %v2727_v21 = vor.u32 %v3834_v19, %v2726_v18  ;;  %v3850_v22 = vld [vmem:[%s5812_s2 + $0x3e4] sm:$0xf0]  ;;  %v3800_v24 = vld [vmem:[%s5812_s2 + $0x254] sm:$0xf0] }
  0x14   : > { %832 = vmatpush.bf16.msra.mxu3 %v2799_v12  ;;  %v2791_v25 = vor.u32 %v3850_v22, %v2790_v20  ;;  %v2654_v26 = vld [vmem:[%s5812_s2 + $0x2d0] sm:$0xf]  ;;  %v3816_v27 = vld [vmem:[%s5812_s2 + $0x2d4] sm:$0xf0]  ;;  %v2591_v29 = vor.u32 %v3800_v24, %v2590_v23  ;;  %v2582_v35 = vld [vmem:[%s5812_s2 + $0x240] sm:$0xf] }
  0x15   : > { %v2718_v28 = vld [vmem:[%s5812_s2 + $0x350] sm:$0xf]  ;;  %794 = vmatpush.bf16.msra.mxu0 %v2599_v16  ;;  %v3832_v30 = vld [vmem:[%s5812_s2 + $0x354] sm:$0xf0]  ;;  %v2655_v33 = vor.u32 %v3816_v27, %v2654_v26  ;;  %v3798_v36 = vld [vmem:[%s5812_s2 + $0x244] sm:$0xf0] }
  0x16   : > { %v2782_v31 = vld [vmem:[%s5812_s2 + $0x3d0] sm:$0xf]  ;;  %v3848_v32 = vld [vmem:[%s5812_s2 + $0x3d4] sm:$0xf0]  ;;  %807 = vmatpush.bf16.msra.mxu1 %v2663_v17  ;;  %v2719_v34 = vor.u32 %v3832_v30, %v2718_v28  ;;  %v2646_v37 = vld [vmem:[%s5812_s2 + $0x2c0] sm:$0xf]  ;;  %v2583_v44 = vor.u32 %v3798_v36, %v2582_v35 }
  0x17   : > { %820 = vmatpush.bf16.msra.mxu2 %v2727_v21  ;;  %v2783_v38 = vor.u32 %v3848_v32, %v2782_v31  ;;  %v3814_v39 = vld [vmem:[%s5812_s2 + $0x2c4] sm:$0xf0]  ;;  %v2710_v40 = vld [vmem:[%s5812_s2 + $0x340] sm:$0xf]  ;;  %v2574_v47 = vld [vmem:[%s5812_s2 + $0x230] sm:$0xf] }
  0x18   : > { %833 = vmatpush.bf16.msra.mxu3 %v2791_v25  ;;  %v3830_v41 = vld [vmem:[%s5812_s2 + $0x344] sm:$0xf0]  ;;  %v2774_v42 = vld [vmem:[%s5812_s2 + $0x3c0] sm:$0xf]  ;;  %v2647_v45 = vor.u32 %v3814_v39, %v2646_v37  ;;  %v3796_v48 = vld [vmem:[%s5812_s2 + $0x234] sm:$0xf0] }
  0x19   : > { %v3846_v43 = vld [vmem:[%s5812_s2 + $0x3c4] sm:$0xf0]  ;;  %795 = vmatpush.bf16.msra.mxu0 %v2591_v29  ;;  %v2711_v46 = vor.u32 %v3830_v41, %v2710_v40  ;;  %v2638_v49 = vld [vmem:[%s5812_s2 + $0x2b0] sm:$0xf]  ;;  %v3812_v51 = vld [vmem:[%s5812_s2 + $0x2b4] sm:$0xf0]  ;;  %v2575_v56 = vor.u32 %v3796_v48, %v2574_v47 }
  0x1a   : > { %808 = vmatpush.bf16.msra.mxu1 %v2655_v33  ;;  %v2775_v50 = vor.u32 %v3846_v43, %v2774_v42  ;;  %v2702_v52 = vld [vmem:[%s5812_s2 + $0x330] sm:$0xf]  ;;  %v3828_v53 = vld [vmem:[%s5812_s2 + $0x334] sm:$0xf0]  ;;  %v2639_v57 = vor.u32 %v3812_v51, %v2638_v49  ;;  %v2566_v59 = vld [vmem:[%s5812_s2 + $0x220] sm:$0xf] }
  0x1b   : > { %821 = vmatpush.bf16.msra.mxu2 %v2719_v34  ;;  %v2766_v54 = vld [vmem:[%s5812_s2 + $0x3b0] sm:$0xf]  ;;  %v3844_v55 = vld [vmem:[%s5812_s2 + $0x3b4] sm:$0xf0]  ;;  %v2703_v58 = vor.u32 %v3828_v53, %v2702_v52  ;;  %v3794_v60 = vld [vmem:[%s5812_s2 + $0x224] sm:$0xf0] }
  0x1c   : > { %834 = vmatpush.bf16.msra.mxu3 %v2783_v38  ;;  %v2630_v61 = vld [vmem:[%s5812_s2 + $0x2a0] sm:$0xf]  ;;  %v2767_v62 = vor.u32 %v3844_v55, %v2766_v54  ;;  %v3810_v63 = vld [vmem:[%s5812_s2 + $0x2a4] sm:$0xf0]  ;;  %v2567_v4 = vor.u32 %v3794_v60, %v2566_v59  ;;  %v2558_v7 = vld [vmem:[%s5812_s2 + $0x210] sm:$0xf] }
  0x1d   : > { %796 = vmatpush.bf16.msra.mxu0 %v2583_v44  ;;  %v2694_v0 = vld [vmem:[%s5812_s2 + $0x320] sm:$0xf]  ;;  %v3826_v1 = vld [vmem:[%s5812_s2 + $0x324] sm:$0xf0]  ;;  %v2631_v5 = vor.u32 %v3810_v63, %v2630_v61  ;;  %v3792_v8 = vld [vmem:[%s5812_s2 + $0x214] sm:$0xf0] }
  0x1e   : > { %809 = vmatpush.bf16.msra.mxu1 %v2647_v45  ;;  %v2758_v2 = vld [vmem:[%s5812_s2 + $0x3a0] sm:$0xf]  ;;  %v3842_v3 = vld [vmem:[%s5812_s2 + $0x3a4] sm:$0xf0]  ;;  %v2695_v6 = vor.u32 %v3826_v1, %v2694_v0  ;;  %v2622_v9 = vld [vmem:[%s5812_s2 + $0x290] sm:$0xf]  ;;  %v2559_v16 = vor.u32 %v3792_v8, %v2558_v7 }
  0x1f   : > { %822 = vmatpush.bf16.msra.mxu2 %v2711_v46  ;;  %v2759_v10 = vor.u32 %v3842_v3, %v2758_v2  ;;  %v3808_v11 = vld [vmem:[%s5812_s2 + $0x294] sm:$0xf0]  ;;  %v2686_v12 = vld [vmem:[%s5812_s2 + $0x310] sm:$0xf]  ;;  %v2550_v17 = vld [vmem:[%s5812_s2 + $0x200] sm:$0xf] }
  0x20   : > { %835 = vmatpush.bf16.msra.mxu3 %v2775_v50  ;;  %v3824_v13 = vld [vmem:[%s5812_s2 + $0x314] sm:$0xf0]  ;;  %v2750_v14 = vld [vmem:[%s5812_s2 + $0x390] sm:$0xf]  ;;  %v3790_v18 = vld [vmem:[%s5812_s2 + $0x204] sm:$0xf0]  ;;  %v2623_v19 = vor.u32 %v3808_v11, %v2622_v9 }
  0x21   : > { %797 = vmatpush.bf16.msra.mxu0 %v2575_v56  ;;  %v3840_v15 = vld [vmem:[%s5812_s2 + $0x394] sm:$0xf0]  ;;  %v2687_v20 = vor.u32 %v3824_v13, %v2686_v12  ;;  %v2614_v21 = vld [vmem:[%s5812_s2 + $0x280] sm:$0xf]  ;;  %v3806_v22 = vld [vmem:[%s5812_s2 + $0x284] sm:$0xf0]  ;;  %v2551_v31 = vor.u32 %v3790_v18, %v2550_v17 }
  0x22   : > { %810 = vmatpush.bf16.msra.mxu1 %v2639_v57  ;;  %v2678_v23 = vld [vmem:[%s5812_s2 + $0x300] sm:$0xf]  ;;  %v2751_v24 = vor.u32 %v3840_v15, %v2750_v14  ;;  %v3822_v25 = vld [vmem:[%s5812_s2 + $0x304] sm:$0xf0]  ;;  %v3803_v28 = vld [vmem:[%s5812_s2 + $0x274] sm:$0xf]  ;;  %v2615_v35 = vor.u32 %v3806_v22, %v2614_v21 }
  0x23   : > { %823 = vmatpush.bf16.msra.mxu2 %v2703_v58  ;;  %v2742_v26 = vld [vmem:[%s5812_s2 + $0x380] sm:$0xf]  ;;  %v3838_v27 = vld [vmem:[%s5812_s2 + $0x384] sm:$0xf0]  ;;  %v2608_v29 = vld [vmem:[%s5812_s2 + $0x278] sm:$0xf0]  ;;  %v2679_v36 = vor.u32 %v3822_v25, %v2678_v23 }
  0x24   : > { %836 = vmatpush.bf16.msra.mxu3 %v2767_v62  ;;  %v3819_v30 = vld [vmem:[%s5812_s2 + $0x2f4] sm:$0xf]  ;;  %v2672_v32 = vld [vmem:[%s5812_s2 + $0x2f8] sm:$0xf0]  ;;  %v2743_v39 = vor.u32 %v3838_v27, %v2742_v26  ;;  %v2611_v40 = vor.u32 %v3803_v28, %v2608_v29  ;;  %v3801_v43 = vld [vmem:[%s5812_s2 + $0x264] sm:$0xf] }
  0x25   : > { %798 = vmatpush.bf16.msra.mxu0 %v2567_v4  ;;  %v3835_v33 = vld [vmem:[%s5812_s2 + $0x374] sm:$0xf]  ;;  %v2736_v34 = vld [vmem:[%s5812_s2 + $0x378] sm:$0xf0]  ;;  %v2675_v41 = vor.u32 %v3819_v30, %v2672_v32  ;;  %v2600_v44 = vld [vmem:[%s5812_s2 + $0x268] sm:$0xf0] }
  0x26   : > { %811 = vmatpush.bf16.msra.mxu1 %v2631_v5  ;;  %v3851_v37 = vld [vmem:[%s5812_s2 + $0x3f4] sm:$0xf]  ;;  %v2800_v38 = vld [vmem:[%s5812_s2 + $0x3f8] sm:$0xf0]  ;;  %v2739_v42 = vor.u32 %v3835_v33, %v2736_v34  ;;  %v3817_v45 = vld [vmem:[%s5812_s2 + $0x2e4] sm:$0xf]  ;;  %v2603_v52 = vor.u32 %v3801_v43, %v2600_v44 }
  0x27   : > { %824 = vmatpush.bf16.msra.mxu2 %v2695_v6  ;;  %v2803_v46 = vor.u32 %v3851_v37, %v2800_v38  ;;  %v2664_v47 = vld [vmem:[%s5812_s2 + $0x2e8] sm:$0xf0]  ;;  %v3833_v48 = vld [vmem:[%s5812_s2 + $0x364] sm:$0xf]  ;;  %v3799_v55 = vld [vmem:[%s5812_s2 + $0x254] sm:$0xf] }
  0x28   : > { %837 = vmatpush.bf16.msra.mxu3 %v2759_v10  ;;  %v2728_v49 = vld [vmem:[%s5812_s2 + $0x368] sm:$0xf0]  ;;  %v3849_v50 = vld [vmem:[%s5812_s2 + $0x3e4] sm:$0xf]  ;;  %v2667_v53 = vor.u32 %v3817_v45, %v2664_v47  ;;  %v2592_v56 = vld [vmem:[%s5812_s2 + $0x258] sm:$0xf0] }
  0x29   : > { %799 = vmatpush.bf16.msra.mxu0 %v2559_v16  ;;  %v2792_v51 = vld [vmem:[%s5812_s2 + $0x3e8] sm:$0xf0]  ;;  %v2731_v54 = vor.u32 %v3833_v48, %v2728_v49  ;;  %v3815_v57 = vld [vmem:[%s5812_s2 + $0x2d4] sm:$0xf]  ;;  %v2656_v59 = vld [vmem:[%s5812_s2 + $0x2d8] sm:$0xf0]  ;;  %v2595_v0 = vor.u32 %v3799_v55, %v2592_v56 }
  0x2a   : > { %812 = vmatpush.bf16.msra.mxu1 %v2623_v19  ;;  %v2795_v58 = vor.u32 %v3849_v50, %v2792_v51  ;;  %v3831_v60 = vld [vmem:[%s5812_s2 + $0x354] sm:$0xf]  ;;  %v2720_v61 = vld [vmem:[%s5812_s2 + $0x358] sm:$0xf0]  ;;  %v2659_v1 = vor.u32 %v3815_v57, %v2656_v59  ;;  %v3797_v3 = vld [vmem:[%s5812_s2 + $0x244] sm:$0xf] }
  0x2b   : > { %825 = vmatpush.bf16.msra.mxu2 %v2687_v20  ;;  %v3847_v62 = vld [vmem:[%s5812_s2 + $0x3d4] sm:$0xf]  ;;  %v2784_v63 = vld [vmem:[%s5812_s2 + $0x3d8] sm:$0xf0]  ;;  %v2723_v2 = vor.u32 %v3831_v60, %v2720_v61  ;;  %v2584_v4 = vld [vmem:[%s5812_s2 + $0x248] sm:$0xf0] }
  0x2c   : > { %838 = vmatpush.bf16.msra.mxu3 %v2751_v24  ;;  %v3813_v5 = vld [vmem:[%s5812_s2 + $0x2c4] sm:$0xf]  ;;  %v2787_v6 = vor.u32 %v3847_v62, %v2784_v63  ;;  %v2648_v7 = vld [vmem:[%s5812_s2 + $0x2c8] sm:$0xf0]  ;;  %v2587_v12 = vor.u32 %v3797_v3, %v2584_v4  ;;  %v3795_v13 = vld [vmem:[%s5812_s2 + $0x234] sm:$0xf] }
  0x2d   : > { %800 = vmatpush.bf16.msra.mxu0 %v2551_v31  ;;  %v3829_v8 = vld [vmem:[%s5812_s2 + $0x344] sm:$0xf]  ;;  %v2712_v9 = vld [vmem:[%s5812_s2 + $0x348] sm:$0xf0]  ;;  %v2576_v14 = vld [vmem:[%s5812_s2 + $0x238] sm:$0xf0]  ;;  %v2651_v16 = vor.u32 %v3813_v5, %v2648_v7 }
  0x2e   : > { %813 = vmatpush.bf16.msra.mxu1 %v2615_v35  ;;  %v3845_v10 = vld [vmem:[%s5812_s2 + $0x3c4] sm:$0xf]  ;;  %v2776_v11 = vld [vmem:[%s5812_s2 + $0x3c8] sm:$0xf0]  ;;  %v3811_v15 = vld [vmem:[%s5812_s2 + $0x2b4] sm:$0xf]  ;;  %v2715_v17 = vor.u32 %v3829_v8, %v2712_v9  ;;  %v2579_v25 = vor.u32 %v3795_v13, %v2576_v14 }
  0x2f   : > { %826 = vmatpush.bf16.msra.mxu2 %v2679_v36  ;;  %v2640_v18 = vld [vmem:[%s5812_s2 + $0x2b8] sm:$0xf0]  ;;  %v3827_v19 = vld [vmem:[%s5812_s2 + $0x334] sm:$0xf]  ;;  %s5826_s22 = smov (!%p248_p5, %s247_s22), 5  ;;  %v2779_v20 = vor.u32 %v3845_v10, %v2776_v11  ;;  %s5828_s23 = smov (!%p258_p6, %s257_s23), 5 }
  0x30   : > { %839 = vmatpush.bf16.msra.mxu3 %v2743_v39  ;;  %v2704_v21 = vld [vmem:[%s5812_s2 + $0x338] sm:$0xf0]  ;;  %v3843_v22 = vld [vmem:[%s5812_s2 + $0x3b4] sm:$0xf]  ;;  %v3793_v24 = vld [vmem:[%s5812_s2 + $0x224] sm:$0xf]  ;;  %v2643_v28 = vor.u32 %v3811_v15, %v2640_v18 }
  0x31   : > { %845 = vmatpush.bf16.msrb.mxu0 %v2611_v40  ;;  %v2768_v23 = vld [vmem:[%s5812_s2 + $0x3b8] sm:$0xf0]  ;;  %s3718_s5 = sshll.u32 %s5826_s22, 4  ;;  %v2568_v26 = vld [vmem:[%s5812_s2 + $0x228] sm:$0xf0]  ;;  %s3719_s11 = sshll.u32 %s5828_s23, 4  ;;  %v2707_v29 = vor.u32 %v3827_v19, %v2704_v21 }
  0x32   : > { %858 = vmatpush.bf16.msrb.mxu1 %v2675_v41  ;;  %v3809_v27 = vld [vmem:[%s5812_s2 + $0x2a4] sm:$0xf]  ;;  %s252_s10 = scalar_lea.vmem %s5810_s0, %s3718_s5  ;;  %v2632_v30 = vld [vmem:[%s5812_s2 + $0x2a8] sm:$0xf0]  ;;  %s262_s26 = scalar_lea.vmem %s5811_s1, %s3719_s11  ;;  %v2771_v33 = vor.u32 %v3843_v22, %v2768_v23  ;;  %v2571_v40 = vor.u32 %v3793_v24, %v2568_v26  ;;  %v3791_v41 = vld [vmem:[%s5812_s2 + $0x214] sm:$0xf] }
  0x33   : > { %871 = vmatpush.bf16.msrb.mxu2 %v2739_v42  ;;  %v3825_v31 = vld [vmem:[%s5812_s2 + $0x324] sm:$0xf]  ;;  %v277_v32 = vld [vmem:[%s252_s10 + $0x8] sm:$0xff]  ;;  %v2635_v42 = vor.u32 %v3809_v27, %v2632_v30  ;;  %v2560_v44 = vld [vmem:[%s5812_s2 + $0x218] sm:$0xf0]  ;;  %p268_p7 = scmp.lt.s32.totalorder %s267_s9, 3 }
  0x34   : > { %884 = vmatpush.bf16.msrb.mxu3 %v2803_v46  ;;  %v2696_v34 = vld [vmem:[%s5812_s2 + $0x328] sm:$0xf0]  ;;  %v4464_v36 = vld [vmem:[%s262_s26] sm:$0xff]  ;;  %v3807_v45 = vld [vmem:[%s5812_s2 + $0x294] sm:$0xf]  ;;  %v4507_v56 = vunpack.c.l.b16 %v277_v32  ;;  %v4509_v57 = vunpack.c.h.b16 %v277_v32 }
  0x35   : > { %846 = vmatpush.bf16.msrb.mxu0 %v2603_v52  ;;  %v4462_v35 = vld [vmem:[%s262_s26 + $0x8] sm:$0xff]  ;;  %v3841_v37 = vld [vmem:[%s5812_s2 + $0x3a4] sm:$0xf]  ;;  %v2699_v43 = vor.u32 %v3825_v31, %v2696_v34  ;;  %282 = vst [vmem:[#allocation2 + $0x10] sm:$0xff] %v4464_v36  ;;  %v2624_v47 = vld [vmem:[%s5812_s2 + $0x298] sm:$0xf0]  ;;  %v2563_v52 = vor.u32 %v3791_v41, %v2560_v44 }
  0x36   : > { %859 = vmatpush.bf16.msrb.mxu1 %v2667_v53  ;;  %v2760_v38 = vld [vmem:[%s5812_s2 + $0x3a8] sm:$0xf0]  ;;  %283 = vst [vmem:[#allocation2 + $0x18] sm:$0xff] %v4462_v35  ;;  %v276_v39 = vld [vmem:[%s252_s10] sm:$0xff]  ;;  %v3823_v48 = vld [vmem:[%s5812_s2 + $0x314] sm:$0xf] }
  0x37   : > { %872 = vmatpush.bf16.msrb.mxu2 %v2731_v54  ;;  %v2763_v46 = vor.u32 %v3841_v37, %v2760_v38  ;;  %v2688_v49 = vld [vmem:[%s5812_s2 + $0x318] sm:$0xf0]  ;;  %v3839_v50 = vld [vmem:[%s5812_s2 + $0x394] sm:$0xf]  ;;  %v3789_v53 = vld [vmem:[%s5812_s2 + $0x204] sm:$0xf]  ;;  %v4526_v7 = vunpack.c.l.b16 %v276_v39  ;;  %v4528_v8 = vunpack.c.h.b16 %v276_v39 }
  0x38   : > { %885 = vmatpush.bf16.msrb.mxu3 %v2795_v58  ;;  %v2752_v51 = vld [vmem:[%s5812_s2 + $0x398] sm:$0xf0]  ;;  %v2552_v54 = vld [vmem:[%s5812_s2 + $0x208] sm:$0xf0]  ;;  %v3805_v55 = vld [vmem:[%s5812_s2 + $0x284] sm:$0xf]  ;;  %v2627_v58 = vor.u32 %v3807_v45, %v2624_v47  ;;  %v2691_v59 = vor.u32 %v3823_v48, %v2688_v49 }
  0x39   : > { %847 = vmatpush.bf16.msrb.mxu0 %v2595_v0  ;;  %v2616_v60 = vld [vmem:[%s5812_s2 + $0x288] sm:$0xf0]  ;;  %v3821_v61 = vld [vmem:[%s5812_s2 + $0x304] sm:$0xf]  ;;  %v2755_v0 = vor.u32 %v3839_v50, %v2752_v51  ;;  %v2555_v3 = vor.u32 %v3789_v53, %v2552_v54  ;;  %v2990_v15 = vld [vmem:[%s5812_s2 + $0x170] sm:$0xf] }
  0x3a   : > { %860 = vmatpush.bf16.msrb.mxu1 %v2659_v1  ;;  %v2680_v62 = vld [vmem:[%s5812_s2 + $0x308] sm:$0xf0]  ;;  %v3837_v4 = vld [vmem:[%s5812_s2 + $0x384] sm:$0xf]  ;;  %v2619_v9 = vor.u32 %v3805_v55, %v2616_v60  ;;  %v3054_v18 = vld [vmem:[%s5812_s2 + $0x1f0] sm:$0xf] }
  0x3b   : > { %873 = vmatpush.bf16.msrb.mxu2 %v2723_v2  ;;  %v2744_v5 = vld [vmem:[%s5812_s2 + $0x388] sm:$0xf0]  ;;  %v2683_v10 = vor.u32 %v3821_v61, %v2680_v62  ;;  %v3788_v19 = vld [vmem:[%s5812_s2 + $0x1f4] sm:$0xf0]  ;;  %v2862_v26 = vld [vmem:[%s5812_s2 + $0x70] sm:$0xf] }
  0x3c   : > { %886 = vmatpush.bf16.msrb.mxu3 %v2787_v6  ;;  %v288_v6 = vld [vmem:[#allocation2 + $0x10] sm:$0x11]  ;;  %v3740_v27 = vld [vmem:[%s5812_s2 + $0x74] sm:$0xf0]  ;;  %v2982_v34 = vld [vmem:[%s5812_s2 + $0x160] sm:$0xf] }
  0x3d   : > { %848 = vmatpush.bf16.msrb.mxu0 %v2587_v12  ;;  %v289_v63 = vld [vmem:[#allocation2 + $0x18] sm:$0x11]  ;;  %v433_v13 = vunpack.c.l.b16 %v288_v6  ;;  %v434_v14 = vunpack.c.h.b16 %v288_v6  ;;  %v3770_v41 = vld [vmem:[%s5812_s2 + $0x164] sm:$0xf0]  ;;  %v3046_v44 = vld [vmem:[%s5812_s2 + $0x1e0] sm:$0xf]  ;;  %v2863_v48 = vor.u32 %v3740_v27, %v2862_v26 }
  0x3e   : > { %861 = vmatpush.bf16.msrb.mxu1 %v2651_v16  ;;  %v435_v1 = vunpack.c.l.b16 %v289_v63  ;;  %v436_v2 = vunpack.c.h.b16 %v289_v63  ;;  %v2747_v16 = vor.u32 %v3837_v4, %v2744_v5  ;;  %v3756_v31 = vld [vmem:[%s5812_s2 + $0xf4] sm:$0xf0]  ;;  %v3786_v45 = vld [vmem:[%s5812_s2 + $0x1e4] sm:$0xf0]  ;;  %v2854_v50 = vld [vmem:[%s5812_s2 + $0x60] sm:$0xf] }
  0x3f   : > { %874 = vmatpush.bf16.msrb.mxu2 %v2715_v17  ;;  %v3772_v17 = vld [vmem:[%s5812_s2 + $0x174] sm:$0xf0]  ;;  %v437_v24 = vpack.c.b16 %v433_v13, %v4526_v7  ;;  %v3738_v51 = vld [vmem:[%s5812_s2 + $0x64] sm:$0xf0]  ;;  %v2918_v55 = vld [vmem:[%s5812_s2 + $0xe0] sm:$0xf] }
  0x40   : > { %887 = vmatpush.bf16.msrb.mxu3 %v2779_v20  ;;  %v439_v11 = vpack.c.b16 %v435_v1, %v4507_v56  ;;  %v440_v12 = vpack.c.b16 %v436_v2, %v4509_v57  ;;  %v2991_v32 = vor.u32 %v3772_v17, %v2990_v15  ;;  %v2974_v60 = vld [vmem:[%s5812_s2 + $0x150] sm:$0xf]  ;;  %v3768_v61 = vld [vmem:[%s5812_s2 + $0x154] sm:$0xf0]  ;;  %v3782_v13 = vld [vmem:[%s5812_s2 + $0x1c4] sm:$0xf0] }
  0x41   : > { %849 = vmatpush.bf16.msrb.mxu0 %v2579_v25  ;;  %v438_v25 = vpack.c.b16 %v434_v14, %v4528_v8  ;;  %v442_v37 = vshrl.u32 %v437_v24, 16  ;;  %v444_v38 = vshll.u32 %v437_v24, 16  ;;  %v3038_v62 = vld [vmem:[%s5812_s2 + $0x1d0] sm:$0xf]  ;;  %v3784_v63 = vld [vmem:[%s5812_s2 + $0x1d4] sm:$0xf0]  ;;  %v2975_v6 = vor.u32 %v3768_v61, %v2974_v60 }
  0x42   : > { %862 = vmatpush.bf16.msrb.mxu1 %v2643_v28  ;;  %v456_v20 = vshrl.u32 %v439_v11, 16  ;;  %v458_v21 = vshll.u32 %v439_v11, 16  ;;  %v463_v22 = vshrl.u32 %v440_v12, 16  ;;  %v465_v23 = vshll.u32 %v440_v12, 16  ;;  %v2926_v28 = vld [vmem:[%s5812_s2 + $0xf0] sm:$0xf] }
  0x43   : > { %875 = vmatpush.bf16.msrb.mxu2 %v2707_v29  ;;  %v449_v39 = vshrl.u32 %v438_v25, 16  ;;  %v2927_v49 = vor.u32 %v3756_v31, %v2926_v28  ;;  %v2846_v2 = vld [vmem:[%s5812_s2 + $0x50] sm:$0xf]  ;;  %v3752_v5 = vld [vmem:[%s5812_s2 + $0xd4] sm:$0xf0]  ;;  %s5830_s9 = smov (!%p268_p7, %s267_s9), 3 }
  0x44   : > { %888 = vmatpush.bf16.msrb.mxu3 %v2771_v33  ;;  %v460_v29 = vrot.slane %v458_v21, 1  ;;  %v467_v30 = vrot.slane %v465_v23, 1  ;;  %v3055_v33 = vor.u32 %v3788_v19, %v3054_v18  ;;  %v2910_v4 = vld [vmem:[%s5812_s2 + $0xd0] sm:$0xf]  ;;  %v3766_v11 = vld [vmem:[%s5812_s2 + $0x144] sm:$0xf0] }
  0x45   : > { %850 = vmatpush.bf16.msrb.mxu0 %v2571_v40  ;;  %v451_v40 = vshll.u32 %v438_v25, 16  ;;  %v3030_v12 = vld [vmem:[%s5812_s2 + $0x1c0] sm:$0xf]  ;;  %v2911_v15 = vor.u32 %v3752_v5, %v2910_v4  ;;  %v3734_v17 = vld [vmem:[%s5812_s2 + $0x44] sm:$0xf0]  ;;  %s3720_s15 = sshll.u32 %s5830_s9, 3 }
  0x46   : > { %863 = vmatpush.bf16.msrb.mxu1 %v2635_v42  ;;  %v4564_v42 = vor.u32 %v460_v29, %v456_v20  ;;  %v2902_v18 = vld [vmem:[%s5812_s2 + $0xc0] sm:$0xf]  ;;  %v3750_v19 = vld [vmem:[%s5812_s2 + $0xc4] sm:$0xf0]  ;;  %v3031_v21 = vor.u32 %v3782_v13, %v3030_v12  ;;  %v3780_v23 = vld [vmem:[%s5812_s2 + $0x1b4] sm:$0xf0]  ;;  %s272_s12 = scalar_lea.vmem %s5814_s4, %s3720_s15 }
  0x47   : > { %876 = vmatpush.bf16.msrb.mxu2 %v2699_v43  ;;  %v4566_v43 = vor.u32 %v467_v30, %v463_v22  ;;  %v453_v47 = vrot.slane %v451_v40, 1  ;;  %v3022_v22 = vld [vmem:[%s5812_s2 + $0x1b0] sm:$0xf]  ;;  %v3764_v25 = vld [vmem:[%s5812_s2 + $0x134] sm:$0xf0]  ;;  %v2903_v27 = vor.u32 %v3750_v19, %v2902_v18 }
  0x48   : > { %889 = vmatpush.bf16.msrb.mxu3 %v2763_v46  ;;  %v446_v46 = vrot.slane %v444_v38, 1  ;;  %827 = vmatmul.bf16.vlgmr.msra.gmra.mxu2 %v4564_v42  ;;  %v2958_v24 = vld [vmem:[%s5812_s2 + $0x130] sm:$0xf]  ;;  %v3732_v29 = vld [vmem:[%s5812_s2 + $0x34] sm:$0xf0] }
  0x49   : > { %851 = vmatpush.bf16.msrb.mxu0 %v2563_v52  ;;  %840 = vmatmul.bf16.vlgmr.msra.gmra.mxu3 %v4566_v43  ;;  %v2983_v52 = vor.u32 %v3770_v41, %v2982_v34  ;;  %v4584_v54 = vor.u32 %v453_v47, %v449_v39  ;;  %v2830_v28 = vld [vmem:[%s5812_s2 + $0x30] sm:$0xf]  ;;  %v3748_v31 = vld [vmem:[%s5812_s2 + $0xb4] sm:$0xf0]  ;;  %v3014_v34 = vld [vmem:[%s5812_s2 + $0x1a0] sm:$0xf] }
  0x4a   : > { %864 = vmatpush.bf16.msrb.mxu1 %v2627_v58  ;;  %v4582_v53 = vor.u32 %v446_v46, %v442_v37  ;;  %v3754_v58 = vld [vmem:[%s5812_s2 + $0xe4] sm:$0xf0]  ;;  %v2894_v30 = vld [vmem:[%s5812_s2 + $0xb0] sm:$0xf]  ;;  %v2950_v38 = vld [vmem:[%s5812_s2 + $0x120] sm:$0xf]  ;;  %v2831_v40 = vor.u32 %v3732_v29, %v2830_v28 }
  0x4b   : > { %877 = vmatpush.bf16.msrb.mxu2 %v2691_v59  ;;  %v3047_v59 = vor.u32 %v3786_v45, %v3046_v44  ;;  %814 = vmatmul.bf16.vlgmr.msra.gmra.mxu1 %v4584_v54  ;;  %v2919_v1 = vor.u32 %v3754_v58, %v2918_v55  ;;  %v3778_v37 = vld [vmem:[%s5812_s2 + $0x1a4] sm:$0xf0]  ;;  %v2895_v41 = vor.u32 %v3748_v31, %v2894_v30  ;;  %v2822_v44 = vld [vmem:[%s5812_s2 + $0x20] sm:$0xf]  ;;  %v2814_v58 = vld [vmem:[%s5812_s2 + $0x10] sm:$0xf] }
  0x4c   : > { %890 = vmatpush.bf16.msrb.mxu3 %v2755_v0  ;;  %801 = vmatmul.bf16.vlgmr.msra.gmra.mxu0 %v4582_v53  ;;  %v2855_v0 = vor.u32 %v3738_v51, %v2854_v50  ;;  %v3762_v39 = vld [vmem:[%s5812_s2 + $0x124] sm:$0xf0]  ;;  %v2886_v46 = vld [vmem:[%s5812_s2 + $0xa0] sm:$0xf]  ;;  %v3776_v50 = vld [vmem:[%s5812_s2 + $0x194] sm:$0xf0]  ;;  %v4783_v31 = vpack.c.b16 %v4507_v56, %v4507_v56  ;;  %v4800_v56 = vpack.c.b16 %v4526_v7, %v4526_v7 }
  0x4d   : > { %852 = vmatpush.bf16.msrb.mxu0 %v2555_v3  ;;  %v3736_v3 = vld [vmem:[%s5812_s2 + $0x54] sm:$0xf0]  ;;  %v3730_v45 = vld [vmem:[%s5812_s2 + $0x24] sm:$0xf0]  ;;  %v2942_v51 = vld [vmem:[%s5812_s2 + $0x110] sm:$0xf] }
  0x4e   : > { %865 = vmatpush.bf16.msrb.mxu1 %v2619_v9  ;;  %v3039_v9 = vor.u32 %v3784_v63, %v3038_v62  ;;  %v2847_v14 = vor.u32 %v3736_v3, %v2846_v2  ;;  %v3746_v47 = vld [vmem:[%s5812_s2 + $0xa4] sm:$0xf0]  ;;  %v2934_v62 = vld [vmem:[%s5812_s2 + $0x100] sm:$0xf]  ;;  %v3787_v3 = vld [vmem:[%s5812_s2 + $0x1f4] sm:$0xf] }
  0x4f   : > { %878 = vmatpush.bf16.msrb.mxu2 %v2683_v10  ;;  %v2966_v10 = vld [vmem:[%s5812_s2 + $0x140] sm:$0xf]  ;;  %v2887_v55 = vor.u32 %v3746_v47, %v2886_v46  ;;  %v3758_v2 = vld [vmem:[%s5812_s2 + $0x104] sm:$0xf0]  ;;  %v3056_v4 = vld [vmem:[%s5812_s2 + $0x1f8] sm:$0xf0] }
  0x50   : > { %891 = vmatpush.bf16.msrb.mxu3 %v2747_v16  ;;  %v2838_v16 = vld [vmem:[%s5812_s2 + $0x40] sm:$0xf]  ;;  %v2967_v20 = vor.u32 %v3766_v11, %v2966_v10  ;;  %v3771_v10 = vld [vmem:[%s5812_s2 + $0x174] sm:$0xf]  ;;  %v2992_v11 = vld [vmem:[%s5812_s2 + $0x178] sm:$0xf0] }
  0x51   : > { %1225 = vmatpush.bf16.msra.mxu0 %v2863_v48  ;;  %v2839_v26 = vor.u32 %v3734_v17, %v2838_v16  ;;  %v3015_v48 = vor.u32 %v3778_v37, %v3014_v34  ;;  %v2998_v63 = vld [vmem:[%s5812_s2 + $0x180] sm:$0xf]  ;;  %v3742_v13 = vld [vmem:[%s5812_s2 + $0x84] sm:$0xf0]  ;;  %v2935_v16 = vor.u32 %v3758_v2, %v2934_v62  ;;  %v2864_v17 = vld [vmem:[%s5812_s2 + $0x78] sm:$0xf0] }
  0x52   : > { %1238 = vmatpush.bf16.msra.mxu1 %v2927_v49  ;;  %v2951_v49 = vor.u32 %v3762_v39, %v2950_v38  ;;  %v2870_v12 = vld [vmem:[%s5812_s2 + $0x80] sm:$0xf]  ;;  %v3755_v18 = vld [vmem:[%s5812_s2 + $0xf4] sm:$0xf]  ;;  %v2928_v19 = vld [vmem:[%s5812_s2 + $0xf8] sm:$0xf0] }
  0x53   : > { %1251 = vmatpush.bf16.msra.mxu2 %v2991_v32  ;;  %v3023_v32 = vor.u32 %v3780_v23, %v3022_v22  ;;  %v2871_v23 = vor.u32 %v3742_v13, %v2870_v12  ;;  %v2984_v28 = vld [vmem:[%s5812_s2 + $0x168] sm:$0xf0]  ;;  %v3785_v29 = vld [vmem:[%s5812_s2 + $0x1e4] sm:$0xf]  ;;  %v3040_v46 = vld [vmem:[%s5812_s2 + $0x1d8] sm:$0xf0] }
  0x54   : > { %1264 = vmatpush.bf16.msra.mxu3 %v3055_v33  ;;  %v2959_v33 = vor.u32 %v3764_v25, %v2958_v24  ;;  %v3737_v24 = vld [vmem:[%s5812_s2 + $0x64] sm:$0xf]  ;;  %v3048_v30 = vld [vmem:[%s5812_s2 + $0x1e8] sm:$0xf0]  ;;  %v2848_v47 = vld [vmem:[%s5812_s2 + $0x58] sm:$0xf0] }
  0x55   : > { %1226 = vmatpush.bf16.msra.mxu0 %v2855_v0  ;;  %v3774_v0 = vld [vmem:[%s5812_s2 + $0x184] sm:$0xf0]  ;;  %v3769_v25 = vld [vmem:[%s5812_s2 + $0x164] sm:$0xf]  ;;  %v2920_v37 = vld [vmem:[%s5812_s2 + $0xe8] sm:$0xf0]  ;;  %v3051_v39 = vor.u32 %v3785_v29, %v3048_v30 }
  0x56   : > { %1239 = vmatpush.bf16.msra.mxu1 %v2919_v1  ;;  %v2806_v1 = vld [vmem:[%s5812_s2] sm:$0xf]  ;;  %v3753_v34 = vld [vmem:[%s5812_s2 + $0xe4] sm:$0xf]  ;;  %v2987_v38 = vor.u32 %v3769_v25, %v2984_v28  ;;  %v2944_v30 = vld [vmem:[%s5812_s2 + $0x118] sm:$0xf0] }
  0x57   : > { %1252 = vmatpush.bf16.msra.mxu2 %v2983_v52  ;;  %v2823_v52 = vor.u32 %v3730_v45, %v2822_v44  ;;  %v2923_v44 = vor.u32 %v3753_v34, %v2920_v37  ;;  %v3783_v45 = vld [vmem:[%s5812_s2 + $0x1d4] sm:$0xf]  ;;  %v3008_v34 = vld [vmem:[%s5812_s2 + $0x198] sm:$0xf0] }
  0x58   : > { %1265 = vmatpush.bf16.msra.mxu3 %v3047_v59  ;;  %879 = vmatmul.bf16.vlgmr.msrb.gmra.mxu2 %v4564_v42  ;;  %v3006_v42 = vld [vmem:[%s5812_s2 + $0x190] sm:$0xf]  ;;  %v3744_v59 = vld [vmem:[%s5812_s2 + $0x94] sm:$0xf0]  ;;  %v2816_v37 = vld [vmem:[%s5812_s2 + $0x18] sm:$0xf0] }
  0x59   : > { %1227 = vmatpush.bf16.msra.mxu0 %v2847_v14  ;;  %892 = vmatmul.bf16.vlgmr.msrb.gmra.mxu3 %v4566_v43  ;;  %v3760_v43 = vld [vmem:[%s5812_s2 + $0x114] sm:$0xf0]  ;;  %v3007_v60 = vor.u32 %v3776_v50, %v3006_v42  ;;  %v2999_v14 = vor.u32 %v3774_v0, %v2998_v63  ;;  %v3043_v50 = vor.u32 %v3783_v45, %v3040_v46  ;;  %v3731_v0 = vld [vmem:[%s5812_s2 + $0x34] sm:$0xf]  ;;  %v3757_v45 = vld [vmem:[%s5812_s2 + $0x104] sm:$0xf] }
  0x5a   : > { %1240 = vmatpush.bf16.msra.mxu1 %v2911_v15  ;;  %v2943_v61 = vor.u32 %v3760_v43, %v2942_v51  ;;  %v3739_v15 = vld [vmem:[%s5812_s2 + $0x74] sm:$0xf]  ;;  %v3733_v51 = vld [vmem:[%s5812_s2 + $0x44] sm:$0xf] }
  0x5b   : > { %1253 = vmatpush.bf16.msra.mxu2 %v2975_v6  ;;  %866 = vmatmul.bf16.vlgmr.msrb.gmra.mxu1 %v4584_v54  ;;  %v2878_v54 = vld [vmem:[%s5812_s2 + $0x90] sm:$0xf]  ;;  %v3765_v43 = vld [vmem:[%s5812_s2 + $0x144] sm:$0xf] }
  0x5c   : > { %1266 = vmatpush.bf16.msra.mxu3 %v3039_v9  ;;  %853 = vmatmul.bf16.vlgmr.msrb.gmra.mxu0 %v4582_v53  ;;  %v3728_v53 = vld [vmem:[%s5812_s2 + $0x14] sm:$0xf0]  ;;  %v2879_v6 = vor.u32 %v3744_v59, %v2878_v54  ;;  %v3726_v9 = vld [vmem:[%s5812_s2 + $0x4] sm:$0xf0]  ;;  %v3032_v54 = vld [vmem:[%s5812_s2 + $0x1c8] sm:$0xf0] }
  0x5d   : > { %1228 = vmatpush.bf16.msra.mxu0 %v2839_v26  ;;  %v2815_v5 = vor.u32 %v3728_v53, %v2814_v58  ;;  %v2807_v22 = vor.u32 %v3726_v9, %v2806_v1  ;;  %v2867_v26 = vor.u32 %v3739_v15, %v2864_v17  ;;  %v2968_v58 = vld [vmem:[%s5812_s2 + $0x148] sm:$0xf0]  ;;  %v3781_v53 = vld [vmem:[%s5812_s2 + $0x1c4] sm:$0xf]  ;;  %v3763_v1 = vld [vmem:[%s5812_s2 + $0x134] sm:$0xf] }
  0x5e   : > { %1241 = vmatpush.bf16.msra.mxu1 %v2903_v27  ;;  %v2931_v27 = vor.u32 %v3755_v18, %v2928_v19  ;;  %v2840_v59 = vld [vmem:[%s5812_s2 + $0x48] sm:$0xf0]  ;;  %v2971_v62 = vor.u32 %v3765_v43, %v2968_v58  ;;  %v3035_v63 = vor.u32 %v3781_v53, %v3032_v54  ;;  %v2832_v9 = vld [vmem:[%s5812_s2 + $0x38] sm:$0xf0]  ;;  %v3761_v15 = vld [vmem:[%s5812_s2 + $0x124] sm:$0xf] }
  0x5f   : > { %1254 = vmatpush.bf16.msra.mxu2 %v2967_v20  ;;  %v3059_v20 = vor.u32 %v3787_v3, %v3056_v4  ;;  %v2843_v2 = vor.u32 %v3733_v51, %v2840_v59  ;;  %v2960_v4 = vld [vmem:[%s5812_s2 + $0x138] sm:$0xf0]  ;;  %v2952_v18 = vld [vmem:[%s5812_s2 + $0x128] sm:$0xf0]  ;;  %v3777_v19 = vld [vmem:[%s5812_s2 + $0x1a4] sm:$0xf] }
  0x60   : > { %1267 = vmatpush.bf16.msra.mxu3 %v3031_v21  ;;  %v2995_v21 = vor.u32 %v3771_v10, %v2992_v11  ;;  %v3747_v10 = vld [vmem:[%s5812_s2 + $0xb4] sm:$0xf]  ;;  %v2896_v11 = vld [vmem:[%s5812_s2 + $0xb8] sm:$0xf0]  ;;  %v2963_v12 = vor.u32 %v3763_v1, %v2960_v4  ;;  %v3182_v51 = vld [vmem:[%s5812_s2 + $0x470] sm:$0xf] }
  0x61   : > { %1229 = vmatpush.bf16.msra.mxu0 %v2831_v40  ;;  %v3735_v40 = vld [vmem:[%s5812_s2 + $0x54] sm:$0xf]  ;;  %v2899_v17 = vor.u32 %v3747_v10, %v2896_v11  ;;  %v3868_v43 = vld [vmem:[%s5812_s2 + $0x474] sm:$0xf0]  ;;  %v3310_v58 = vld [vmem:[%s5812_s2 + $0x570] sm:$0xf] }
  0x62   : > { %1242 = vmatpush.bf16.msra.mxu1 %v2895_v41  ;;  %v3767_v41 = vld [vmem:[%s5812_s2 + $0x154] sm:$0xf]  ;;  %v3900_v59 = vld [vmem:[%s5812_s2 + $0x574] sm:$0xf0]  ;;  %v3302_v10 = vld [vmem:[%s5812_s2 + $0x560] sm:$0xf] }
  0x63   : > { %1255 = vmatpush.bf16.msra.mxu2 %v2959_v33  ;;  %v2856_v33 = vld [vmem:[%s5812_s2 + $0x68] sm:$0xf0]  ;;  %v3311_v4 = vor.u32 %v3900_v59, %v3310_v58  ;;  %v3898_v11 = vld [vmem:[%s5812_s2 + $0x564] sm:$0xf0]  ;;  %v3206_v58 = vld [vmem:[%s5812_s2 + $0x4a0] sm:$0xf] }
  0x64   : > { %1268 = vmatpush.bf16.msra.mxu3 %v3023_v32  ;;  %v4787_v32 = vpack.c.b16 %v4509_v57, %v4509_v57  ;;  %v4804_v57 = vpack.c.b16 %v4528_v8, %v4528_v8  ;;  %v2859_v7 = vor.u32 %v3737_v24, %v2856_v33  ;;  %v2976_v8 = vld [vmem:[%s5812_s2 + $0x158] sm:$0xf0]  ;;  %v2955_v24 = vor.u32 %v3761_v15, %v2952_v18  ;;  %v3775_v33 = vld [vmem:[%s5812_s2 + $0x194] sm:$0xf]  ;;  %v3890_v59 = vld [vmem:[%s5812_s2 + $0x524] sm:$0xf0] }
  0x65   : > { %1230 = vmatpush.bf16.msra.mxu0 %v2823_v52  ;;  %v2979_v42 = vor.u32 %v3767_v41, %v2976_v8  ;;  %v2851_v52 = vor.u32 %v3735_v40, %v2848_v47  ;;  %v3011_v41 = vor.u32 %v3775_v33, %v3008_v34  ;;  %v3741_v8 = vld [vmem:[%s5812_s2 + $0x84] sm:$0xf]  ;;  %v3303_v18 = vor.u32 %v3898_v11, %v3302_v10  ;;  %v3894_v33 = vld [vmem:[%s5812_s2 + $0x544] sm:$0xf0]  ;;  %v3350_v34 = vld [vmem:[%s5812_s2 + $0x5c0] sm:$0xf] }
  0x66   : > { %1243 = vmatpush.bf16.msra.mxu1 %v2887_v55  ;;  %v3326_v10 = vld [vmem:[%s5812_s2 + $0x590] sm:$0xf]  ;;  %v3904_v11 = vld [vmem:[%s5812_s2 + $0x594] sm:$0xf0] }
  0x67   : > { %1256 = vmatpush.bf16.msra.mxu2 %v2951_v49  ;;  %v2912_v49 = vld [vmem:[%s5812_s2 + $0xd8] sm:$0xf0] }
  0x68   : > { %1269 = vmatpush.bf16.msra.mxu3 %v3015_v48  ;;  %v3751_v48 = vld [vmem:[%s5812_s2 + $0xd4] sm:$0xf] }
  0x69   : > { %1231 = vmatpush.bf16.msra.mxu0 %v2815_v5  ;;  %v2915_v55 = vor.u32 %v3751_v48, %v2912_v49  ;;  %v3779_v5 = vld [vmem:[%s5812_s2 + $0x1b4] sm:$0xf]  ;;  %v2936_v48 = vld [vmem:[%s5812_s2 + $0x108] sm:$0xf0]  ;;  %v3773_v49 = vld [vmem:[%s5812_s2 + $0x184] sm:$0xf] }
  0x6a   : > { %1244 = vmatpush.bf16.msra.mxu1 %v2879_v6  ;;  %v3024_v6 = vld [vmem:[%s5812_s2 + $0x1b8] sm:$0xf0]  ;;  %v2939_v53 = vor.u32 %v3757_v45, %v2936_v48  ;;  %v3876_v45 = vld [vmem:[%s5812_s2 + $0x4b4] sm:$0xf0]  ;;  %v3342_v48 = vld [vmem:[%s5812_s2 + $0x5b0] sm:$0xf] }
  0x6b   : > { %1257 = vmatpush.bf16.msra.mxu2 %v2943_v61  ;;  %v2904_v61 = vld [vmem:[%s5812_s2 + $0xc8] sm:$0xf0]  ;;  %v3027_v13 = vor.u32 %v3779_v5, %v3024_v6  ;;  %v3238_v6 = vld [vmem:[%s5812_s2 + $0x4e0] sm:$0xf] }
  0x6c   : > { %1270 = vmatpush.bf16.msra.mxu3 %v3007_v60  ;;  %v3749_v60 = vld [vmem:[%s5812_s2 + $0xc4] sm:$0xf] }
  0x6d   : > { %1232 = vmatpush.bf16.msra.mxu0 %v2807_v22  ;;  %v2907_v3 = vor.u32 %v3749_v60, %v2904_v61  ;;  %v3745_v22 = vld [vmem:[%s5812_s2 + $0xa4] sm:$0xf]  ;;  %v3374_v60 = vld [vmem:[%s5812_s2 + $0x5f0] sm:$0xf]  ;;  %v3916_v61 = vld [vmem:[%s5812_s2 + $0x5f4] sm:$0xf0] }
  0x6e   : > { %1245 = vmatpush.bf16.msra.mxu1 %v2871_v23  ;;  %v2888_v23 = vld [vmem:[%s5812_s2 + $0xa8] sm:$0xf0]  ;;  %v3375_v5 = vor.u32 %v3916_v61, %v3374_v60  ;;  %v3334_v60 = vld [vmem:[%s5812_s2 + $0x5a0] sm:$0xf]  ;;  %v3906_v61 = vld [vmem:[%s5812_s2 + $0x5a4] sm:$0xf0] }
  0x6f   : > { %1258 = vmatpush.bf16.msra.mxu2 %v2935_v16  ;;  %v2835_v16 = vor.u32 %v3731_v0, %v2832_v9  ;;  %v2891_v29 = vor.u32 %v3745_v22, %v2888_v23  ;;  %v3183_v0 = vor.u32 %v3868_v43, %v3182_v51  ;;  %v3882_v9 = vld [vmem:[%s5812_s2 + $0x4e4] sm:$0xf0]  ;;  %v3294_v22 = vld [vmem:[%s5812_s2 + $0x550] sm:$0xf]  ;;  %v3896_v23 = vld [vmem:[%s5812_s2 + $0x554] sm:$0xf0] }
  0x70   : > { %1271 = vmatpush.bf16.msra.mxu3 %v2999_v14  ;;  %1233 = vmatmul.bf16.vlgmr.msra.gmra.mxu0 %v4800_v56  ;;  %v3729_v14 = vld [vmem:[%s5812_s2 + $0x24] sm:$0xf]  ;;  %v3239_v15 = vor.u32 %v3882_v9, %v3238_v6  ;;  %v3142_v51 = vld [vmem:[%s5812_s2 + $0x420] sm:$0xf]  ;;  %v3858_v43 = vld [vmem:[%s5812_s2 + $0x424] sm:$0xf0] }
  0x71   : > { %1277 = vmatpush.bf16.msrb.mxu0 %v2867_v26  ;;  %1246 = vmatmul.bf16.vlgmr.msra.gmra.mxu1 %v4804_v57  ;;  %v3727_v26 = vld [vmem:[%s5812_s2 + $0x14] sm:$0xf]  ;;  %v3262_v6 = vld [vmem:[%s5812_s2 + $0x510] sm:$0xf]  ;;  %v3888_v9 = vld [vmem:[%s5812_s2 + $0x514] sm:$0xf0] }
  0x72   : > { %1290 = vmatpush.bf16.msrb.mxu1 %v2931_v27  ;;  %1259 = vmatmul.bf16.vlgmr.msra.gmra.mxu2 %v4783_v31  ;;  %v3759_v27 = vld [vmem:[%s5812_s2 + $0x114] sm:$0xf]  ;;  %v2819_v46 = vor.u32 %v3727_v26, %v2816_v37  ;;  %v3158_v26 = vld [vmem:[%s5812_s2 + $0x440] sm:$0xf]  ;;  %v3910_v37 = vld [vmem:[%s5812_s2 + $0x5c4] sm:$0xf0] }
  0x73   : > { %1303 = vmatpush.bf16.msrb.mxu2 %v2995_v21  ;;  %1272 = vmatmul.bf16.vlgmr.msra.gmra.mxu3 %v4787_v32  ;;  %v2824_v21 = vld [vmem:[%s5812_s2 + $0x28] sm:$0xf0]  ;;  %v2947_v40 = vor.u32 %v3759_v27, %v2944_v30  ;;  %v3862_v27 = vld [vmem:[%s5812_s2 + $0x444] sm:$0xf0]  ;;  %v3286_v30 = vld [vmem:[%s5812_s2 + $0x540] sm:$0xf] }
  0x74   : > { %1316 = vmatpush.bf16.msrb.mxu3 %v3059_v20  ;;  %v3016_v20 = vld [vmem:[%s5812_s2 + $0x1a8] sm:$0xf0]  ;;  %v2827_v28 = vor.u32 %v3729_v14, %v2824_v21  ;;  %v3880_v21 = vld [vmem:[%s5812_s2 + $0x4d4] sm:$0xf0] }
  0x75   : > { %1278 = vmatpush.bf16.msrb.mxu0 %v2859_v7  ;;  %v3019_v25 = vor.u32 %v3777_v19, %v3016_v20  ;;  %v3725_v7 = vld [vmem:[%s5812_s2 + $0x4] sm:$0xf]  ;;  %v3230_v20 = vld [vmem:[%s5812_s2 + $0x4d0] sm:$0xf] }
  0x76   : > { %1291 = vmatpush.bf16.msrb.mxu1 %v2923_v44  ;;  %v2808_v44 = vld [vmem:[%s5812_s2 + $0x8] sm:$0xf0] }
  0x77   : > { %1304 = vmatpush.bf16.msrb.mxu2 %v2987_v38  ;;  %v3743_v38 = vld [vmem:[%s5812_s2 + $0x94] sm:$0xf] }
  0x78   : > { %1317 = vmatpush.bf16.msrb.mxu3 %v3051_v39  ;;  %v2880_v39 = vld [vmem:[%s5812_s2 + $0x98] sm:$0xf0] }
  0x79   : > { %1279 = vmatpush.bf16.msrb.mxu0 %v2851_v52  ;;  %v2883_v47 = vor.u32 %v3743_v38, %v2880_v39  ;;  %v3246_v52 = vld [vmem:[%s5812_s2 + $0x4f0] sm:$0xf]  ;;  %v3159_v38 = vor.u32 %v3862_v27, %v3158_v26  ;;  %v3899_v26 = vld [vmem:[%s5812_s2 + $0x574] sm:$0xf] }
  0x7a   : > { %1292 = vmatpush.bf16.msrb.mxu1 %v2915_v55  ;;  %v3884_v55 = vld [vmem:[%s5812_s2 + $0x4f4] sm:$0xf0] }
  0x7b   : > { %1305 = vmatpush.bf16.msrb.mxu2 %v2979_v42  ;;  %v3000_v42 = vld [vmem:[%s5812_s2 + $0x188] sm:$0xf0]  ;;  %v3247_v1 = vor.u32 %v3884_v55, %v3246_v52 }
  0x7c   : > { %1318 = vmatpush.bf16.msrb.mxu3 %v3043_v50  ;;  %v2872_v50 = vld [vmem:[%s5812_s2 + $0x88] sm:$0xf0]  ;;  %v3003_v54 = vor.u32 %v3773_v49, %v3000_v42  ;;  %v3908_v49 = vld [vmem:[%s5812_s2 + $0x5b4] sm:$0xf0] }
  0x7d   : > { %1280 = vmatpush.bf16.msrb.mxu0 %v2843_v2  ;;  %v3174_v2 = vld [vmem:[%s5812_s2 + $0x460] sm:$0xf]  ;;  %v3343_v55 = vor.u32 %v3908_v49, %v3342_v48  ;;  %v3304_v49 = vld [vmem:[%s5812_s2 + $0x568] sm:$0xf0] }
  0x7e   : > { %1293 = vmatpush.bf16.msrb.mxu1 %v2907_v3  ;;  %v3866_v3 = vld [vmem:[%s5812_s2 + $0x464] sm:$0xf0] }
  0x7f   : > { %1306 = vmatpush.bf16.msrb.mxu2 %v2971_v62  ;;  %v2811_v62 = vor.u32 %v3725_v7, %v2808_v44  ;;  %v3175_v14 = vor.u32 %v3866_v3, %v3174_v2  ;;  %v3287_v7 = vor.u32 %v3894_v33, %v3286_v30  ;;  %v3351_v44 = vor.u32 %v3910_v37, %v3350_v34 }
  0x80   : > { %1319 = vmatpush.bf16.msrb.mxu3 %v3035_v63  ;;  %v2875_v63 = vor.u32 %v3741_v8, %v2872_v50  ;;  %v3214_v8 = vld [vmem:[%s5812_s2 + $0x4b0] sm:$0xf]  ;;  %v3335_v3 = vor.u32 %v3906_v61, %v3334_v60  ;;  %v1398_v30 = vunpack.c.l.b16 %v4462_v35  ;;  %v1399_v33 = vunpack.c.h.b16 %v4462_v35  ;;  %v3879_v60 = vld [vmem:[%s5812_s2 + $0x4d4] sm:$0xf]  ;;  %v3232_v61 = vld [vmem:[%s5812_s2 + $0x4d8] sm:$0xf0] }
  0x81   : > { %1281 = vmatpush.bf16.msrb.mxu0 %v2835_v16  ;;  %v3166_v16 = vld [vmem:[%s5812_s2 + $0x450] sm:$0xf]  ;;  %v3215_v50 = vor.u32 %v3876_v45, %v3214_v8  ;;  %v3881_v45 = vld [vmem:[%s5812_s2 + $0x4e4] sm:$0xf] }
  0x82   : > { %1294 = vmatpush.bf16.msrb.mxu1 %v2899_v17  ;;  %v3864_v17 = vld [vmem:[%s5812_s2 + $0x454] sm:$0xf0]  ;;  %v5195_v48 = vpack.c.b16 %v1399_v33, %v1399_v33  ;;  %v3208_v33 = vld [vmem:[%s5812_s2 + $0x4a8] sm:$0xf0] }
  0x83   : > { %1307 = vmatpush.bf16.msrb.mxu2 %v2963_v12  ;;  %v3366_v12 = vld [vmem:[%s5812_s2 + $0x5e0] sm:$0xf] }
  0x84   : > { %1320 = vmatpush.bf16.msrb.mxu3 %v3027_v13  ;;  %v3914_v13 = vld [vmem:[%s5812_s2 + $0x5e4] sm:$0xf0] }
  0x85   : > { %1282 = vmatpush.bf16.msrb.mxu0 %v2827_v28  ;;  %v3367_v19 = vor.u32 %v3914_v13, %v3366_v12  ;;  %v3295_v28 = vor.u32 %v3896_v23, %v3294_v22  ;;  %v3126_v12 = vld [vmem:[%s5812_s2 + $0x400] sm:$0xf]  ;;  %v3902_v23 = vld [vmem:[%s5812_s2 + $0x584] sm:$0xf0] }
  0x86   : > { %1295 = vmatpush.bf16.msrb.mxu1 %v2891_v29  ;;  %v3318_v22 = vld [vmem:[%s5812_s2 + $0x580] sm:$0xf] }
  0x87   : > { %1308 = vmatpush.bf16.msrb.mxu2 %v2955_v24  ;;  %v3358_v24 = vld [vmem:[%s5812_s2 + $0x5d0] sm:$0xf]  ;;  %v3319_v37 = vor.u32 %v3902_v23, %v3318_v22  ;;  %v3875_v22 = vld [vmem:[%s5812_s2 + $0x4b4] sm:$0xf]  ;;  %v3216_v23 = vld [vmem:[%s5812_s2 + $0x4b8] sm:$0xf0] }
  0x88   : > { %1321 = vmatpush.bf16.msrb.mxu3 %v3019_v25  ;;  %v3912_v25 = vld [vmem:[%s5812_s2 + $0x5d4] sm:$0xf0] }
  0x89   : > { %1283 = vmatpush.bf16.msrb.mxu0 %v2819_v46  ;;  %v3359_v29 = vor.u32 %v3912_v25, %v3358_v24  ;;  %v3278_v46 = vld [vmem:[%s5812_s2 + $0x530] sm:$0xf]  ;;  %v3867_v24 = vld [vmem:[%s5812_s2 + $0x474] sm:$0xf]  ;;  %v3184_v25 = vld [vmem:[%s5812_s2 + $0x478] sm:$0xf0] }
  0x8a   : > { %1296 = vmatpush.bf16.msrb.mxu1 %v2883_v47  ;;  %v3892_v47 = vld [vmem:[%s5812_s2 + $0x534] sm:$0xf0] }
  0x8b   : > { %1309 = vmatpush.bf16.msrb.mxu2 %v2947_v40  ;;  %v3150_v40 = vld [vmem:[%s5812_s2 + $0x430] sm:$0xf]  ;;  %v3279_v52 = vor.u32 %v3892_v47, %v3278_v46  ;;  %v3897_v46 = vld [vmem:[%s5812_s2 + $0x564] sm:$0xf]  ;;  %v5193_v47 = vpack.c.b16 %v1398_v30, %v1398_v30 }
  0x8c   : > { %1322 = vmatpush.bf16.msrb.mxu3 %v3011_v41  ;;  %v3860_v41 = vld [vmem:[%s5812_s2 + $0x434] sm:$0xf0]  ;;  %v3873_v30 = vld [vmem:[%s5812_s2 + $0x4a4] sm:$0xf] }
  0x8d   : > { %1284 = vmatpush.bf16.msrb.mxu0 %v2811_v62  ;;  %v3151_v42 = vor.u32 %v3860_v41, %v3150_v40  ;;  %v3143_v62 = vor.u32 %v3858_v43, %v3142_v51  ;;  %v3187_v40 = vor.u32 %v3867_v24, %v3184_v25  ;;  %v3891_v24 = vld [vmem:[%s5812_s2 + $0x534] sm:$0xf]  ;;  %v3280_v25 = vld [vmem:[%s5812_s2 + $0x538] sm:$0xf0] }
  0x8e   : > { %1297 = vmatpush.bf16.msrb.mxu1 %v2875_v63 }
  0x8f   : > { %1310 = vmatpush.bf16.msrb.mxu2 %v2939_v53  ;;  %v3874_v53 = vld [vmem:[%s5812_s2 + $0x4a4] sm:$0xf0] }
  0x90   : > { %1323 = vmatpush.bf16.msrb.mxu3 %v3003_v54  ;;  %1285 = vmatmul.bf16.vlgmr.msrb.gmra.mxu0 %v4800_v56  ;;  %v3167_v56 = vor.u32 %v3864_v17, %v3166_v16  ;;  %v3270_v54 = vld [vmem:[%s5812_s2 + $0x520] sm:$0xf]  ;;  %v3207_v63 = vor.u32 %v3874_v53, %v3206_v58  ;;  %v3870_v17 = vld [vmem:[%s5812_s2 + $0x484] sm:$0xf0]  ;;  %v3863_v58 = vld [vmem:[%s5812_s2 + $0x454] sm:$0xf] }
  0x91   : > { %1728 = vmatpush.bf16.msra.mxu0 %v3183_v0  ;;  %1298 = vmatmul.bf16.vlgmr.msrb.gmra.mxu1 %v4804_v57  ;;  %v3878_v57 = vld [vmem:[%s5812_s2 + $0x4c4] sm:$0xf0]  ;;  %v3134_v0 = vld [vmem:[%s5812_s2 + $0x410] sm:$0xf]  ;;  %v3271_v2 = vor.u32 %v3890_v59, %v3270_v54  ;;  %v3190_v16 = vld [vmem:[%s5812_s2 + $0x480] sm:$0xf]  ;;  %v3307_v54 = vor.u32 %v3897_v46, %v3304_v49 }
  0x92   : > { %1741 = vmatpush.bf16.msra.mxu1 %v3247_v1  ;;  %1311 = vmatmul.bf16.vlgmr.msrb.gmra.mxu2 %v4783_v31  ;;  %v3231_v31 = vor.u32 %v3880_v21, %v3230_v20  ;;  %v3856_v1 = vld [vmem:[%s5812_s2 + $0x414] sm:$0xf0]  ;;  %v3254_v20 = vld [vmem:[%s5812_s2 + $0x500] sm:$0xf]  ;;  %v3886_v21 = vld [vmem:[%s5812_s2 + $0x504] sm:$0xf0] }
  0x93   : > { %1754 = vmatpush.bf16.msra.mxu2 %v3311_v4  ;;  %1324 = vmatmul.bf16.vlgmr.msrb.gmra.mxu3 %v4787_v32  ;;  %v3222_v32 = vld [vmem:[%s5812_s2 + $0x4c0] sm:$0xf]  ;;  %v3198_v4 = vld [vmem:[%s5812_s2 + $0x490] sm:$0xf]  ;;  %v3135_v13 = vor.u32 %v3856_v1, %v3134_v0  ;;  %v3255_v34 = vor.u32 %v3886_v21, %v3254_v20  ;;  %v3168_v53 = vld [vmem:[%s5812_s2 + $0x458] sm:$0xf0] }
  0x94   : > { %1767 = vmatpush.bf16.msra.mxu3 %v3375_v5  ;;  %v3223_v39 = vor.u32 %v3878_v57, %v3222_v32  ;;  %v3872_v5 = vld [vmem:[%s5812_s2 + $0x494] sm:$0xf0]  ;;  %v3915_v32 = vld [vmem:[%s5812_s2 + $0x5f4] sm:$0xf]  ;;  %v3376_v57 = vld [vmem:[%s5812_s2 + $0x5f8] sm:$0xf0] }
  0x95   : > { %1729 = vmatpush.bf16.msra.mxu0 %v3175_v14  ;;  %v3199_v14 = vor.u32 %v3872_v5, %v3198_v4  ;;  %v3379_v35 = vor.u32 %v3915_v32, %v3376_v57  ;;  %v3911_v0 = vld [vmem:[%s5812_s2 + $0x5d4] sm:$0xf]  ;;  %v3360_v1 = vld [vmem:[%s5812_s2 + $0x5d8] sm:$0xf0]  ;;  %v3861_v4 = vld [vmem:[%s5812_s2 + $0x444] sm:$0xf]  ;;  %v3283_v32 = vor.u32 %v3891_v24, %v3280_v25 }
  0x96   : > { %1742 = vmatpush.bf16.msra.mxu1 %v3239_v15  ;;  %v3854_v15 = vld [vmem:[%s5812_s2 + $0x404] sm:$0xf0]  ;;  %v3160_v5 = vld [vmem:[%s5812_s2 + $0x448] sm:$0xf0]  ;;  %v3887_v46 = vld [vmem:[%s5812_s2 + $0x514] sm:$0xf] }
  0x97   : > { %1755 = vmatpush.bf16.msra.mxu2 %v3303_v18  ;;  %v3263_v18 = vor.u32 %v3888_v9, %v3262_v6  ;;  %v3127_v27 = vor.u32 %v3854_v15, %v3126_v12  ;;  %v3363_v9 = vor.u32 %v3911_v0, %v3360_v1  ;;  %v3893_v12 = vld [vmem:[%s5812_s2 + $0x544] sm:$0xf]  ;;  %v3352_v15 = vld [vmem:[%s5812_s2 + $0x5c8] sm:$0xf0]  ;;  %v3264_v49 = vld [vmem:[%s5812_s2 + $0x518] sm:$0xf0] }
  0x98   : > { %1768 = vmatpush.bf16.msra.mxu3 %v3367_v19  ;;  %v3327_v19 = vor.u32 %v3904_v11, %v3326_v10  ;;  %v3877_v10 = vld [vmem:[%s5812_s2 + $0x4c4] sm:$0xf]  ;;  %v3224_v11 = vld [vmem:[%s5812_s2 + $0x4c8] sm:$0xf0]  ;;  %v3946_v24 = vld [vmem:[%s5812_s2 + $0x6e4] sm:$0xf0] }
  0x99   : > { %1730 = vmatpush.bf16.msra.mxu0 %v3167_v56  ;;  %v3883_v56 = vld [vmem:[%s5812_s2 + $0x4f4] sm:$0xf]  ;;  %v3256_v0 = vld [vmem:[%s5812_s2 + $0x508] sm:$0xf0]  ;;  %v3901_v1 = vld [vmem:[%s5812_s2 + $0x584] sm:$0xf] }
  0x9a   : > { %1743 = vmatpush.bf16.msra.mxu1 %v3231_v31  ;;  %v3248_v31 = vld [vmem:[%s5812_s2 + $0x4f8] sm:$0xf0]  ;;  %v3638_v25 = vld [vmem:[%s5812_s2 + $0x760] sm:$0xf] }
  0x9b   : > { %1756 = vmatpush.bf16.msra.mxu2 %v3295_v28  ;;  %v3191_v28 = vor.u32 %v3870_v17, %v3190_v16  ;;  %v3251_v41 = vor.u32 %v3883_v56, %v3248_v31  ;;  %v3163_v16 = vor.u32 %v3861_v4, %v3160_v5  ;;  %v3227_v17 = vor.u32 %v3877_v10, %v3224_v11  ;;  %v3907_v56 = vld [vmem:[%s5812_s2 + $0x5b4] sm:$0xf]  ;;  %v3344_v31 = vld [vmem:[%s5812_s2 + $0x5b8] sm:$0xf0]  ;;  %v3932_v4 = vld [vmem:[%s5812_s2 + $0x674] sm:$0xf0] }
  0x9c   : > { %1769 = vmatpush.bf16.msra.mxu3 %v3359_v29  ;;  %v3312_v29 = vld [vmem:[%s5812_s2 + $0x578] sm:$0xf0]  ;;  %v3347_v57 = vor.u32 %v3907_v56, %v3344_v31  ;;  %v3582_v5 = vld [vmem:[%s5812_s2 + $0x6f0] sm:$0xf]  ;;  %v3962_v56 = vld [vmem:[%s5812_s2 + $0x764] sm:$0xf0] }
  0x9d   : > { %1731 = vmatpush.bf16.msra.mxu0 %v3159_v38  ;;  %v1396_v38 = vunpack.c.l.b16 %v4464_v36  ;;  %v3315_v8 = vor.u32 %v3899_v26, %v3312_v29  ;;  %v3144_v29 = vld [vmem:[%s5812_s2 + $0x428] sm:$0xf0]  ;;  %v3702_v31 = vld [vmem:[%s5812_s2 + $0x7e0] sm:$0xf] }
  0x9e   : > { %1744 = vmatpush.bf16.msra.mxu1 %v3223_v39  ;;  %v1397_v39 = vunpack.c.h.b16 %v4464_v36  ;;  %v3240_v36 = vld [vmem:[%s5812_s2 + $0x4e8] sm:$0xf0] }
  0x9f   : > { %1757 = vmatpush.bf16.msra.mxu2 %v3287_v7  ;;  %v3865_v7 = vld [vmem:[%s5812_s2 + $0x464] sm:$0xf]  ;;  %v5206_v51 = vpack.c.b16 %v1396_v38, %v1396_v38 }
  0xa0   : > { %1770 = vmatpush.bf16.msra.mxu3 %v3351_v44  ;;  %v3176_v44 = vld [vmem:[%s5812_s2 + $0x468] sm:$0xf0]  ;;  %v5208_v43 = vpack.c.b16 %v1397_v39, %v1397_v39  ;;  %v3905_v38 = vld [vmem:[%s5812_s2 + $0x5a4] sm:$0xf] }
  0xa1   : > { %1732 = vmatpush.bf16.msra.mxu0 %v3151_v42  ;;  %v3913_v42 = vld [vmem:[%s5812_s2 + $0x5e4] sm:$0xf]  ;;  %v3336_v39 = vld [vmem:[%s5812_s2 + $0x5a8] sm:$0xf0] }
  0xa2   : > { %1745 = vmatpush.bf16.msra.mxu1 %v3215_v50  ;;  %v3368_v50 = vld [vmem:[%s5812_s2 + $0x5e8] sm:$0xf0] }
  0xa3   : > { %1758 = vmatpush.bf16.msra.mxu2 %v3279_v52  ;;  %v3179_v52 = vor.u32 %v3865_v7, %v3176_v44  ;;  %v3371_v59 = vor.u32 %v3913_v42, %v3368_v50  ;;  %v3855_v7 = vld [vmem:[%s5812_s2 + $0x414] sm:$0xf]  ;;  %v3136_v44 = vld [vmem:[%s5812_s2 + $0x418] sm:$0xf0] }
  0xa4   : > { %1771 = vmatpush.bf16.msra.mxu3 %v3343_v55  ;;  %v3243_v55 = vor.u32 %v3881_v45, %v3240_v36  ;;  %v3871_v45 = vld [vmem:[%s5812_s2 + $0x494] sm:$0xf]  ;;  %v3200_v36 = vld [vmem:[%s5812_s2 + $0x498] sm:$0xf0] }
  0xa5   : > { %1733 = vmatpush.bf16.msra.mxu0 %v3143_v62  ;;  %v3895_v62 = vld [vmem:[%s5812_s2 + $0x554] sm:$0xf]  ;;  %v3328_v50 = vld [vmem:[%s5812_s2 + $0x598] sm:$0xf0] }
  0xa6   : > { %1746 = vmatpush.bf16.msra.mxu1 %v3207_v63  ;;  %v3296_v63 = vld [vmem:[%s5812_s2 + $0x558] sm:$0xf0]  ;;  %v3903_v42 = vld [vmem:[%s5812_s2 + $0x594] sm:$0xf] }
  0xa7   : > { %1759 = vmatpush.bf16.msra.mxu2 %v3271_v2  ;;  %v3171_v2 = vor.u32 %v3863_v58, %v3168_v53  ;;  %v3299_v6 = vor.u32 %v3895_v62, %v3296_v63  ;;  %v4062_v58 = vmov 0   ;;  %v3139_v53 = vor.u32 %v3855_v7, %v3136_v44  ;;  %v3885_v63 = vld [vmem:[%s5812_s2 + $0x504] sm:$0xf]  ;;  %v3926_v7 = vld [vmem:[%s5812_s2 + $0x644] sm:$0xf0] }
  0xa8   : > { %1772 = vmatpush.bf16.msra.mxu3 %v3335_v3  ;;  %v3235_v3 = vor.u32 %v3879_v60, %v3232_v61  ;;  %285 = vst [vmem:[#allocation2 + $0x28] sm:$0xff] %v4062_v58  ;;  %v3192_v60 = vld [vmem:[%s5812_s2 + $0x488] sm:$0xf0]  ;;  %v3267_v61 = vor.u32 %v3887_v46, %v3264_v49  ;;  %v3331_v62 = vor.u32 %v3903_v42, %v3328_v50  ;;  %v3958_v46 = vld [vmem:[%s5812_s2 + $0x744] sm:$0xf0] }
  0xa9   : > { %1734 = vmatpush.bf16.msra.mxu0 %v3135_v13  ;;  %v3288_v13 = vld [vmem:[%s5812_s2 + $0x548] sm:$0xf0]  ;;  %284 = vst [vmem:[#allocation2 + $0x20] sm:$0xff] %v4062_v58  ;;  %v3686_v49 = vld [vmem:[%s5812_s2 + $0x7c0] sm:$0xf] }
  0xaa   : > { %1747 = vmatpush.bf16.msra.mxu1 %v3199_v14  ;;  %v3909_v14 = vld [vmem:[%s5812_s2 + $0x5c4] sm:$0xf]  ;;  %v3291_v20 = vor.u32 %v3893_v12, %v3288_v13  ;;  %v3964_v12 = vld [vmem:[%s5812_s2 + $0x774] sm:$0xf0]  ;;  %v3710_v13 = vld [vmem:[%s5812_s2 + $0x7f0] sm:$0xf] }
  0xab   : > { %1760 = vmatpush.bf16.msra.mxu2 %v3263_v18  ;;  %v3859_v18 = vld [vmem:[%s5812_s2 + $0x434] sm:$0xf]  ;;  %v3355_v21 = vor.u32 %v3909_v14, %v3352_v15  ;;  %v3980_v14 = vld [vmem:[%s5812_s2 + $0x7f4] sm:$0xf0]  ;;  %v3259_v15 = vor.u32 %v3885_v63, %v3256_v0  ;;  %v3974_v42 = vld [vmem:[%s5812_s2 + $0x7c4] sm:$0xf0] }
  0xac   : > { %1773 = vmatpush.bf16.msra.mxu3 %v3327_v19  ;;  %v3152_v19 = vld [vmem:[%s5812_s2 + $0x438] sm:$0xf0]  ;;  %v3687_v0 = vor.u32 %v3974_v42, %v3686_v49  ;;  %v3950_v49 = vld [vmem:[%s5812_s2 + $0x704] sm:$0xf0] }
  0xad   : > { %1735 = vmatpush.bf16.msra.mxu0 %v3127_v27  ;;  %v3155_v26 = vor.u32 %v3859_v18, %v3152_v19  ;;  %v3219_v27 = vor.u32 %v3875_v22, %v3216_v23  ;;  %v3510_v19 = vld [vmem:[%s5812_s2 + $0x660] sm:$0xf]  ;;  %v3711_v22 = vor.u32 %v3980_v14, %v3710_v13 }
  0xae   : > { %1748 = vmatpush.bf16.msra.mxu1 %v3191_v28  ;;  %v3857_v28 = vld [vmem:[%s5812_s2 + $0x424] sm:$0xf]  ;;  %v3574_v23 = vld [vmem:[%s5812_s2 + $0x6e0] sm:$0xf] }
  0xaf   : > { %1761 = vmatpush.bf16.msra.mxu2 %v3255_v34  ;;  %v3889_v34 = vld [vmem:[%s5812_s2 + $0x524] sm:$0xf] }
  0xb0   : > { %1774 = vmatpush.bf16.msra.mxu3 %v3319_v37  ;;  %1736 = vmatmul.bf16.vlgmr.msra.gmra.mxu0 %v5206_v51  ;;  %v3272_v37 = vld [vmem:[%s5812_s2 + $0x528] sm:$0xf0] }
  0xb1   : > { %1780 = vmatpush.bf16.msrb.mxu0 %v3187_v40  ;;  %1749 = vmatmul.bf16.vlgmr.msra.gmra.mxu1 %v5208_v43  ;;  %v3147_v40 = vor.u32 %v3857_v28, %v3144_v29  ;;  %v3575_v28 = vor.u32 %v3946_v24, %v3574_v23  ;;  %v3502_v29 = vld [vmem:[%s5812_s2 + $0x650] sm:$0xf]  ;;  %v3456_v23 = vld [vmem:[#allocation2 + $0x28] sm:$0x10] }
  0xb2   : > { %1793 = vmatpush.bf16.msrb.mxu1 %v3251_v41  ;;  %1762 = vmatmul.bf16.vlgmr.msra.gmra.mxu2 %v5193_v47  ;;  %v3211_v41 = vor.u32 %v3873_v30, %v3208_v33  ;;  %v3566_v33 = vld [vmem:[%s5812_s2 + $0x6d0] sm:$0xf] }
  0xb3   : > { %1806 = vmatpush.bf16.msrb.mxu2 %v3315_v8  ;;  %1775 = vmatmul.bf16.vlgmr.msra.gmra.mxu3 %v5195_v48  ;;  %v3275_v8 = vor.u32 %v3889_v34, %v3272_v37  ;;  %v3944_v34 = vld [vmem:[%s5812_s2 + $0x6d4] sm:$0xf0]  ;;  %v3630_v37 = vld [vmem:[%s5812_s2 + $0x750] sm:$0xf] }
  0xb4   : > { %1819 = vmatpush.bf16.msrb.mxu3 %v3379_v35  ;;  %v3339_v35 = vor.u32 %v3905_v38, %v3336_v39  ;;  %v3960_v38 = vld [vmem:[%s5812_s2 + $0x754] sm:$0xf0]  ;;  %v3694_v39 = vld [vmem:[%s5812_s2 + $0x7d0] sm:$0xf] }
  0xb5   : > { %1781 = vmatpush.bf16.msrb.mxu0 %v3179_v52  ;;  %v3853_v52 = vld [vmem:[%s5812_s2 + $0x404] sm:$0xf]  ;;  %v3631_v44 = vor.u32 %v3960_v38, %v3630_v37  ;;  %v3446_v24 = vld [vmem:[#allocation2 + $0x10] sm:$0xf] }
  0xb6   : > { %1794 = vmatpush.bf16.msrb.mxu1 %v3243_v55  ;;  %v3128_v55 = vld [vmem:[%s5812_s2 + $0x408] sm:$0xf0]  ;;  %v3598_v37 = vld [vmem:[%s5812_s2 + $0x710] sm:$0xf] }
  0xb7   : > { %1807 = vmatpush.bf16.msrb.mxu2 %v3307_v54  ;;  %v3203_v54 = vor.u32 %v3871_v45, %v3200_v36  ;;  %v3131_v10 = vor.u32 %v3853_v52, %v3128_v55  ;;  %v3486_v52 = vld [vmem:[%s5812_s2 + $0x630] sm:$0xf]  ;;  %v3924_v55 = vld [vmem:[%s5812_s2 + $0x634] sm:$0xf0] }
  0xb8   : > { %1820 = vmatpush.bf16.msrb.mxu3 %v3371_v59  ;;  %v3869_v59 = vld [vmem:[%s5812_s2 + $0x484] sm:$0xf]  ;;  %v3487_v14 = vor.u32 %v3924_v55, %v3486_v52  ;;  %v3654_v52 = vld [vmem:[%s5812_s2 + $0x780] sm:$0xf]  ;;  %v3966_v55 = vld [vmem:[%s5812_s2 + $0x784] sm:$0xf0] }
  0xb9   : > { %1782 = vmatpush.bf16.msrb.mxu0 %v3171_v2  ;;  %v3320_v2 = vld [vmem:[%s5812_s2 + $0x588] sm:$0xf0]  ;;  %v3195_v11 = vor.u32 %v3869_v59, %v3192_v60  ;;  %v3940_v59 = vld [vmem:[%s5812_s2 + $0x6b4] sm:$0xf0]  ;;  %v3614_v60 = vld [vmem:[%s5812_s2 + $0x730] sm:$0xf] }
  0xba   : > { %1795 = vmatpush.bf16.msrb.mxu1 %v3235_v3  ;;  %v3518_v3 = vld [vmem:[%s5812_s2 + $0x670] sm:$0xf] }
  0xbb   : > { %1808 = vmatpush.bf16.msrb.mxu2 %v3299_v6  ;;  %v3948_v6 = vld [vmem:[%s5812_s2 + $0x6f4] sm:$0xf0] }
  0xbc   : > { %1821 = vmatpush.bf16.msrb.mxu3 %v3363_v9  ;;  %v3646_v9 = vld [vmem:[%s5812_s2 + $0x770] sm:$0xf]  ;;  %v3583_v18 = vor.u32 %v3948_v6, %v3582_v5  ;;  %v3478_v5 = vld [vmem:[%s5812_s2 + $0x620] sm:$0xf]  ;;  %v3922_v6 = vld [vmem:[%s5812_s2 + $0x624] sm:$0xf0] }
  0xbd   : > { %1783 = vmatpush.bf16.msrb.mxu0 %v3163_v16  ;;  %v3323_v16 = vor.u32 %v3901_v1, %v3320_v2  ;;  %v3956_v1 = vld [vmem:[%s5812_s2 + $0x734] sm:$0xf0]  ;;  %v3678_v2 = vld [vmem:[%s5812_s2 + $0x7b0] sm:$0xf] }
  0xbe   : > { %1796 = vmatpush.bf16.msrb.mxu1 %v3227_v17  ;;  %v3519_v17 = vor.u32 %v3932_v4, %v3518_v3  ;;  %v3972_v3 = vld [vmem:[%s5812_s2 + $0x7b4] sm:$0xf0] }
  0xbf   : > { %1809 = vmatpush.bf16.msrb.mxu2 %v3291_v20  ;;  %v3930_v20 = vld [vmem:[%s5812_s2 + $0x664] sm:$0xf0] }
  0xc0   : > { %1822 = vmatpush.bf16.msrb.mxu3 %v3355_v21  ;;  %v3647_v21 = vor.u32 %v3964_v12, %v3646_v9  ;;  %v3542_v9 = vld [vmem:[%s5812_s2 + $0x6a0] sm:$0xf]  ;;  %v3954_v12 = vld [vmem:[%s5812_s2 + $0x724] sm:$0xf0] }
  0xc1   : > { %1784 = vmatpush.bf16.msrb.mxu0 %v3155_v26  ;;  %v3978_v26 = vld [vmem:[%s5812_s2 + $0x7e4] sm:$0xf0] }
  0xc2   : > { %1797 = vmatpush.bf16.msrb.mxu1 %v3219_v27  ;;  %v3511_v27 = vor.u32 %v3930_v20, %v3510_v19  ;;  %v3703_v30 = vor.u32 %v3978_v26, %v3702_v31  ;;  %v3722_v19 = vld [vmem:[#allocation2 + $0x1c] sm:$0xf]  ;;  %v3615_v20 = vor.u32 %v3956_v1, %v3614_v60  ;;  %v3723_v31 = vld [vmem:[#allocation2 + $0x1c] sm:$0x10]  ;;  %v3721_v26 = vld [vmem:[#allocation2 + $0x14] sm:$0xf] }
  0xc3   : > { %1810 = vmatpush.bf16.msrb.mxu2 %v3283_v32  ;;  %v3928_v32 = vld [vmem:[%s5812_s2 + $0x654] sm:$0xf0]  ;;  %v3931_v60 = vld [vmem:[%s5812_s2 + $0x674] sm:$0xf] }
  0xc4   : > { %1823 = vmatpush.bf16.msrb.mxu3 %v3347_v57  ;;  %v3639_v57 = vor.u32 %v3962_v56, %v3638_v25 }
  0xc5   : > { %1785 = vmatpush.bf16.msrb.mxu0 %v3147_v40  ;;  %v3976_v40 = vld [vmem:[%s5812_s2 + $0x7d4] sm:$0xf0] }
  0xc6   : > { %1798 = vmatpush.bf16.msrb.mxu1 %v3211_v41  ;;  %v3494_v41 = vld [vmem:[%s5812_s2 + $0x640] sm:$0xf] }
  0xc7   : > { %1811 = vmatpush.bf16.msrb.mxu2 %v3275_v8  ;;  %v3695_v8 = vor.u32 %v3976_v40, %v3694_v39  ;;  %v3495_v58 = vor.u32 %v3926_v7, %v3494_v41  ;;  %v5525_v39 = vor.u32 %v3722_v19, %v3456_v23  ;;  %v3952_v41 = vld [vmem:[%s5812_s2 + $0x714] sm:$0xf0]  ;;  %v3662_v7 = vld [vmem:[%s5812_s2 + $0x790] sm:$0xf] }
  0xc8   : > { %1824 = vmatpush.bf16.msrb.mxu3 %v3339_v35  ;;  %v3622_v35 = vld [vmem:[%s5812_s2 + $0x740] sm:$0xf]  ;;  %v815_v36 = vpop.f32.mrf.mxu1 }
  0xc9   : > { %1786 = vmatpush.bf16.msrb.mxu0 %v3139_v53  ;;  %v802_v45 = vpop.f32.mrf.mxu0  ;;  %v3623_v63 = vor.u32 %v3958_v46, %v3622_v35  ;;  %v3918_v35 = vld [vmem:[%s5812_s2 + $0x604] sm:$0xf0]  ;;  %v3590_v46 = vld [vmem:[%s5812_s2 + $0x700] sm:$0xf] }
  0xca   : > { %1799 = vmatpush.bf16.msrb.mxu1 %v3203_v54  ;;  %v816_v50 = vadd.f32 %v815_v36, %v802_v45  ;;  %v3550_v54 = vld [vmem:[%s5812_s2 + $0x6b0] sm:$0xf]  ;;  %v3526_v45 = vld [vmem:[%s5812_s2 + $0x680] sm:$0xf]  ;;  %v3934_v36 = vld [vmem:[%s5812_s2 + $0x684] sm:$0xf0] }
  0xcb   : > { %1812 = vmatpush.bf16.msrb.mxu2 %v3267_v61  ;;  %v828_v61 = vpop.f32.mrf.mxu2 }
  0xcc   : > { %1825 = vmatpush.bf16.msrb.mxu3 %v3331_v62  ;;  %v841_v62 = vpop.f32.mrf.mxu3  ;;  %v829_v4 = vadd.f32 %v828_v61, %v816_v50 }
  0xcd   : > { %1787 = vmatpush.bf16.msrb.mxu0 %v3131_v10  ;;  %v3938_v10 = vld [vmem:[%s5812_s2 + $0x6a4] sm:$0xf0] }
  0xce   : > { %1800 = vmatpush.bf16.msrb.mxu1 %v3195_v11  ;;  %v3606_v11 = vld [vmem:[%s5812_s2 + $0x720] sm:$0xf]  ;;  %v5500_v13 = vadd.f32 %v841_v62, %v829_v4  ;;  %v3584_v4 = vld [vmem:[%s5812_s2 + $0x6f8] sm:$0xf0] }
  0xcf   : > { %1813 = vmatpush.bf16.msrb.mxu2 %v3259_v15  ;;  %v3551_v15 = vor.u32 %v3940_v59, %v3550_v54  ;;  %v3599_v54 = vor.u32 %v3952_v41, %v3598_v37 }
  0xd0   : > { %1826 = vmatpush.bf16.msrb.mxu3 %v3323_v16  ;;  %1788 = vmatmul.bf16.vlgmr.msrb.gmra.mxu0 %v5206_v51  ;;  %v3558_v51 = vld [vmem:[%s5812_s2 + $0x6c0] sm:$0xf]  ;;  %v817_v56 = vpop.f32.mrf.mxu1 }
  0xd1   : > { %2267 = vmatpush.bf16.msra.mxu0 %v3519_v17  ;;  %1801 = vmatmul.bf16.vlgmr.msrb.gmra.mxu1 %v5208_v43  ;;  %v3942_v43 = vld [vmem:[%s5812_s2 + $0x6c4] sm:$0xf0]  ;;  %v3670_v16 = vld [vmem:[%s5812_s2 + $0x7a0] sm:$0xf]  ;;  %v804_v25 = vpop.f32.mrf.mxu0 }
  0xd2   : > { %2280 = vmatpush.bf16.msra.mxu1 %v3583_v18  ;;  %1814 = vmatmul.bf16.vlgmr.msrb.gmra.mxu2 %v5193_v47  ;;  %v3503_v47 = vor.u32 %v3928_v32, %v3502_v29  ;;  %v3559_v53 = vor.u32 %v3942_v43, %v3558_v51  ;;  %v3970_v17 = vld [vmem:[%s5812_s2 + $0x7a4] sm:$0xf0]  ;;  %v3454_v18 = vld [vmem:[#allocation2 + $0x18] sm:$0xf]  ;;  %v3543_v29 = vor.u32 %v3938_v10, %v3542_v9  ;;  %v3470_v32 = vld [vmem:[%s5812_s2 + $0x610] sm:$0xf] }
  0xd3   : > { %2293 = vmatpush.bf16.msra.mxu2 %v3647_v21  ;;  %1827 = vmatmul.bf16.vlgmr.msrb.gmra.mxu3 %v5195_v48  ;;  %v3567_v48 = vor.u32 %v3944_v34, %v3566_v33  ;;  %v3679_v21 = vor.u32 %v3972_v3, %v3678_v2  ;;  %v3534_v33 = vld [vmem:[%s5812_s2 + $0x690] sm:$0xf]  ;;  %v3936_v34 = vld [vmem:[%s5812_s2 + $0x694] sm:$0xf0]  ;;  %v830_v40 = vpop.f32.mrf.mxu2  ;;  %v3462_v43 = vld [vmem:[%s5812_s2 + $0x600] sm:$0xf]  ;;  %v3591_v9 = vor.u32 %v3950_v49, %v3590_v46 }
  0xd4   : > { %2306 = vmatpush.bf16.msra.mxu3 %v3711_v22  ;;  %v3724_v22 = vld [vmem:[#allocation2 + $0x24] sm:$0x10]  ;;  %v3535_v50 = vor.u32 %v3936_v34, %v3534_v33  ;;  %v3463_v1 = vor.u32 %v3918_v35, %v3462_v43  ;;  %v3520_v2 = vld [vmem:[%s5812_s2 + $0x678] sm:$0xf0]  ;;  %v3947_v3 = vld [vmem:[%s5812_s2 + $0x6f4] sm:$0xf]  ;;  %v3655_v10 = vor.u32 %v3966_v55, %v3654_v52 }
  0xd5   : > { %2268 = vmatpush.bf16.msra.mxu0 %v3511_v27  ;;  %v3448_v27 = vld [vmem:[#allocation2 + $0x20] sm:$0x10]  ;;  %v5523_v38 = vor.u32 %v3724_v22, %v3454_v18  ;;  %v1937_v18 = vshrl.u32 %v5525_v39, 16  ;;  %v3587_v25 = vor.u32 %v3947_v3, %v3584_v4  ;;  %v3704_v40 = vld [vmem:[%s5812_s2 + $0x7e8] sm:$0xf0] }
  0xd6   : > { %2281 = vmatpush.bf16.msra.mxu1 %v3575_v28  ;;  %v3479_v28 = vor.u32 %v3922_v6, %v3478_v5  ;;  %v5538_v51 = vor.u32 %v3721_v26, %v3448_v27  ;;  %v3527_v6 = vor.u32 %v3934_v36, %v3526_v45  ;;  %v3512_v26 = vld [vmem:[%s5812_s2 + $0x668] sm:$0xf0]  ;;  %v3961_v33 = vld [vmem:[%s5812_s2 + $0x764] sm:$0xf]  ;;  %v3927_v43 = vld [vmem:[%s5812_s2 + $0x654] sm:$0xf] }
  0xd7   : > { %2294 = vmatpush.bf16.msra.mxu2 %v3639_v57  ;;  %v3920_v57 = vld [vmem:[%s5812_s2 + $0x614] sm:$0xf0]  ;;  %v3504_v35 = vld [vmem:[%s5812_s2 + $0x658] sm:$0xf0]  ;;  %v3943_v46 = vld [vmem:[%s5812_s2 + $0x6d4] sm:$0xf] }
  0xd8   : > { %2307 = vmatpush.bf16.msra.mxu3 %v3703_v30  ;;  %v3607_v30 = vor.u32 %v3954_v12, %v3606_v11  ;;  %v3471_v42 = vor.u32 %v3920_v57, %v3470_v32  ;;  %v1925_v62 = vshll.u32 %v5538_v51, 16  ;;  %v3963_v11 = vld [vmem:[%s5812_s2 + $0x774] sm:$0xf]  ;;  %v3648_v12 = vld [vmem:[%s5812_s2 + $0x778] sm:$0xf0]  ;;  %v1923_v22 = vshrl.u32 %v5538_v51, 16 }
  0xd9   : > { %2269 = vmatpush.bf16.msra.mxu0 %v3503_v47  ;;  %v843_v47 = vpop.f32.mrf.mxu3  ;;  %v3651_v27 = vor.u32 %v3963_v11, %v3648_v12  ;;  %v3945_v57 = vld [vmem:[%s5812_s2 + $0x6e4] sm:$0xf]  ;;  %v3568_v49 = vld [vmem:[%s5812_s2 + $0x6d8] sm:$0xf0]  ;;  %v3975_v52 = vld [vmem:[%s5812_s2 + $0x7d4] sm:$0xf] }
  0xda   : > { %2282 = vmatpush.bf16.msra.mxu1 %v3567_v48  ;;  %v3671_v48 = vor.u32 %v3970_v17, %v3670_v16  ;;  %v1930_v16 = vshrl.u32 %v5523_v38, 16  ;;  %v1927_v23 = vrot.slane %v1925_v62, 1  ;;  %v3696_v55 = vld [vmem:[%s5812_s2 + $0x7d8] sm:$0xf0]  ;;  %v3624_v3 = vld [vmem:[%s5812_s2 + $0x748] sm:$0xf0] }
  0xdb   : > { %2295 = vmatpush.bf16.msra.mxu2 %v3631_v44  ;;  %v3968_v44 = vld [vmem:[%s5812_s2 + $0x794] sm:$0xf0]  ;;  %v880_v56 = vpop.f32.mrf.mxu2  ;;  %v3699_v62 = vor.u32 %v3975_v52, %v3696_v55  ;;  %v3973_v4 = vld [vmem:[%s5812_s2 + $0x7c4] sm:$0xf]  ;;  %v3923_v12 = vld [vmem:[%s5812_s2 + $0x634] sm:$0xf] }
  0xdc   : > { %2308 = vmatpush.bf16.msra.mxu3 %v3695_v8  ;;  %v5536_v8 = vor.u32 %v3723_v31, %v3446_v24  ;;  %v3663_v59 = vor.u32 %v3968_v44, %v3662_v7  ;;  %v3523_v24 = vor.u32 %v3931_v60, %v3520_v2  ;;  %v3929_v31 = vld [vmem:[%s5812_s2 + $0x664] sm:$0xf]  ;;  %v5628_v41 = vor.u32 %v1927_v23, %v1923_v22  ;;  %v3496_v60 = vld [vmem:[%s5812_s2 + $0x648] sm:$0xf0]  ;;  %v3680_v22 = vld [vmem:[%s5812_s2 + $0x7b8] sm:$0xf0] }
  0xdd   : > { %2270 = vmatpush.bf16.msra.mxu0 %v3495_v58  ;;  %v1932_v58 = vshll.u32 %v5523_v38, 16  ;;  %v3640_v38 = vld [vmem:[%s5812_s2 + $0x768] sm:$0xf0]  ;;  %v3515_v44 = vor.u32 %v3929_v31, %v3512_v26  ;;  %v3957_v2 = vld [vmem:[%s5812_s2 + $0x744] sm:$0xf] }
  0xde   : > { %2283 = vmatpush.bf16.msra.mxu1 %v3559_v53  ;;  %v1939_v53 = vshll.u32 %v5525_v39, 16  ;;  %v1918_v61 = vshll.u32 %v5536_v8, 16  ;;  %v3977_v39 = vld [vmem:[%s5812_s2 + $0x7e4] sm:$0xf]  ;;  %v3643_v45 = vor.u32 %v3961_v33, %v3640_v38  ;;  %v3480_v31 = vld [vmem:[%s5812_s2 + $0x628] sm:$0xf0] }
  0xdf   : > { %2296 = vmatpush.bf16.msra.mxu2 %v3623_v63  ;;  %v854_v63 = vpop.f32.mrf.mxu0  ;;  %v1934_v17 = vrot.slane %v1932_v58, 1  ;;  %v3707_v36 = vor.u32 %v3977_v39, %v3704_v40  ;;  %v3507_v58 = vor.u32 %v3927_v43, %v3504_v35  ;;  %v3608_v38 = vld [vmem:[%s5812_s2 + $0x728] sm:$0xf0]  ;;  %v3969_v39 = vld [vmem:[%s5812_s2 + $0x7a4] sm:$0xf] }
  0xe0   : > { %2309 = vmatpush.bf16.msra.mxu3 %v3687_v0  ;;  %v867_v0 = vpop.f32.mrf.mxu1  ;;  %v1941_v19 = vrot.slane %v1939_v53, 1  ;;  %v3571_v53 = vor.u32 %v3943_v46, %v3568_v49  ;;  %v3672_v40 = vld [vmem:[%s5812_s2 + $0x7a8] sm:$0xf0]  ;;  %v3472_v43 = vld [vmem:[%s5812_s2 + $0x618] sm:$0xf0] }
  0xe1   : > { %2271 = vmatpush.bf16.msra.mxu0 %v3487_v14  ;;  %v868_v5 = vadd.f32 %v867_v0, %v854_v63  ;;  %v3979_v14 = vld [vmem:[%s5812_s2 + $0x7f4] sm:$0xf]  ;;  %v893_v32 = vpop.f32.mrf.mxu3  ;;  %v5611_v34 = vor.u32 %v1934_v17, %v1930_v16  ;;  %v3941_v0 = vld [vmem:[%s5812_s2 + $0x6c4] sm:$0xf]  ;;  %v3627_v16 = vor.u32 %v3957_v2, %v3624_v3  ;;  %v3675_v46 = vor.u32 %v3969_v39, %v3672_v40  ;;  %v3600_v52 = vld [vmem:[%s5812_s2 + $0x718] sm:$0xf0] }
  0xe2   : > { %2284 = vmatpush.bf16.msra.mxu1 %v3551_v15  ;;  %v3712_v15 = vld [vmem:[%s5812_s2 + $0x7f8] sm:$0xf0]  ;;  %v5613_v37 = vor.u32 %v1941_v19, %v1937_v18  ;;  %v3939_v18 = vld [vmem:[%s5812_s2 + $0x6b4] sm:$0xf] }
  0xe3   : > { %2297 = vmatpush.bf16.msra.mxu2 %v3615_v20  ;;  %v1916_v20 = vshrl.u32 %v5536_v8, 16  ;;  %v3552_v19 = vld [vmem:[%s5812_s2 + $0x6b8] sm:$0xf0]  ;;  %v3935_v49 = vld [vmem:[%s5812_s2 + $0x694] sm:$0xf] }
  0xe4   : > { %2310 = vmatpush.bf16.msra.mxu3 %v3679_v21  ;;  %v1920_v21 = vrot.slane %v1918_v61, 1  ;;  %v3967_v55 = vld [vmem:[%s5812_s2 + $0x794] sm:$0xf] }
  0xe5   : > { %2272 = vmatpush.bf16.msra.mxu0 %v3479_v28  ;;  %v3715_v28 = vor.u32 %v3979_v14, %v3712_v15  ;;  %v3488_v14 = vld [vmem:[%s5812_s2 + $0x638] sm:$0xf0] }
  0xe6   : > { %2285 = vmatpush.bf16.msra.mxu1 %v3543_v29  ;;  %v881_v29 = vadd.f32 %v880_v56, %v868_v5  ;;  %v3688_v5 = vld [vmem:[%s5812_s2 + $0x7c8] sm:$0xf0]  ;;  %v3921_v56 = vld [vmem:[%s5812_s2 + $0x624] sm:$0xf] }
  0xe7   : > { %2298 = vmatpush.bf16.msra.mxu2 %v3607_v30  ;;  %v3576_v30 = vld [vmem:[%s5812_s2 + $0x6e8] sm:$0xf0]  ;;  %v856_v7 = vpop.f32.mrf.mxu0  ;;  %v3691_v17 = vor.u32 %v3973_v4, %v3688_v5  ;;  %v3965_v5 = vld [vmem:[%s5812_s2 + $0x784] sm:$0xf] }
  0xe8   : > { %2311 = vmatpush.bf16.msra.mxu3 %v3671_v48  ;;  %v5624_v47 = vadd.f32 %v893_v32, %v881_v29  ;;  %v5626_v48 = vor.u32 %v1920_v21, %v1916_v20  ;;  %v3579_v8 = vor.u32 %v3945_v57, %v3576_v30  ;;  %v869_v51 = vpop.f32.mrf.mxu1  ;;  %v3955_v20 = vld [vmem:[%s5812_s2 + $0x734] sm:$0xf]  ;;  %v3616_v21 = vld [vmem:[%s5812_s2 + $0x738] sm:$0xf0]  ;;  %v3937_v32 = vld [vmem:[%s5812_s2 + $0x6a4] sm:$0xf] }
  0xe9   : > { %2273 = vmatpush.bf16.msra.mxu0 %v3471_v42  ;;  %v3959_v42 = vld [vmem:[%s5812_s2 + $0x754] sm:$0xf]  ;;  %v895_v63 = vpop.f32.mrf.mxu3  ;;  %v3619_v26 = vor.u32 %v3955_v20, %v3616_v21  ;;  %v3544_v57 = vld [vmem:[%s5812_s2 + $0x6a8] sm:$0xf0]  ;;  %v3953_v30 = vld [vmem:[%s5812_s2 + $0x724] sm:$0xf] }
  0xea   : > { %2286 = vmatpush.bf16.msra.mxu1 %v3535_v50  ;;  %v3632_v50 = vld [vmem:[%s5812_s2 + $0x758] sm:$0xf0]  ;;  %v3919_v51 = vld [vmem:[%s5812_s2 + $0x614] sm:$0xf]  ;;  %v3933_v63 = vld [vmem:[%s5812_s2 + $0x684] sm:$0xf] }
  0xeb   : > { %2299 = vmatpush.bf16.msra.mxu2 %v3599_v54  ;;  %v882_v54 = vpop.f32.mrf.mxu2  ;;  %v3635_v61 = vor.u32 %v3959_v42, %v3632_v50  ;;  %v3536_v42 = vld [vmem:[%s5812_s2 + $0x698] sm:$0xf0]  ;;  %v3951_v50 = vld [vmem:[%s5812_s2 + $0x714] sm:$0xf]  ;;  %v3592_v4 = vld [vmem:[%s5812_s2 + $0x708] sm:$0xf0] }
  0xec   : > { %2312 = vmatpush.bf16.msra.mxu3 %v3663_v59  ;;  %v3925_v59 = vld [vmem:[%s5812_s2 + $0x644] sm:$0xf]  ;;  %v3539_v54 = vor.u32 %v3935_v49, %v3536_v42 }
  0xed   : > { %2274 = vmatpush.bf16.msra.mxu0 %v3463_v1  ;;  %v3560_v1 = vld [vmem:[%s5812_s2 + $0x6c8] sm:$0xf0] }
  0xee   : > { %2287 = vmatpush.bf16.msra.mxu1 %v3527_v6 }
  0xef   : > { %2300 = vmatpush.bf16.msra.mxu2 %v3591_v9  ;;  %v1234_v6 = vpop.f32.mrf.mxu0  ;;  %v3499_v9 = vor.u32 %v3925_v59, %v3496_v60  ;;  %v3917_v59 = vld [vmem:[%s5812_s2 + $0x604] sm:$0xf]  ;;  %v3464_v60 = vld [vmem:[%s5812_s2 + $0x608] sm:$0xf0] }
  0xf0   : > { %2313 = vmatpush.bf16.msra.mxu3 %v3655_v10  ;;  %2275 = vmatmul.bf16.vlgmr.msra.gmra.mxu0 %v5626_v48  ;;  %v3563_v10 = vor.u32 %v3941_v0, %v3560_v1  ;;  %v1247_v11 = vpop.f32.mrf.mxu1  ;;  %v1235_v15 = vadd.f32 %v1234_v6, %v5500_v13  ;;  %v3971_v13 = vld [vmem:[%s5812_s2 + $0x7b4] sm:$0xf]  ;;  %v3528_v0 = vld [vmem:[%s5812_s2 + $0x688] sm:$0xf0]  ;;  %v3949_v1 = vld [vmem:[%s5812_s2 + $0x704] sm:$0xf] }
  0xf1   : > { %2319 = vmatpush.bf16.msrb.mxu0 %v3523_v24  ;;  %2288 = vmatmul.bf16.vlgmr.msra.gmra.mxu1 %v5628_v41  ;;  %v3491_v24 = vor.u32 %v3923_v12, %v3488_v14  ;;  %v3656_v6 = vld [vmem:[%s5812_s2 + $0x788] sm:$0xf0] }
  0xf2   : > { %2332 = vmatpush.bf16.msrb.mxu1 %v3587_v25  ;;  %2301 = vmatmul.bf16.vlgmr.msra.gmra.mxu2 %v5611_v34  ;;  %v1248_v23 = vadd.f32 %v1247_v11, %v1235_v15  ;;  %v3555_v25 = vor.u32 %v3939_v18, %v3552_v19  ;;  %v3595_v11 = vor.u32 %v3949_v1, %v3592_v4 }
  0xf3   : > { %2345 = vmatpush.bf16.msrb.mxu2 %v3651_v27  ;;  %2314 = vmatmul.bf16.vlgmr.msra.gmra.mxu3 %v5613_v37  ;;  %v3683_v27 = vor.u32 %v3971_v13, %v3680_v22  ;;  %v3659_v12 = vor.u32 %v3965_v5, %v3656_v6 }
  0xf4   : > { %2358 = vmatpush.bf16.msrb.mxu3 %v3715_v28 }
  0xf5   : > { %2320 = vmatpush.bf16.msrb.mxu0 %v3515_v44  ;;  %v1260_v28 = vpop.f32.mrf.mxu2  ;;  %v3483_v44 = vor.u32 %v3921_v56, %v3480_v31 }
  0xf6   : > { %2333 = vmatpush.bf16.msrb.mxu1 %v3579_v8  ;;  %v1273_v29 = vpop.f32.mrf.mxu3  ;;  %v1261_v33 = vadd.f32 %v1260_v28, %v1248_v23  ;;  %v3547_v8 = vor.u32 %v3937_v32, %v3544_v57 }
  0xf7   : > { %2346 = vmatpush.bf16.msrb.mxu2 %v3643_v45  ;;  %v1236_v35 = vpop.f32.mrf.mxu0 }
  0xf8   : > { %2359 = vmatpush.bf16.msrb.mxu3 %v3707_v36  ;;  %v5731_v7 = vadd.f32 %v1273_v29, %v1261_v33  ;;  %v1249_v45 = vpop.f32.mrf.mxu1  ;;  %v3611_v36 = vor.u32 %v3953_v30, %v3608_v38 }
  0xf9   : > { %2321 = vmatpush.bf16.msrb.mxu0 %v3507_v58  ;;  %v3664_v58 = vld [vmem:[%s5812_s2 + $0x798] sm:$0xf0] }
  0xfa   : > { %2334 = vmatpush.bf16.msrb.mxu1 %v3571_v53  ;;  %v3475_v53 = vor.u32 %v3919_v51, %v3472_v43 }
  0xfb   : > { %2347 = vmatpush.bf16.msrb.mxu2 %v3635_v61  ;;  %v3603_v61 = vor.u32 %v3951_v50, %v3600_v52 }
  0xfc   : > { %2360 = vmatpush.bf16.msrb.mxu3 %v3699_v62  ;;  %v3667_v62 = vor.u32 %v3967_v55, %v3664_v58 }
  0xfd   : > { %2322 = vmatpush.bf16.msrb.mxu0 %v3499_v9  ;;  %v1262_v2 = vpop.f32.mrf.mxu2  ;;  %v3467_v9 = vor.u32 %v3917_v59, %v3464_v60  ;;  %v2373_v59 = vld [vmem:[%s5813_s3] sm:$0x3] }
  0xfe   : > { %2335 = vmatpush.bf16.msrb.mxu1 %v3563_v10  ;;  %v1275_v3 = vpop.f32.mrf.mxu3  ;;  %v3531_v10 = vor.u32 %v3933_v63, %v3528_v0  ;;  %v2375_v0 = vperm.slane %v2373_v59, 0  ;;  %v2376_v6 = vperm.slane %v2373_v59, 1 }
  0xff   : > { %2348 = vmatpush.bf16.msrb.mxu2 %v3627_v16 }
 0x100   : > { %2361 = vmatpush.bf16.msrb.mxu3 %v3691_v17 }
 0x101   : > { %2323 = vmatpush.bf16.msrb.mxu0 %v3491_v24 }
 0x102   : > { %2336 = vmatpush.bf16.msrb.mxu1 %v3555_v25 }
 0x103   : > { %2349 = vmatpush.bf16.msrb.mxu2 %v3619_v26 }
 0x104   : > { %2362 = vmatpush.bf16.msrb.mxu3 %v3683_v27 }
 0x105   : > { %2324 = vmatpush.bf16.msrb.mxu0 %v3483_v44 }
 0x106   : > { %2337 = vmatpush.bf16.msrb.mxu1 %v3547_v8 }
 0x107   : > { %2350 = vmatpush.bf16.msrb.mxu2 %v3611_v36 }
 0x108   : > { %2363 = vmatpush.bf16.msrb.mxu3 %v3675_v46 }
 0x109   : > { %2325 = vmatpush.bf16.msrb.mxu0 %v3475_v53 }
 0x10a   : > { %2338 = vmatpush.bf16.msrb.mxu1 %v3539_v54 }
 0x10b   : > { %2351 = vmatpush.bf16.msrb.mxu2 %v3603_v61 }
 0x10c   : > { %2364 = vmatpush.bf16.msrb.mxu3 %v3667_v62 }
 0x10d   : > { %2326 = vmatpush.bf16.msrb.mxu0 %v3467_v9  ;;  %v1286_v14 = vpop.f32.mrf.mxu0 }
 0x10e   : > { %2339 = vmatpush.bf16.msrb.mxu1 %v3531_v10  ;;  %v1287_v15 = vadd.f32 %v1286_v14, %v5624_v47  ;;  %v1299_v16 = vpop.f32.mrf.mxu1 }
 0x10f   : > { %2352 = vmatpush.bf16.msrb.mxu2 %v3595_v11 }
 0x110   : > { %2365 = vmatpush.bf16.msrb.mxu3 %v3659_v12  ;;  %2327 = vmatmul.bf16.vlgmr.msrb.gmra.mxu0 %v5626_v48  ;;  %v1300_v17 = vadd.f32 %v1299_v16, %v1287_v15 }
 0x111   : > { %2340 = vmatmul.bf16.vlgmr.msrb.gmra.mxu1 %v5628_v41 }
 0x112   : > { %2353 = vmatmul.bf16.vlgmr.msrb.gmra.mxu2 %v5611_v34 }
 0x113   : > { %2366 = vmatmul.bf16.vlgmr.msrb.gmra.mxu3 %v5613_v37 }
 0x115   : > { %v1312_v18 = vpop.f32.mrf.mxu2  ;;  %v1288_v21 = vpop.f32.mrf.mxu0 }
 0x116   : > { %v1313_v19 = vadd.f32 %v1312_v18, %v1300_v17  ;;  %v1325_v20 = vpop.f32.mrf.mxu3  ;;  %v1301_v22 = vpop.f32.mrf.mxu1 }
 0x118   : > { %v1326_v13 = vadd.f32 %v1325_v20, %v1313_v19 }
 0x11d   : > { %v1314_v23 = vpop.f32.mrf.mxu2 }
 0x11e   : > { %v1327_v24 = vpop.f32.mrf.mxu3 }
 0x12d   : > { %v1737_v48 = vpop.f32.mrf.mxu0 }
 0x12e   : > { %v1750_v25 = vpop.f32.mrf.mxu1 }
 0x12f   : > { %v1751_v41 = vadd.f32 %v1750_v25, %v1737_v48 }
 0x135   : > { %v1763_v56 = vpop.f32.mrf.mxu2  ;;  %v1739_v26 = vpop.f32.mrf.mxu0 }
 0x136   : > { %v1776_v34 = vpop.f32.mrf.mxu3  ;;  %v1764_v31 = vadd.f32 %v1763_v56, %v1751_v41  ;;  %v1752_v27 = vpop.f32.mrf.mxu1 }
 0x138   : > { %v1777_v37 = vadd.f32 %v1776_v34, %v1764_v31 }
 0x13a   : > { %v1832_v47 = vadd.f32 %v1777_v37, %v5731_v7 }
 0x13d   : > { %v1765_v28 = vpop.f32.mrf.mxu2 }
 0x13e   : > { %v1778_v29 = vpop.f32.mrf.mxu3 }
 0x14d   : > { %v1789_v32 = vpop.f32.mrf.mxu0 }
 0x14e   : > { %v1802_v57 = vpop.f32.mrf.mxu1 }
 0x14f   : > { %v1803_v42 = vadd.f32 %v1802_v57, %v1789_v32 }
 0x155   : > { %v1815_v30 = vpop.f32.mrf.mxu2  ;;  %v1791_v38 = vpop.f32.mrf.mxu0 }
 0x156   : > { %v1828_v33 = vpop.f32.mrf.mxu3  ;;  %v1804_v39 = vpop.f32.mrf.mxu1  ;;  %v1816_v58 = vadd.f32 %v1815_v30, %v1803_v42 }
 0x158   : > { %v1829_v60 = vadd.f32 %v1828_v33, %v1816_v58 }
 0x15a   : > { %v1833_v4 = vadd.f32 %v1829_v60, %v1326_v13 }
 0x15d   : > { %v1817_v40 = vpop.f32.mrf.mxu2 }
 0x15e   : > { %v1830_v44 = vpop.f32.mrf.mxu3 }
 0x16d   : > { %v2276_v8 = vpop.f32.mrf.mxu0 }
 0x16e   : > { %v2289_v51 = vpop.f32.mrf.mxu1 }
 0x16f   : > { %v2290_v49 = vadd.f32 %v2289_v51, %v2276_v8 }
 0x175   : > { %v2302_v43 = vpop.f32.mrf.mxu2  ;;  %v2278_v45 = vpop.f32.mrf.mxu0 }
 0x176   : > { %v2315_v35 = vpop.f32.mrf.mxu3  ;;  %v2291_v36 = vpop.f32.mrf.mxu1  ;;  %v2303_v50 = vadd.f32 %v2302_v43, %v2290_v49 }
 0x178   : > { %v2316_v53 = vadd.f32 %v2315_v35, %v2303_v50 }
 0x17a   : > { %v2371_v63 = vadd.f32 %v2316_v53, %v1832_v47 }
 0x17c   : > { %v2379_v9 = vadd.f32 %v2375_v0, %v2371_v63 }
 0x17d   : > { %v2304_v46 = vpop.f32.mrf.mxu2 }
 0x17e   : > { %v2317_v7 = vpop.f32.mrf.mxu3  ;;  %v2381_v15 = vmax.f32 %v2379_v9, 0.0 }
 0x18d   : > { %v2328_v52 = vpop.f32.mrf.mxu0 }
 0x18e   : > { %v2341_v55 = vpop.f32.mrf.mxu1 }
 0x18f   : > { %v2342_v54 = vadd.f32 %v2341_v55, %v2328_v52 }
 0x195   : > { %v2354_v61 = vpop.f32.mrf.mxu2  ;;  %v2330_v2 = vpop.f32.mrf.mxu0 }
 0x196   : > { %v2367_v62 = vpop.f32.mrf.mxu3  ;;  %v2355_v1 = vadd.f32 %v2354_v61, %v2342_v54  ;;  %v2343_v3 = vpop.f32.mrf.mxu1 }
 0x198   : > { %v2368_v5 = vadd.f32 %v2367_v62, %v2355_v1 }
 0x19a   : > { %v2372_v10 = vadd.f32 %v2368_v5, %v1833_v4 }
 0x19c   : > { %v2380_v11 = vadd.f32 %v2376_v6, %v2372_v10 }
 0x19d   : > { %v2356_v12 = vpop.f32.mrf.mxu2 }
 0x19e   : > { %v2369_v14 = vpop.f32.mrf.mxu3  ;;  %v2382_v16 = vmax.f32 %v2380_v11, 0.0 }
 0x1a0   : > { %v2383_v17 = vpack.c.bf16 %v2382_v16, %v2381_v15 }
 0x1a2   : > { %2384 = vst [vmem:[%s272_s12] sm:$0xff] %v2383_v17 }
 0x1a3 PF: > { %s14_s19 = sadd.s32 1, %s4060_s19   ;;  %s5815_s15 = smov %s4052_s17 }
 0x1a4   : > { %p11_p8 = scmp.ge.s32.totalorder %s14_s19, 6   ;;  %s5816_s16 = smov %s4056_s18 }
 0x1a5   : > { %s5817_s17 = smov %s5820_s20  ;;  %s5818_s18 = smov %s5824_s21 }
 0x1a6   :  { %13 = sbr.rel (!%p11_p8) target bundleno = 3 (0x3), region = 72 }

</bundles_post_ra>
